<compile_context>
chip_gen: v7x
topology: tpu7x:2x2x1
jax: 0.10.0
libtpu: 0.0.40
codegen_flags: <defaults>
</compile_context>

<pallas_src>
import math
from functools import partial

import jax
import jax.numpy as jnp
from jax import lax
from jax.experimental import pallas as pl
from jax.experimental.pallas import tpu as pltpu


def _round_up(x, m):
    return ((x + m - 1) // m) * m


def _compute_vmem_limit():
    cap = None
    try:
        cap = int(pltpu.get_tpu_info().vmem_capacity_bytes)
    except Exception:
        cap = None
    if not cap or cap <= 0:
        cap = 64 * 1024 * 1024          # conservative (v7x-sized) fallback
    # leave ~24 MiB headroom for Mosaic internal scratch / double-buffered BlockSpec inputs
    return int(min(max(cap - 24 * 1024 * 1024, 32 * 1024 * 1024), 100 * 1024 * 1024))


_VMEM_LIMIT = _compute_vmem_limit()


def _mosaic(semantics):
    return pltpu.CompilerParams(dimension_semantics=semantics,
                                vmem_limit_bytes=_VMEM_LIMIT)


def _pick_tm(M):
    if M >= 512:
        return 512
    if M >= 256:
        return 256
    return _round_up(M, 8)


def _pick_tn(Np):
    # Np is always a multiple of 128
    if Np <= 512:
        return Np
    if Np % 512 == 0:
        return 512
    if Np % 256 == 0:
        return 256
    return 128


# ----------------------------------------------------------------------------
# Matmul kernels (bf16 operands, f32 accumulate, lane-dense outputs)
# ----------------------------------------------------------------------------
def _mm_k1_kernel(a_ref, b_ref, o_ref):
    o_ref[...] = jnp.dot(a_ref[...], b_ref[...],
                         preferred_element_type=jnp.float32).astype(o_ref.dtype)


def _mm_k1_bias_kernel(a_ref, b_ref, bias_ref, o_ref):
    o_ref[...] = (jnp.dot(a_ref[...], b_ref[...], preferred_element_type=jnp.float32)
                  + bias_ref[...]).astype(o_ref.dtype)


def _mm_kn_bias_kernel(a_ref, b_ref, bias_ref, o_ref, acc_ref):
    @pl.when(pl.program_id(2) == 0)
    def _init():
        acc_ref[...] = jnp.zeros_like(acc_ref)

    acc_ref[...] += jnp.dot(a_ref[...], b_ref[...], preferred_element_type=jnp.float32)

    @pl.when(pl.program_id(2) == pl.num_programs(2) - 1)
    def _done():
        o_ref[...] = (acc_ref[...] + bias_ref[...]).astype(o_ref.dtype)


def pallas_matmul(a, b, bias=None):
    """a (M, K) @ b (K, N) [+ bias (N,)] -> (M, N) float32."""
    M, K = a.shape
    K2, N = b.shape
    assert K == K2
    tm = _pick_tm(M)
    Mp = _round_up(M, tm)
    Np = _round_up(N, 128)
    tn = _pick_tn(Np)
    multi_k = K > 1024
    tk = 512 if multi_k else _round_up(K, 8)
    Kp = _round_up(K, tk)

    a = a.astype(jnp.bfloat16)
    b = b.astype(jnp.bfloat16)
    if (Mp, Kp) != (M, K):
        a = jnp.pad(a, ((0, Mp - M), (0, Kp - K)))
    if (Kp, Np) != (K, N):
        b = jnp.pad(b, ((0, Kp - K), (0, Np - N)))
    bias_p = None
    if bias is not None:
        bias_p = bias.reshape(1, N).astype(jnp.float32)
        if Np != N:
            bias_p = jnp.pad(bias_p, ((0, 0), (0, Np - N)))

    if not multi_k:
        if bias_p is None:
            out = pl.pallas_call(
                _mm_k1_kernel,
                out_shape=jax.ShapeDtypeStruct((Mp, Np), jnp.float32),
                grid=(Mp // tm, Np // tn),
                in_specs=[pl.BlockSpec((tm, Kp), lambda i, j: (i, 0)),
                          pl.BlockSpec((Kp, tn), lambda i, j: (0, j))],
                out_specs=pl.BlockSpec((tm, tn), lambda i, j: (i, j)),
                compiler_params=_mosaic(("parallel", "parallel")),
            )(a, b)
        else:
            out = pl.pallas_call(
                _mm_k1_bias_kernel,
                out_shape=jax.ShapeDtypeStruct((Mp, Np), jnp.float32),
                grid=(Mp // tm, Np // tn),
                in_specs=[pl.BlockSpec((tm, Kp), lambda i, j: (i, 0)),
                          pl.BlockSpec((Kp, tn), lambda i, j: (0, j)),
                          pl.BlockSpec((1, tn), lambda i, j: (0, j))],
                out_specs=pl.BlockSpec((tm, tn), lambda i, j: (i, j)),
                compiler_params=_mosaic(("parallel", "parallel")),
            )(a, b, bias_p)
    else:
        if bias_p is None:
            bias_p = jnp.zeros((1, Np), jnp.float32)
        out = pl.pallas_call(
            _mm_kn_bias_kernel,
            out_shape=jax.ShapeDtypeStruct((Mp, Np), jnp.float32),
            grid=(Mp // tm, Np // tn, Kp // tk),
            in_specs=[pl.BlockSpec((tm, tk), lambda i, j, k: (i, k)),
                      pl.BlockSpec((tk, tn), lambda i, j, k: (k, j)),
                      pl.BlockSpec((1, tn), lambda i, j, k: (0, j))],
            out_specs=pl.BlockSpec((tm, tn), lambda i, j, k: (i, j)),
            scratch_shapes=[pltpu.VMEM((tm, tn), jnp.float32)],
            compiler_params=_mosaic(("parallel", "parallel", "arbitrary")),
        )(a, b, bias_p)
    return out[:M, :N]


def pallas_bmm(a, b):
    """a (G, M, K) @ b (Gb, K, N) -> (G, M, N) f32; group g uses weight g % Gb."""
    G, M, K = a.shape
    Gb, K2, N = b.shape
    assert K == K2 and G % Gb == 0
    tm = _pick_tm(M)
    Mp = _round_up(M, tm)
    Np = _round_up(N, 128)
    tn = _pick_tn(Np)
    Kp = _round_up(K, 8)

    a = a.astype(jnp.bfloat16)
    b = b.astype(jnp.bfloat16)
    if (Mp, Kp) != (M, K):
        a = jnp.pad(a, ((0, 0), (0, Mp - M), (0, Kp - K)))
    if (Kp, Np) != (K, N):
        b = jnp.pad(b, ((0, 0), (0, Kp - K), (0, Np - N)))

    out = pl.pallas_call(
        _mm_k1_kernel,
        out_shape=jax.ShapeDtypeStruct((G, Mp, Np), jnp.float32),
        grid=(G, Mp // tm, Np // tn),
        in_specs=[
            pl.BlockSpec((None, tm, Kp), lambda g, i, j: (g, i, 0)),
            pl.BlockSpec((None, Kp, tn), lambda g, i, j: (g % Gb, 0, j)),
        ],
        out_specs=pl.BlockSpec((None, tm, tn), lambda g, i, j: (g, i, j)),
        compiler_params=_mosaic(("parallel", "parallel", "parallel")),
    )(a, b)
    return out[:, :M, :N]


# ----------------------------------------------------------------------------
# Fused LayerNorm (+ optional SiLU gate) -> matmul kernels
# ----------------------------------------------------------------------------
def _ln_matmul_kernel(x_ref, g_ref, bt_ref, w_ref, o_ref, *, eps):
    x = x_ref[...]
    mu = jnp.mean(x, axis=-1, keepdims=True)
    d = x - mu
    var = jnp.mean(d * d, axis=-1, keepdims=True)
    xn = d * lax.rsqrt(var + eps) * g_ref[...] + bt_ref[...]
    o_ref[...] = jnp.dot(xn.astype(jnp.bfloat16), w_ref[...],
                         preferred_element_type=jnp.float32).astype(o_ref.dtype)


def _ln_gate_matmul_kernel(y_ref, z_ref, g_ref, bt_ref, w_ref, o_ref, *, eps):
    y = y_ref[...]
    mu = jnp.mean(y, axis=-1, keepdims=True)
    d = y - mu
    var = jnp.mean(d * d, axis=-1, keepdims=True)
    yn = d * lax.rsqrt(var + eps) * g_ref[...] + bt_ref[...]
    z = z_ref[...]
    gate = z * (1.0 / (1.0 + jnp.exp(-z)))          # SiLU(z) on EUP
    a = (yn * gate).astype(jnp.bfloat16)
    o_ref[...] = jnp.dot(a, w_ref[...],
                         preferred_element_type=jnp.float32).astype(o_ref.dtype)


def _ln_head_call(kernel, tensors, gamma, beta, w, eps):
    M, D = tensors[0].shape
    D2, N = w.shape
    assert D == D2
    tm = _pick_tm(M)
    Mp = _round_up(M, tm)
    Np = _round_up(N, 128)
    tn = _pick_tn(Np)
    padded = []
    for t in tensors:
        t = t.astype(jnp.float32)
        if Mp != M:
            t = jnp.pad(t, ((0, Mp - M), (0, 0)))
        padded.append(t)
    wb = w.astype(jnp.bfloat16)
    if Np != N:
        wb = jnp.pad(wb, ((0, 0), (0, Np - N)))
    n_t = len(padded)
    in_specs = [pl.BlockSpec((tm, D), lambda i, j: (i, 0)) for _ in range(n_t)]
    in_specs += [pl.BlockSpec((1, D), lambda i, j: (0, 0)),
                 pl.BlockSpec((1, D), lambda i, j: (0, 0)),
                 pl.BlockSpec((D, tn), lambda i, j: (0, j))]
    out = pl.pallas_call(
        partial(kernel, eps=eps),
        out_shape=jax.ShapeDtypeStruct((Mp, Np), jnp.float32),
        grid=(Mp // tm, Np // tn),
        in_specs=in_specs,
        out_specs=pl.BlockSpec((tm, tn), lambda i, j: (i, j)),
        compiler_params=_mosaic(("parallel", "parallel")),
    )(*padded, gamma.reshape(1, D).astype(jnp.float32),
      beta.reshape(1, D).astype(jnp.float32), wb)
    return out[:M, :N]


def pallas_ln_matmul(x, gamma, beta, w, eps):
    return _ln_head_call(_ln_matmul_kernel, [x], gamma, beta, w, eps)


def pallas_ln_gate_matmul(y, z, gamma, beta, w, eps):
    return _ln_head_call(_ln_gate_matmul_kernel, [y, z], gamma, beta, w, eps)


# ----------------------------------------------------------------------------
# Conv kernels: TH output rows / grid step, single resident padded image per batch
# ----------------------------------------------------------------------------
def _pick_th(H, W):
    th = max(1, min(16, -(-256 // max(W, 1))))      # enough rows so M = TH*W >= ~256
    return min(th, H)


def _conv3x3_kernel(img_ref, w_ref, b_ref, o_ref, *, slope, th, w_out):
    row0 = pl.program_id(1) * th
    cin = img_ref.shape[-1]
    cout = o_ref.shape[-1]
    acc = jnp.zeros((th * w_out, cout), jnp.float32)
    for dy in range(3):
        rows = img_ref[pl.ds(row0 + dy, th), :, :]            # (th, W+2, cin) bf16
        for dx in range(3):
            tap = rows[:, dx:dx + w_out, :].reshape(th * w_out, cin)
            acc = acc + jnp.dot(tap, w_ref[dy * 3 + dx],
                                preferred_element_type=jnp.float32)
    acc = acc + b_ref[...]
    if slope is not None:
        acc = jnp.where(acc >= 0.0, acc, slope * acc)         # LeakyReLU
    o_ref[...] = acc.reshape(th, w_out, cout)


def pallas_conv3x3(x, w, bias, bn=None, leaky_slope=None):
    """x (B,H,W,Cin), w (Cout,Cin,3,3) [PyTorch layout], bias (Cout,).  Eval-BN folded."""
    B, H, W, Cin = x.shape
    Cout = w.shape[0]
    Cin_p = _round_up(Cin, 8)
    Cout_p = _round_up(Cout, 128)                              # lane-dense stores
    if Cin_p != Cin:
        w = jnp.pad(w, ((0, 0), (0, Cin_p - Cin), (0, 0), (0, 0)))
    w9 = jnp.transpose(w, (2, 3, 1, 0)).reshape(9, Cin_p, Cout).astype(jnp.float32)
    bvec = bias.astype(jnp.float32)
    if bn is not None:
        g, beta, mean, var = bn
        s = g / jnp.sqrt(var + 1e-5)
        w9 = w9 * s[None, None, :]
        bvec = bvec * s + (beta - mean * s)
    if Cout_p != Cout:
        w9 = jnp.pad(w9, ((0, 0), (0, 0), (0, Cout_p - Cout)))
        bvec = jnp.pad(bvec, (0, Cout_p - Cout))

    TH = _pick_th(H, W)
    Hp = _round_up(H, TH)
    xp = jnp.pad(x.astype(jnp.bfloat16),
                 ((0, 0), (1, 1 + (Hp - H)), (1, 1), (0, Cin_p - Cin)))
    Wp = W + 2
    out = pl.pallas_call(
        partial(_conv3x3_kernel, slope=leaky_slope, th=TH, w_out=W),
        out_shape=jax.ShapeDtypeStruct((B, Hp, W, Cout_p), jnp.float32),
        grid=(B, Hp // TH),
        in_specs=[
            pl.BlockSpec((None, Hp + 2, Wp, Cin_p), lambda b, h: (b, 0, 0, 0)),
            pl.BlockSpec((9, Cin_p, Cout_p), lambda b, h: (0, 0, 0)),
            pl.BlockSpec((1, Cout_p), lambda b, h: (0, 0)),
        ],
        out_specs=pl.BlockSpec((None, TH, W, Cout_p), lambda b, h: (b, h, 0, 0)),
        compiler_params=_mosaic(("parallel", "arbitrary")),
    )(xp, w9.astype(jnp.bfloat16), bvec.reshape(1, Cout_p))
    return out[:, :H, :, :Cout]


def _dwconv_silu_bn_kernel(img_ref, w_ref, b_ref, sc_ref, sh_ref, o_ref, *, th, w_out):
    row0 = pl.program_id(1) * th
    acc = jnp.zeros(o_ref.shape, jnp.float32)                 # (th, W, C)
    for dy in range(3):
        rows = img_ref[pl.ds(row0 + dy, th), :, :]            # (th, W+2, C) f32
        for dx in range(3):
            acc = acc + rows[:, dx:dx + w_out, :] * w_ref[dy * 3 + dx]
    acc = acc + b_ref[...]
    acc = acc * (1.0 / (1.0 + jnp.exp(-acc)))                 # SiLU
    o_ref[...] = acc * sc_ref[...] + sh_ref[...]              # folded eval BatchNorm


def pallas_dwconv_silu_bn(x, w9, bias, scale, shift):
    """x (B,H,W,C) f32; w9 (9,C); bias/scale/shift (C,)."""
    B, H, W, C = x.shape
    TH = _pick_th(H, W)
    Hp = _round_up(H, TH)
    xp = jnp.pad(x.astype(jnp.float32), ((0, 0), (1, 1 + (Hp - H)), (1, 1), (0, 0)))
    Wp = W + 2
    vec = lambda v: v.reshape(1, C).astype(jnp.float32)
    out = pl.pallas_call(
        partial(_dwconv_silu_bn_kernel, th=TH, w_out=W),
        out_shape=jax.ShapeDtypeStruct((B, Hp, W, C), jnp.float32),
        grid=(B, Hp // TH),
        in_specs=[
            pl.BlockSpec((None, Hp + 2, Wp, C), lambda b, h: (b, 0, 0, 0)),
            pl.BlockSpec((9, C), lambda b, h: (0, 0)),
            pl.BlockSpec((1, C), lambda b, h: (0, 0)),
            pl.BlockSpec((1, C), lambda b, h: (0, 0)),
            pl.BlockSpec((1, C), lambda b, h: (0, 0)),
        ],
        out_specs=pl.BlockSpec((None, TH, W, C), lambda b, h: (b, h, 0, 0)),
        compiler_params=_mosaic(("parallel", "arbitrary")),
    )(xp, w9.astype(jnp.float32), vec(bias), vec(scale), vec(shift))
    return out[:, :H]


# ----------------------------------------------------------------------------
# Selective scan (SS2D recurrence), L-chunked, h in registers, no per-step XLU reduces
# ----------------------------------------------------------------------------
def _selective_scan_kernel(xs_ref, dts_ref, Bs_ref, Cs_ref, A_ref, Ds_ref, db_ref,
                           out_ref, h_ref, dt_ref, dx_ref):
    Lc, _ = out_ref.shape
    A = A_ref[...]                                  # (N, D)

    # Vectorized per-chunk pre-pass (off the sequential critical path).
    dtr = dts_ref[...] + db_ref[...]
    dt = jnp.where(dtr > 20.0, dtr,
                   jnp.log(1.0 + jnp.exp(jnp.minimum(dtr, 20.0))))   # softplus
    dt_ref[...] = dt
    dx_ref[...] = dt * xs_ref[...]

    @pl.when(pl.program_id(2) == 0)
    def _init():
        h_ref[...] = jnp.zeros_like(h_ref)

    n_groups = Lc // 8

    def group(g, h):
        base = pl.multiple_of(g * 8, 8)
        B8t = Bs_ref[pl.ds(base, 8), :].T            # (N, 8) — one tiny transpose / 8 steps
        C8t = Cs_ref[pl.ds(base, 8), :].T
        for s in range(8):                           # unrolled: static lane slices below
            dt_t = dt_ref[pl.ds(base + s, 1), :]     # (1, D)
            dx_t = dx_ref[pl.ds(base + s, 1), :]     # (1, D)
            b_col = B8t[:, s:s + 1]                  # (N, 1)
            c_col = C8t[:, s:s + 1]                  # (N, 1)
            h = jnp.exp(dt_t * A) * h + b_col * dx_t             # (N, D)
            out_ref[pl.ds(base + s, 1), :] = jnp.sum(h * c_col, axis=0, keepdims=True)
        return h

    h_final = lax.fori_loop(0, n_groups, group, h_ref[...])
    h_ref[...] = h_final

    # skip term D*u added vectorized (off the serial path)
    out_ref[...] = out_ref[...] + Ds_ref[...] * xs_ref[...]


def pallas_selective_scan(xs, dts, A_t, Bs, Cs, Ds, delta_bias):
    """
    xs, dts : (B, K, Lp, D)   Bs, Cs : (B, K, Lp, N)
    A_t     : (K, N, D)       Ds, delta_bias : (K, 1, D)
    returns : (B, K, Lp, D) float32 (scan math kept in f32 — no bf16 VPU on v5e).
    """
    B, K, Lp, D = xs.shape
    N = Bs.shape[-1]
    Lc = Lp if Lp <= 512 else 512
    assert Lp % Lc == 0 and Lc % 8 == 0
    return pl.pallas_call(
        _selective_scan_kernel,
        out_shape=jax.ShapeDtypeStruct((B, K, Lp, D), jnp.float32),
        grid=(B, K, Lp // Lc),
        in_specs=[
            pl.BlockSpec((None, None, Lc, D), lambda b, k, c: (b, k, c, 0)),
            pl.BlockSpec((None, None, Lc, D), lambda b, k, c: (b, k, c, 0)),
            pl.BlockSpec((None, None, Lc, N), lambda b, k, c: (b, k, c, 0)),
            pl.BlockSpec((None, None, Lc, N), lambda b, k, c: (b, k, c, 0)),
            pl.BlockSpec((None, N, D), lambda b, k, c: (k, 0, 0)),
            pl.BlockSpec((None, 1, D), lambda b, k, c: (k, 0, 0)),
            pl.BlockSpec((None, 1, D), lambda b, k, c: (k, 0, 0)),
        ],
        out_specs=pl.BlockSpec((None, None, Lc, D), lambda b, k, c: (b, k, c, 0)),
        scratch_shapes=[
            pltpu.VMEM((N, D), jnp.float32),      # h state (persists across L chunks)
            pltpu.VMEM((Lc, D), jnp.float32),     # softplus(dt + bias)
            pltpu.VMEM((Lc, D), jnp.float32),     # dt * x
        ],
        compiler_params=_mosaic(("parallel", "parallel", "arbitrary")),
    )(xs.astype(jnp.float32), dts.astype(jnp.float32), Bs.astype(jnp.float32),
      Cs.astype(jnp.float32), A_t.astype(jnp.float32), Ds.astype(jnp.float32),
      delta_bias.astype(jnp.float32))


# ----------------------------------------------------------------------------
# SS2D forward (channels-last throughout; ln_1 fused into in_proj)
# ----------------------------------------------------------------------------
def ss2d_forward(p, x, ln_g, ln_b):
    B, H, W, d_model = x.shape
    d_inner = p['in_proj_w'].shape[0] // 2
    d_state = p['A_logs'].shape[-1]
    dt_rank = p['dt_projs_w'].shape[-1]
    L = H * W
    Lp = _round_up(L, 8) if L <= 512 else _round_up(L, 512)
    K = 4

    # LayerNorm(eps=1e-6) fused into in_proj (no bias)
    xz = pallas_ln_matmul(x.reshape(B * H * W, d_model), ln_g, ln_b,
                          p['in_proj_w'].T, eps=1e-6)
    xz = xz.reshape(B, H, W, 2 * d_inner)
    xh, z = xz[..., :d_inner], xz[..., d_inner:]

    # depthwise 3x3 conv + SiLU + eval BatchNorm, fused, channels-last
    eps = 1e-5
    scale = p['bn_g'] / jnp.sqrt(p['bn_v'] + eps)
    shift = p['bn_b'] - p['bn_m'] * scale
    w9 = jnp.transpose(p['conv_w'], (1, 2, 0)).reshape(9, d_inner)
    xc = pallas_dwconv_silu_bn(xh, w9, p['conv_b'], scale, shift)     # (B, H, W, d_inner)

    # four scan directions (D stays on lanes); pad L at the end (safe: zeros keep h = 0)
    d0 = xc.reshape(B, L, d_inner)
    d1 = jnp.transpose(xc, (0, 2, 1, 3)).reshape(B, L, d_inner)
    x_hwwh = jnp.stack([d0, d1], axis=1)                              # (B, 2, L, D)
    xs = jnp.concatenate([x_hwwh, jnp.flip(x_hwwh, axis=2)], axis=1)  # (B, 4, L, D)
    if Lp != L:
        xs = jnp.pad(xs, ((0, 0), (0, 0), (0, Lp - L), (0, 0)))

    # x_proj for all 4 directions in one grouped pallas_call
    c_total = dt_rank + 2 * d_state
    xw_t = jnp.transpose(p['x_proj_w'], (0, 2, 1))                    # (4, D, c_total)
    x_dbl = pallas_bmm(xs.reshape(B * K, Lp, d_inner), xw_t).reshape(B, K, Lp, c_total)
    dts_r = x_dbl[..., :dt_rank]
    Bs = x_dbl[..., dt_rank:dt_rank + d_state]
    Cs = x_dbl[..., dt_rank + d_state:]

    # dt_proj for all 4 directions in one grouped pallas_call
    dtw_t = jnp.transpose(p['dt_projs_w'], (0, 2, 1))                 # (4, r, D)
    dts = pallas_bmm(dts_r.reshape(B * K, Lp, dt_rank), dtw_t).reshape(B, K, Lp, d_inner)

    A_t = jnp.transpose(-jnp.exp(p['A_logs']).reshape(K, d_inner, d_state), (0, 2, 1))
    Ds = p['Ds'].reshape(K, 1, d_inner)
    db = p['dt_projs_b'].reshape(K, 1, d_inner)

    out_y = pallas_selective_scan(xs, dts, A_t, Bs, Cs, Ds, db)       # (B, 4, Lp, D)

    # merge the four directional scans
    y1 = out_y[:, 0, :L]
    y2 = jnp.flip(out_y[:, 2, :L], axis=1)
    wh = out_y[:, 1, :L]
    invwh = jnp.flip(out_y[:, 3, :L], axis=1)
    wh_y = jnp.transpose(wh.reshape(B, W, H, d_inner), (0, 2, 1, 3)).reshape(B, L, d_inner)
    invwh_y = jnp.transpose(invwh.reshape(B, W, H, d_inner), (0, 2, 1, 3)).reshape(B, L, d_inner)
    y = y1 + y2 + wh_y + invwh_y                                      # (B, L, d_inner)

    # LayerNorm(eps=1e-5) + SiLU(z) gate fused into out_proj (no bias)
    out = pallas_ln_gate_matmul(y.reshape(B * L, d_inner), z.reshape(B * L, d_inner),
                                p['out_norm_g'], p['out_norm_b'],
                                p['out_proj_w'].T, eps=1e-5)
    return out.reshape(B, H, W, d_model)


# ----------------------------------------------------------------------------
# ConvSSM / VSSLayer forward
# ----------------------------------------------------------------------------
def convssm_forward(p, x):
    B, H, W, dim = x.shape
    c2 = dim // 2
    left, right = x[..., :c2], x[..., c2:]

    # right branch: residual SS2D (drop_path = 0 -> identity); ln_1 fused into SS2D in_proj
    xr = right + ss2d_forward(p['ss2d'], right, p['ln1_g'], p['ln1_b'])

    # left branch: (conv3x3 + BN + LeakyReLU) x2 fused, then conv1x1 (+bias)
    l = pallas_conv3x3(left, p['c1_w'], p['c1_b'],
                       bn=(p['bn1_g'], p['bn1_b'], p['bn1_m'], p['bn1_v']),
                       leaky_slope=0.01)
    l = pallas_conv3x3(l, p['c2_w'], p['c2_b'],
                       bn=(p['bn2_g'], p['bn2_b'], p['bn2_m'], p['bn2_v']),
                       leaky_slope=0.01)
    l = pallas_matmul(l.reshape(B * H * W, c2), p['c3_w'].T, bias=p['c3_b'])
    l = l.reshape(B, H, W, c2)

    # TODO(synk): SDFF source not provided; channel-concat fusion stand-in preserves shapes.
    fused = jnp.concatenate([l, xr], axis=-1)
    return fused + x


def vsslayer_forward(params, x):
    for blk in params['blocks']:
        x = convssm_forward(blk, x)
    return x                                                           # downsample=None


# ----------------------------------------------------------------------------
# Deterministic parameter initialization
# ----------------------------------------------------------------------------
def init_ss2d_params(key, d_model, d_state, d_conv=3, expand=2,
                     dt_min=0.001, dt_max=0.1, dt_init_floor=1e-4):
    d_inner = expand * d_model
    dt_rank = math.ceil(d_model / 16)
    ks = jax.random.split(key, 8)

    def u(k, shape, s):
        return jax.random.uniform(k, shape, jnp.float32, -s, s)

    p = {}
    p['in_proj_w'] = u(ks[0], (2 * d_inner, d_model), 1.0 / math.sqrt(d_model))
    p['conv_w'] = u(ks[1], (d_inner, d_conv, d_conv), 1.0 / d_conv)   # depthwise
    p['conv_b'] = u(ks[2], (d_inner,), 1.0 / d_conv)
    p['bn_g'] = jnp.ones((d_inner,), jnp.float32)
    p['bn_b'] = jnp.zeros((d_inner,), jnp.float32)
    p['bn_m'] = jnp.zeros((d_inner,), jnp.float32)
    p['bn_v'] = jnp.ones((d_inner,), jnp.float32)
    p['x_proj_w'] = u(ks[3], (4, dt_rank + 2 * d_state, d_inner), 1.0 / math.sqrt(d_inner))
    p['dt_projs_w'] = u(ks[4], (4, d_inner, dt_rank), dt_rank ** -0.5)
    dt = jnp.exp(jax.random.uniform(ks[5], (4, d_inner)) *
                 (math.log(dt_max) - math.log(dt_min)) + math.log(dt_min))
    dt = jnp.maximum(dt, dt_init_floor)
    p['dt_projs_b'] = dt + jnp.log(-jnp.expm1(-dt))
    A = jnp.tile(jnp.arange(1, d_state + 1, dtype=jnp.float32)[None, :], (4 * d_inner, 1))
    p['A_logs'] = jnp.log(A)
    p['Ds'] = jnp.ones((4 * d_inner,), jnp.float32)
    p['out_norm_g'] = jnp.ones((d_inner,), jnp.float32)
    p['out_norm_b'] = jnp.zeros((d_inner,), jnp.float32)
    p['out_proj_w'] = u(ks[6], (d_model, d_inner), 1.0 / math.sqrt(d_inner))
    return p


def init_convssm_params(key, dim, d_state):
    c2 = dim // 2
    ks = jax.random.split(key, 8)

    def u(k, shape, s):
        return jax.random.uniform(k, shape, jnp.float32, -s, s)

    s3 = 1.0 / math.sqrt(c2 * 9)
    s1 = 1.0 / math.sqrt(c2)
    return {
        'ln1_g': jnp.ones((c2,), jnp.float32), 'ln1_b': jnp.zeros((c2,), jnp.float32),
        'ss2d': init_ss2d_params(ks[0], d_model=c2, d_state=d_state),
        'c1_w': u(ks[1], (c2, c2, 3, 3), s3), 'c1_b': u(ks[2], (c2,), s3),
        'bn1_g': jnp.ones((c2,), jnp.float32), 'bn1_b': jnp.zeros((c2,), jnp.float32),
        'bn1_m': jnp.zeros((c2,), jnp.float32), 'bn1_v': jnp.ones((c2,), jnp.float32),
        'c2_w': u(ks[3], (c2, c2, 3, 3), s3), 'c2_b': u(ks[4], (c2,), s3),
        'bn2_g': jnp.ones((c2,), jnp.float32), 'bn2_b': jnp.zeros((c2,), jnp.float32),
        'bn2_m': jnp.zeros((c2,), jnp.float32), 'bn2_v': jnp.ones((c2,), jnp.float32),
        'c3_w': u(ks[5], (c2, c2), s1), 'c3_b': u(ks[6], (c2,), s1),
    }


def init_vsslayer_params(key, dim, depth, d_state):
    keys = jax.random.split(key, depth)
    return {'blocks': [init_convssm_params(keys[i], dim, d_state) for i in range(depth)]}


# ----------------------------------------------------------------------------
if __name__ == "__main__":
    B, H, W, dim = 2, 8, 8, 8          # dim -> d_model = 4, d_inner = 8, L = 64
    depth = 2
    d_state = 8

    key = jax.random.PRNGKey(0)
    kp, kx = jax.random.split(key)
    params = init_vsslayer_params(kp, dim=dim, depth=depth, d_state=d_state)
    x = jax.random.normal(kx, (B, H, W, dim), jnp.float32)

    fwd = jax.jit(vsslayer_forward)
    out = jax.block_until_ready(fwd(params, x))

    assert out.shape == (B, H, W, dim), out.shape
    assert bool(jnp.all(jnp.isfinite(out))), "non-finite output"
    print("KERNEL_OK")
</pallas_src>

<mosaic_0001>
module attributes {stable_mosaic.version = 11 : i64} {
  func.func @_ln_matmul_kernel(%arg0: i32, %arg1: i32, %arg2: memref<128x4xf32, #tpu.memory_space<vmem>>, %arg3: memref<1x4xf32, #tpu.memory_space<vmem>>, %arg4: memref<1x4xf32, #tpu.memory_space<vmem>>, %arg5: memref<4x128xbf16, #tpu.memory_space<vmem>>, %arg6: memref<128x128xf32, #tpu.memory_space<vmem>>) attributes {dimension_semantics = [#tpu.dimension_semantics<parallel>, #tpu.dimension_semantics<parallel>], iteration_bounds = array<i64: 1, 1>, scalar_prefetch = 0 : i64, scratch_operands = 0 : i64, tpu.core_type = #tpu.core_type<tc>, window_params = [{transform_indices = @transform_0, window_bounds = array<i64: 128, 4>}, {pipeline_mode = #tpu.pipeline_mode<synchronous>, transform_indices = @transform_1, window_bounds = array<i64: 1, 4>}, {pipeline_mode = #tpu.pipeline_mode<synchronous>, transform_indices = @transform_2, window_bounds = array<i64: 1, 4>}, {transform_indices = @transform_3, window_bounds = array<i64: 4, 128>}, {transform_indices = @transform_4, window_bounds = array<i64: 128, 128>}]} {
    %c0 = arith.constant 0 : index
    %c0_0 = arith.constant 0 : index
    %0 = vector.load %arg2[%c0, %c0_0] : memref<128x4xf32, #tpu.memory_space<vmem>>, vector<128x4xf32>
    %cst = arith.constant dense<0.000000e+00> : vector<128xf32>
    %1 = vector.multi_reduction <add>, %0, %cst [1] : vector<128x4xf32> to vector<128xf32>
    %2 = vector.shape_cast %1 : vector<128xf32> to vector<128x1xf32>
    %cst_1 = arith.constant 4.000000e+00 : f32
    %3 = vector.broadcast %cst_1 : f32 to vector<128x1xf32>
    %4 = arith.divf %2, %3 : vector<128x1xf32>
    %5 = vector.broadcast %4 : vector<128x1xf32> to vector<128x4xf32>
    %6 = arith.subf %0, %5 : vector<128x4xf32>
    %7 = arith.mulf %6, %6 : vector<128x4xf32>
    %cst_2 = arith.constant dense<0.000000e+00> : vector<128xf32>
    %8 = vector.multi_reduction <add>, %7, %cst_2 [1] : vector<128x4xf32> to vector<128xf32>
    %9 = vector.shape_cast %8 : vector<128xf32> to vector<128x1xf32>
    %cst_3 = arith.constant 4.000000e+00 : f32
    %10 = vector.broadcast %cst_3 : f32 to vector<128x1xf32>
    %11 = arith.divf %9, %10 : vector<128x1xf32>
    %cst_4 = arith.constant 9.99999997E-7 : f32
    %12 = vector.broadcast %cst_4 : f32 to vector<128x1xf32>
    %13 = arith.addf %11, %12 : vector<128x1xf32>
    %14 = math.rsqrt %13 : vector<128x1xf32>
    %15 = vector.broadcast %14 : vector<128x1xf32> to vector<128x4xf32>
    %16 = arith.mulf %6, %15 : vector<128x4xf32>
    %c0_5 = arith.constant 0 : index
    %c0_6 = arith.constant 0 : index
    %17 = vector.load %arg3[%c0_5, %c0_6] : memref<1x4xf32, #tpu.memory_space<vmem>>, vector<1x4xf32>
    %18 = vector.broadcast %17 : vector<1x4xf32> to vector<128x4xf32>
    %19 = arith.mulf %16, %18 : vector<128x4xf32>
    %c0_7 = arith.constant 0 : index
    %c0_8 = arith.constant 0 : index
    %20 = vector.load %arg4[%c0_7, %c0_8] : memref<1x4xf32, #tpu.memory_space<vmem>>, vector<1x4xf32>
    %21 = vector.broadcast %20 : vector<1x4xf32> to vector<128x4xf32>
    %22 = arith.addf %19, %21 : vector<128x4xf32>
    %23 = arith.truncf %22 : vector<128x4xf32> to vector<128x4xbf16>
    %c0_9 = arith.constant 0 : index
    %c0_10 = arith.constant 0 : index
    %24 = vector.load %arg5[%c0_9, %c0_10] : memref<4x128xbf16, #tpu.memory_space<vmem>>, vector<4x128xbf16>
    %cst_11 = arith.constant dense<0.000000e+00> : vector<128x128xf32>
    %25 = tpu.matmul %23, %24, %cst_11 {dimension_numbers = #tpu.dot_dimension_numbers<[1], [0], [0], [1], [0, 0, 1, 1], [], []>} : vector<128x4xbf16>, vector<4x128xbf16>, vector<128x128xf32> -> vector<128x128xf32>
    %c0_12 = arith.constant 0 : index
    %c0_13 = arith.constant 0 : index
    %26 = vector.load %arg6[%c0_12, %c0_13] : memref<128x128xf32, #tpu.memory_space<vmem>>, vector<128x128xf32>
    tpu.vector_store %arg6[%c0_12, %c0_13], %25 {strides = array<i32>} : memref<128x128xf32, #tpu.memory_space<vmem>>, vector<128x128xf32>,
    return
  }
  func.func @transform_0(%arg0: i32, %arg1: i32) -> (i32, i32) {
    %c0_i32 = arith.constant 0 : i32
    %c0_i32_0 = arith.constant 0 : i32
    return %arg0, %c0_i32 : i32, i32
  }
  func.func @transform_1(%arg0: i32, %arg1: i32) -> (i32, i32) {
    %c0_i32 = arith.constant 0 : i32
    %c0_i32_0 = arith.constant 0 : i32
    %c0_i32_1 = arith.constant 0 : i32
    return %c0_i32, %c0_i32_0 : i32, i32
  }
  func.func @transform_2(%arg0: i32, %arg1: i32) -> (i32, i32) {
    %c0_i32 = arith.constant 0 : i32
    %c0_i32_0 = arith.constant 0 : i32
    %c0_i32_1 = arith.constant 0 : i32
    return %c0_i32, %c0_i32_0 : i32, i32
  }
  func.func @transform_3(%arg0: i32, %arg1: i32) -> (i32, i32) {
    %c0_i32 = arith.constant 0 : i32
    %c0_i32_0 = arith.constant 0 : i32
    return %c0_i32, %arg1 : i32, i32
  }
  func.func @transform_4(%arg0: i32, %arg1: i32) -> (i32, i32) {
    %c0_i32 = arith.constant 0 : i32
    return %arg0, %arg1 : i32, i32
  }
}

module attributes {stable_mosaic.version = 11 : i64} {
  func.func @_dwconv_silu_bn_kernel(%arg0: i32, %arg1: i32, %arg2: memref<1x10x10x8xf32, #tpu.memory_space<vmem>>, %arg3: memref<9x8xf32, #tpu.memory_space<vmem>>, %arg4: memref<1x8xf32, #tpu.memory_space<vmem>>, %arg5: memref<1x8xf32, #tpu.memory_space<vmem>>, %arg6: memref<1x8xf32, #tpu.memory_space<vmem>>, %arg7: memref<1x8x8x8xf32, #tpu.memory_space<vmem>>) attributes {dimension_semantics = [#tpu.dimension_semantics<parallel>, #tpu.dimension_semantics<arbitrary>], iteration_bounds = array<i64: 2, 1>, scalar_prefetch = 0 : i64, scratch_operands = 0 : i64, tpu.core_type = #tpu.core_type<tc>, window_params = [{transform_indices = @transform_0, window_bounds = array<i64: 1, 10, 10, 8>}, {pipeline_mode = #tpu.pipeline_mode<synchronous>, transform_indices = @transform_1, window_bounds = array<i64: 9, 8>}, {pipeline_mode = #tpu.pipeline_mode<synchronous>, transform_indices = @transform_2, window_bounds = array<i64: 1, 8>}, {pipeline_mode = #tpu.pipeline_mode<synchronous>, transform_indices = @transform_3, window_bounds = array<i64: 1, 8>}, {pipeline_mode = #tpu.pipeline_mode<synchronous>, transform_indices = @transform_4, window_bounds = array<i64: 1, 8>}, {transform_indices = @transform_5, window_bounds = array<i64: 1, 8, 8, 8>}]} {
    %c8_i32 = arith.constant 8 : i32
    %0 = arith.muli %arg1, %c8_i32 : i32
    %cst = arith.constant 0.000000e+00 : f32
    %1 = vector.broadcast %cst : f32 to vector<8x8x8xf32>
    %c0_i32 = arith.constant 0 : i32
    %2 = arith.addi %0, %c0_i32 : i32
    %c0 = arith.constant 0 : index
    %3 = arith.index_cast %2 : i32 to index
    %c0_0 = arith.constant 0 : index
    %c0_1 = arith.constant 0 : index
    %4 = vector.load %arg2[%c0, %3, %c0_0, %c0_1] : memref<1x10x10x8xf32, #tpu.memory_space<vmem>>, vector<1x8x10x8xf32>
    %5 = vector.shape_cast %4 : vector<1x8x10x8xf32> to vector<8x10x8xf32>
    %6 = vector.extract_strided_slice %5 {offsets = [0, 0, 0], sizes = [8, 8, 8], strides = [1, 1, 1]} : vector<8x10x8xf32> to vector<8x8x8xf32>
    %c0_2 = arith.constant 0 : index
    %c0_3 = arith.constant 0 : index
    %7 = vector.load %arg3[%c0_2, %c0_3] : memref<9x8xf32, #tpu.memory_space<vmem>>, vector<1x8xf32>
    %8 = vector.shape_cast %7 : vector<1x8xf32> to vector<8xf32>
    %9 = vector.shape_cast %8 : vector<8xf32> to vector<1x1x8xf32>
    %10 = vector.broadcast %9 : vector<1x1x8xf32> to vector<8x8x8xf32>
    %11 = arith.mulf %6, %10 : vector<8x8x8xf32>
    %12 = arith.addf %1, %11 : vector<8x8x8xf32>
    %13 = vector.extract_strided_slice %5 {offsets = [0, 1, 0], sizes = [8, 8, 8], strides = [1, 1, 1]} : vector<8x10x8xf32> to vector<8x8x8xf32>
    %c1 = arith.constant 1 : index
    %c0_4 = arith.constant 0 : index
    %14 = vector.load %arg3[%c1, %c0_4] : memref<9x8xf32, #tpu.memory_space<vmem>>, vector<1x8xf32>
    %15 = vector.shape_cast %14 : vector<1x8xf32> to vector<8xf32>
    %16 = vector.shape_cast %15 : vector<8xf32> to vector<1x1x8xf32>
    %17 = vector.broadcast %16 : vector<1x1x8xf32> to vector<8x8x8xf32>
    %18 = arith.mulf %13, %17 : vector<8x8x8xf32>
    %19 = arith.addf %12, %18 : vector<8x8x8xf32>
    %20 = vector.extract_strided_slice %5 {offsets = [0, 2, 0], sizes = [8, 8, 8], strides = [1, 1, 1]} : vector<8x10x8xf32> to vector<8x8x8xf32>
    %c2 = arith.constant 2 : index
    %c0_5 = arith.constant 0 : index
    %21 = vector.load %arg3[%c2, %c0_5] : memref<9x8xf32, #tpu.memory_space<vmem>>, vector<1x8xf32>
    %22 = vector.shape_cast %21 : vector<1x8xf32> to vector<8xf32>
    %23 = vector.shape_cast %22 : vector<8xf32> to vector<1x1x8xf32>
    %24 = vector.broadcast %23 : vector<1x1x8xf32> to vector<8x8x8xf32>
    %25 = arith.mulf %20, %24 : vector<8x8x8xf32>
    %26 = arith.addf %19, %25 : vector<8x8x8xf32>
    %c1_i32 = arith.constant 1 : i32
    %27 = arith.addi %0, %c1_i32 : i32
    %c0_6 = arith.constant 0 : index
    %28 = arith.index_cast %27 : i32 to index
    %c0_7 = arith.constant 0 : index
    %c0_8 = arith.constant 0 : index
    %29 = vector.load %arg2[%c0_6, %28, %c0_7, %c0_8] : memref<1x10x10x8xf32, #tpu.memory_space<vmem>>, vector<1x8x10x8xf32>
    %30 = vector.shape_cast %29 : vector<1x8x10x8xf32> to vector<8x10x8xf32>
    %31 = vector.extract_strided_slice %30 {offsets = [0, 0, 0], sizes = [8, 8, 8], strides = [1, 1, 1]} : vector<8x10x8xf32> to vector<8x8x8xf32>
    %c3 = arith.constant 3 : index
    %c0_9 = arith.constant 0 : index
    %32 = vector.load %arg3[%c3, %c0_9] : memref<9x8xf32, #tpu.memory_space<vmem>>, vector<1x8xf32>
    %33 = vector.shape_cast %32 : vector<1x8xf32> to vector<8xf32>
    %34 = vector.shape_cast %33 : vector<8xf32> to vector<1x1x8xf32>
    %35 = vector.broadcast %34 : vector<1x1x8xf32> to vector<8x8x8xf32>
    %36 = arith.mulf %31, %35 : vector<8x8x8xf32>
    %37 = arith.addf %26, %36 : vector<8x8x8xf32>
    %38 = vector.extract_strided_slice %30 {offsets = [0, 1, 0], sizes = [8, 8, 8], strides = [1, 1, 1]} : vector<8x10x8xf32> to vector<8x8x8xf32>
    %c4 = arith.constant 4 : index
    %c0_10 = arith.constant 0 : index
    %39 = vector.load %arg3[%c4, %c0_10] : memref<9x8xf32, #tpu.memory_space<vmem>>, vector<1x8xf32>
    %40 = vector.shape_cast %39 : vector<1x8xf32> to vector<8xf32>
    %41 = vector.shape_cast %40 : vector<8xf32> to vector<1x1x8xf32>
    %42 = vector.broadcast %41 : vector<1x1x8xf32> to vector<8x8x8xf32>
    %43 = arith.mulf %38, %42 : vector<8x8x8xf32>
    %44 = arith.addf %37, %43 : vector<8x8x8xf32>
    %45 = vector.extract_strided_slice %30 {offsets = [0, 2, 0], sizes = [8, 8, 8], strides = [1, 1, 1]} : vector<8x10x8xf32> to vector<8x8x8xf32>
    %c5 = arith.constant 5 : index
    %c0_11 = arith.constant 0 : index
    %46 = vector.load %arg3[%c5, %c0_11] : memref<9x8xf32, #tpu.memory_space<vmem>>, vector<1x8xf32>
    %47 = vector.shape_cast %46 : vector<1x8xf32> to vector<8xf32>
    %48 = vector.shape_cast %47 : vector<8xf32> to vector<1x1x8xf32>
    %49 = vector.broadcast %48 : vector<1x1x8xf32> to vector<8x8x8xf32>
    %50 = arith.mulf %45, %49 : vector<8x8x8xf32>
    %51 = arith.addf %44, %50 : vector<8x8x8xf32>
    %c2_i32 = arith.constant 2 : i32
    %52 = arith.addi %0, %c2_i32 : i32
    %c0_12 = arith.constant 0 : index
    %53 = arith.index_cast %52 : i32 to index
    %c0_13 = arith.constant 0 : index
    %c0_14 = arith.constant 0 : index
    %54 = vector.load %arg2[%c0_12, %53, %c0_13, %c0_14] : memref<1x10x10x8xf32, #tpu.memory_space<vmem>>, vector<1x8x10x8xf32>
    %55 = vector.shape_cast %54 : vector<1x8x10x8xf32> to vector<8x10x8xf32>
    %56 = vector.extract_strided_slice %55 {offsets = [0, 0, 0], sizes = [8, 8, 8], strides = [1, 1, 1]} : vector<8x10x8xf32> to vector<8x8x8xf32>
    %c6 = arith.constant 6 : index
    %c0_15 = arith.constant 0 : index
    %57 = vector.load %arg3[%c6, %c0_15] : memref<9x8xf32, #tpu.memory_space<vmem>>, vector<1x8xf32>
    %58 = vector.shape_cast %57 : vector<1x8xf32> to vector<8xf32>
    %59 = vector.shape_cast %58 : vector<8xf32> to vector<1x1x8xf32>
    %60 = vector.broadcast %59 : vector<1x1x8xf32> to vector<8x8x8xf32>
    %61 = arith.mulf %56, %60 : vector<8x8x8xf32>
    %62 = arith.addf %51, %61 : vector<8x8x8xf32>
    %63 = vector.extract_strided_slice %55 {offsets = [0, 1, 0], sizes = [8, 8, 8], strides = [1, 1, 1]} : vector<8x10x8xf32> to vector<8x8x8xf32>
    %c7 = arith.constant 7 : index
    %c0_16 = arith.constant 0 : index
    %64 = vector.load %arg3[%c7, %c0_16] : memref<9x8xf32, #tpu.memory_space<vmem>>, vector<1x8xf32>
    %65 = vector.shape_cast %64 : vector<1x8xf32> to vector<8xf32>
    %66 = vector.shape_cast %65 : vector<8xf32> to vector<1x1x8xf32>
    %67 = vector.broadcast %66 : vector<1x1x8xf32> to vector<8x8x8xf32>
    %68 = arith.mulf %63, %67 : vector<8x8x8xf32>
    %69 = arith.addf %62, %68 : vector<8x8x8xf32>
    %70 = vector.extract_strided_slice %55 {offsets = [0, 2, 0], sizes = [8, 8, 8], strides = [1, 1, 1]} : vector<8x10x8xf32> to vector<8x8x8xf32>
    %c8 = arith.constant 8 : index
    %c0_17 = arith.constant 0 : index
    %71 = vector.load %arg3[%c8, %c0_17] : memref<9x8xf32, #tpu.memory_space<vmem>>, vector<1x8xf32>
    %72 = vector.shape_cast %71 : vector<1x8xf32> to vector<8xf32>
    %73 = vector.shape_cast %72 : vector<8xf32> to vector<1x1x8xf32>
    %74 = vector.broadcast %73 : vector<1x1x8xf32> to vector<8x8x8xf32>
    %75 = arith.mulf %70, %74 : vector<8x8x8xf32>
    %76 = arith.addf %69, %75 : vector<8x8x8xf32>
    %c0_18 = arith.constant 0 : index
    %c0_19 = arith.constant 0 : index
    %77 = vector.load %arg4[%c0_18, %c0_19] : memref<1x8xf32, #tpu.memory_space<vmem>>, vector<1x8xf32>
    %78 = vector.shape_cast %77 : vector<1x8xf32> to vector<1x1x8xf32>
    %79 = vector.broadcast %78 : vector<1x1x8xf32> to vector<8x8x8xf32>
    %80 = arith.addf %76, %79 : vector<8x8x8xf32>
    %cst_20 = arith.constant 0.000000e+00 : f32
    %81 = vector.broadcast %cst_20 : f32 to vector<8x8x8xf32>
    %82 = arith.subf %81, %80 : vector<8x8x8xf32>
    %83 = math.exp %82 : vector<8x8x8xf32>
    %cst_21 = arith.constant 1.000000e+00 : f32
    %84 = vector.broadcast %cst_21 : f32 to vector<8x8x8xf32>
    %85 = arith.addf %84, %83 : vector<8x8x8xf32>
    %cst_22 = arith.constant 1.000000e+00 : f32
    %86 = vector.broadcast %cst_22 : f32 to vector<8x8x8xf32>
    %87 = arith.divf %86, %85 : vector<8x8x8xf32>
    %88 = arith.mulf %80, %87 : vector<8x8x8xf32>
    %c0_23 = arith.constant 0 : index
    %c0_24 = arith.constant 0 : index
    %89 = vector.load %arg5[%c0_23, %c0_24] : memref<1x8xf32, #tpu.memory_space<vmem>>, vector<1x8xf32>
    %90 = vector.shape_cast %89 : vector<1x8xf32> to vector<1x1x8xf32>
    %91 = vector.broadcast %90 : vector<1x1x8xf32> to vector<8x8x8xf32>
    %92 = arith.mulf %88, %91 : vector<8x8x8xf32>
    %c0_25 = arith.constant 0 : index
    %c0_26 = arith.constant 0 : index
    %93 = vector.load %arg6[%c0_25, %c0_26] : memref<1x8xf32, #tpu.memory_space<vmem>>, vector<1x8xf32>
    %94 = vector.shape_cast %93 : vector<1x8xf32> to vector<1x1x8xf32>
    %95 = vector.broadcast %94 : vector<1x1x8xf32> to vector<8x8x8xf32>
    %96 = arith.addf %92, %95 : vector<8x8x8xf32>
    %c0_27 = arith.constant 0 : index
    %c0_28 = arith.constant 0 : index
    %c0_29 = arith.constant 0 : index
    %c0_30 = arith.constant 0 : index
    %97 = vector.load %arg7[%c0_27, %c0_28, %c0_29, %c0_30] : memref<1x8x8x8xf32, #tpu.memory_space<vmem>>, vector<1x8x8x8xf32>
    %98 = vector.shape_cast %97 : vector<1x8x8x8xf32> to vector<8x8x8xf32>
    %99 = vector.shape_cast %96 : vector<8x8x8xf32> to vector<1x8x8x8xf32>
    tpu.vector_store %arg7[%c0_27, %c0_28, %c0_29, %c0_30], %99 {strides = array<i32>} : memref<1x8x8x8xf32, #tpu.memory_space<vmem>>, vector<1x8x8x8xf32>,
    return
  }
  func.func @transform_0(%arg0: i32, %arg1: i32) -> (i32, i32, i32, i32) {
    %c0_i32 = arith.constant 0 : i32
    %c0_i32_0 = arith.constant 0 : i32
    %c0_i32_1 = arith.constant 0 : i32
    %c0_i32_2 = arith.constant 0 : i32
    return %arg0, %c0_i32, %c0_i32_0, %c0_i32_1 : i32, i32, i32, i32
  }
  func.func @transform_1(%arg0: i32, %arg1: i32) -> (i32, i32) {
    %c0_i32 = arith.constant 0 : i32
    %c0_i32_0 = arith.constant 0 : i32
    %c0_i32_1 = arith.constant 0 : i32
    return %c0_i32, %c0_i32_0 : i32, i32
  }
  func.func @transform_2(%arg0: i32, %arg1: i32) -> (i32, i32) {
    %c0_i32 = arith.constant 0 : i32
    %c0_i32_0 = arith.constant 0 : i32
    %c0_i32_1 = arith.constant 0 : i32
    return %c0_i32, %c0_i32_0 : i32, i32
  }
  func.func @transform_3(%arg0: i32, %arg1: i32) -> (i32, i32) {
    %c0_i32 = arith.constant 0 : i32
    %c0_i32_0 = arith.constant 0 : i32
    %c0_i32_1 = arith.constant 0 : i32
    return %c0_i32, %c0_i32_0 : i32, i32
  }
  func.func @transform_4(%arg0: i32, %arg1: i32) -> (i32, i32) {
    %c0_i32 = arith.constant 0 : i32
    %c0_i32_0 = arith.constant 0 : i32
    %c0_i32_1 = arith.constant 0 : i32
    return %c0_i32, %c0_i32_0 : i32, i32
  }
  func.func @transform_5(%arg0: i32, %arg1: i32) -> (i32, i32, i32, i32) {
    %c0_i32 = arith.constant 0 : i32
    %c0_i32_0 = arith.constant 0 : i32
    %c0_i32_1 = arith.constant 0 : i32
    return %arg0, %arg1, %c0_i32, %c0_i32_0 : i32, i32, i32, i32
  }
}

module attributes {stable_mosaic.version = 11 : i64} {
  func.func @_mm_k1_kernel(%arg0: i32, %arg1: i32, %arg2: i32, %arg3: memref<1x64x8xbf16, #tpu.memory_space<vmem>>, %arg4: memref<1x8x128xbf16, #tpu.memory_space<vmem>>, %arg5: memref<1x64x128xf32, #tpu.memory_space<vmem>>) attributes {dimension_semantics = [#tpu.dimension_semantics<parallel>, #tpu.dimension_semantics<parallel>, #tpu.dimension_semantics<parallel>], iteration_bounds = array<i64: 8, 1, 1>, scalar_prefetch = 0 : i64, scratch_operands = 0 : i64, tpu.core_type = #tpu.core_type<tc>, window_params = [{transform_indices = @transform_0, window_bounds = array<i64: 1, 64, 8>}, {transform_indices = @transform_1, window_bounds = array<i64: 1, 8, 128>}, {transform_indices = @transform_2, window_bounds = array<i64: 1, 64, 128>}]} {
    %c0 = arith.constant 0 : index
    %c0_0 = arith.constant 0 : index
    %c0_1 = arith.constant 0 : index
    %0 = vector.load %arg3[%c0, %c0_0, %c0_1] : memref<1x64x8xbf16, #tpu.memory_space<vmem>>, vector<1x64x8xbf16>
    %1 = vector.shape_cast %0 : vector<1x64x8xbf16> to vector<64x8xbf16>
    %c0_2 = arith.constant 0 : index
    %c0_3 = arith.constant 0 : index
    %c0_4 = arith.constant 0 : index
    %2 = vector.load %arg4[%c0_2, %c0_3, %c0_4] : memref<1x8x128xbf16, #tpu.memory_space<vmem>>, vector<1x8x128xbf16>
    %3 = vector.shape_cast %2 : vector<1x8x128xbf16> to vector<8x128xbf16>
    %cst = arith.constant dense<0.000000e+00> : vector<64x128xf32>
    %4 = tpu.matmul %1, %3, %cst {dimension_numbers = #tpu.dot_dimension_numbers<[1], [0], [0], [1], [0, 0, 1, 1], [], []>} : vector<64x8xbf16>, vector<8x128xbf16>, vector<64x128xf32> -> vector<64x128xf32>
    %c0_5 = arith.constant 0 : index
    %c0_6 = arith.constant 0 : index
    %c0_7 = arith.constant 0 : index
    %5 = vector.load %arg5[%c0_5, %c0_6, %c0_7] : memref<1x64x128xf32, #tpu.memory_space<vmem>>, vector<1x64x128xf32>
    %6 = vector.shape_cast %5 : vector<1x64x128xf32> to vector<64x128xf32>
    %7 = vector.shape_cast %4 : vector<64x128xf32> to vector<1x64x128xf32>
    tpu.vector_store %arg5[%c0_5, %c0_6, %c0_7], %7 {strides = array<i32>} : memref<1x64x128xf32, #tpu.memory_space<vmem>>, vector<1x64x128xf32>,
    return
  }
  func.func @transform_0(%arg0: i32, %arg1: i32, %arg2: i32) -> (i32, i32, i32) {
    %c0_i32 = arith.constant 0 : i32
    %c0_i32_0 = arith.constant 0 : i32
    return %arg0, %arg1, %c0_i32 : i32, i32, i32
  }
  func.func @transform_1(%arg0: i32, %arg1: i32, %arg2: i32) -> (i32, i32, i32) {
    %c4_i32 = arith.constant 4 : i32
    %c0_i32 = arith.constant 0 : i32
    %0 = arith.cmpi eq, %c4_i32, %c0_i32 : i32
    %c1_i32 = arith.constant 1 : i32
    %1 = arith.select %0, %c1_i32, %c4_i32 : i32
    %2 = arith.remsi %arg0, %1 : i32
    %c0_i32_0 = arith.constant 0 : i32
    %3 = arith.cmpi ne, %2, %c0_i32_0 : i32
    %c0_i32_1 = arith.constant 0 : i32
    %4 = arith.cmpi slt, %2, %c0_i32_1 : i32
    %c0_i32_2 = arith.constant 0 : i32
    %5 = arith.cmpi slt, %1, %c0_i32_2 : i32
    %6 = arith.xori %4, %5 : i1
    %7 = arith.andi %6, %3 : i1
    %8 = arith.addi %2, %1 : i32
    %9 = arith.select %7, %8, %2 : i32
    %c0_i32_3 = arith.constant 0 : i32
    %c0_i32_4 = arith.constant 0 : i32
    return %9, %c0_i32_3, %arg2 : i32, i32, i32
  }
  func.func @transform_2(%arg0: i32, %arg1: i32, %arg2: i32) -> (i32, i32, i32) {
    %c0_i32 = arith.constant 0 : i32
    return %arg0, %arg1, %arg2 : i32, i32, i32
  }
}

module attributes {stable_mosaic.version = 11 : i64} {
  func.func @_ln_gate_matmul_kernel(%arg0: i32, %arg1: i32, %arg2: memref<128x8xf32, #tpu.memory_space<vmem>>, %arg3: memref<128x8xf32, #tpu.memory_space<vmem>>, %arg4: memref<1x8xf32, #tpu.memory_space<vmem>>, %arg5: memref<1x8xf32, #tpu.memory_space<vmem>>, %arg6: memref<8x128xbf16, #tpu.memory_space<vmem>>, %arg7: memref<128x128xf32, #tpu.memory_space<vmem>>) attributes {dimension_semantics = [#tpu.dimension_semantics<parallel>, #tpu.dimension_semantics<parallel>], iteration_bounds = array<i64: 1, 1>, scalar_prefetch = 0 : i64, scratch_operands = 0 : i64, tpu.core_type = #tpu.core_type<tc>, window_params = [{transform_indices = @transform_0, window_bounds = array<i64: 128, 8>}, {transform_indices = @transform_1, window_bounds = array<i64: 128, 8>}, {pipeline_mode = #tpu.pipeline_mode<synchronous>, transform_indices = @transform_2, window_bounds = array<i64: 1, 8>}, {pipeline_mode = #tpu.pipeline_mode<synchronous>, transform_indices = @transform_3, window_bounds = array<i64: 1, 8>}, {transform_indices = @transform_4, window_bounds = array<i64: 8, 128>}, {transform_indices = @transform_5, window_bounds = array<i64: 128, 128>}]} {
    %c0 = arith.constant 0 : index
    %c0_0 = arith.constant 0 : index
    %0 = vector.load %arg2[%c0, %c0_0] : memref<128x8xf32, #tpu.memory_space<vmem>>, vector<128x8xf32>
    %cst = arith.constant dense<0.000000e+00> : vector<128xf32>
    %1 = vector.multi_reduction <add>, %0, %cst [1] : vector<128x8xf32> to vector<128xf32>
    %2 = vector.shape_cast %1 : vector<128xf32> to vector<128x1xf32>
    %cst_1 = arith.constant 8.000000e+00 : f32
    %3 = vector.broadcast %cst_1 : f32 to vector<128x1xf32>
    %4 = arith.divf %2, %3 : vector<128x1xf32>
    %5 = vector.broadcast %4 : vector<128x1xf32> to vector<128x8xf32>
    %6 = arith.subf %0, %5 : vector<128x8xf32>
    %7 = arith.mulf %6, %6 : vector<128x8xf32>
    %cst_2 = arith.constant dense<0.000000e+00> : vector<128xf32>
    %8 = vector.multi_reduction <add>, %7, %cst_2 [1] : vector<128x8xf32> to vector<128xf32>
    %9 = vector.shape_cast %8 : vector<128xf32> to vector<128x1xf32>
    %cst_3 = arith.constant 8.000000e+00 : f32
    %10 = vector.broadcast %cst_3 : f32 to vector<128x1xf32>
    %11 = arith.divf %9, %10 : vector<128x1xf32>
    %cst_4 = arith.constant 9.99999974E-6 : f32
    %12 = vector.broadcast %cst_4 : f32 to vector<128x1xf32>
    %13 = arith.addf %11, %12 : vector<128x1xf32>
    %14 = math.rsqrt %13 : vector<128x1xf32>
    %15 = vector.broadcast %14 : vector<128x1xf32> to vector<128x8xf32>
    %16 = arith.mulf %6, %15 : vector<128x8xf32>
    %c0_5 = arith.constant 0 : index
    %c0_6 = arith.constant 0 : index
    %17 = vector.load %arg4[%c0_5, %c0_6] : memref<1x8xf32, #tpu.memory_space<vmem>>, vector<1x8xf32>
    %18 = vector.broadcast %17 : vector<1x8xf32> to vector<128x8xf32>
    %19 = arith.mulf %16, %18 : vector<128x8xf32>
    %c0_7 = arith.constant 0 : index
    %c0_8 = arith.constant 0 : index
    %20 = vector.load %arg5[%c0_7, %c0_8] : memref<1x8xf32, #tpu.memory_space<vmem>>, vector<1x8xf32>
    %21 = vector.broadcast %20 : vector<1x8xf32> to vector<128x8xf32>
    %22 = arith.addf %19, %21 : vector<128x8xf32>
    %c0_9 = arith.constant 0 : index
    %c0_10 = arith.constant 0 : index
    %23 = vector.load %arg3[%c0_9, %c0_10] : memref<128x8xf32, #tpu.memory_space<vmem>>, vector<128x8xf32>
    %cst_11 = arith.constant 0.000000e+00 : f32
    %24 = vector.broadcast %cst_11 : f32 to vector<128x8xf32>
    %25 = arith.subf %24, %23 : vector<128x8xf32>
    %26 = math.exp %25 : vector<128x8xf32>
    %cst_12 = arith.constant 1.000000e+00 : f32
    %27 = vector.broadcast %cst_12 : f32 to vector<128x8xf32>
    %28 = arith.addf %27, %26 : vector<128x8xf32>
    %cst_13 = arith.constant 1.000000e+00 : f32
    %29 = vector.broadcast %cst_13 : f32 to vector<128x8xf32>
    %30 = arith.divf %29, %28 : vector<128x8xf32>
    %31 = arith.mulf %23, %30 : vector<128x8xf32>
    %32 = arith.mulf %22, %31 : vector<128x8xf32>
    %33 = arith.truncf %32 : vector<128x8xf32> to vector<128x8xbf16>
    %c0_14 = arith.constant 0 : index
    %c0_15 = arith.constant 0 : index
    %34 = vector.load %arg6[%c0_14, %c0_15] : memref<8x128xbf16, #tpu.memory_space<vmem>>, vector<8x128xbf16>
    %cst_16 = arith.constant dense<0.000000e+00> : vector<128x128xf32>
    %35 = tpu.matmul %33, %34, %cst_16 {dimension_numbers = #tpu.dot_dimension_numbers<[1], [0], [0], [1], [0, 0, 1, 1], [], []>} : vector<128x8xbf16>, vector<8x128xbf16>, vector<128x128xf32> -> vector<128x128xf32>
    %c0_17 = arith.constant 0 : index
    %c0_18 = arith.constant 0 : index
    %36 = vector.load %arg7[%c0_17, %c0_18] : memref<128x128xf32, #tpu.memory_space<vmem>>, vector<128x128xf32>
    tpu.vector_store %arg7[%c0_17, %c0_18], %35 {strides = array<i32>} : memref<128x128xf32, #tpu.memory_space<vmem>>, vector<128x128xf32>,
    return
  }
  func.func @transform_0(%arg0: i32, %arg1: i32) -> (i32, i32) {
    %c0_i32 = arith.constant 0 : i32
    %c0_i32_0 = arith.constant 0 : i32
    return %arg0, %c0_i32 : i32, i32
  }
  func.func @transform_1(%arg0: i32, %arg1: i32) -> (i32, i32) {
    %c0_i32 = arith.constant 0 : i32
    %c0_i32_0 = arith.constant 0 : i32
    return %arg0, %c0_i32 : i32, i32
  }
  func.func @transform_2(%arg0: i32, %arg1: i32) -> (i32, i32) {
    %c0_i32 = arith.constant 0 : i32
    %c0_i32_0 = arith.constant 0 : i32
    %c0_i32_1 = arith.constant 0 : i32
    return %c0_i32, %c0_i32_0 : i32, i32
  }
  func.func @transform_3(%arg0: i32, %arg1: i32) -> (i32, i32) {
    %c0_i32 = arith.constant 0 : i32
    %c0_i32_0 = arith.constant 0 : i32
    %c0_i32_1 = arith.constant 0 : i32
    return %c0_i32, %c0_i32_0 : i32, i32
  }
  func.func @transform_4(%arg0: i32, %arg1: i32) -> (i32, i32) {
    %c0_i32 = arith.constant 0 : i32
    %c0_i32_0 = arith.constant 0 : i32
    return %c0_i32, %arg1 : i32, i32
  }
  func.func @transform_5(%arg0: i32, %arg1: i32) -> (i32, i32) {
    %c0_i32 = arith.constant 0 : i32
    return %arg0, %arg1 : i32, i32
  }
}

module attributes {stable_mosaic.version = 11 : i64} {
  func.func @_conv3x3_kernel(%arg0: i32, %arg1: i32, %arg2: memref<1x10x10x8xbf16, #tpu.memory_space<vmem>>, %arg3: memref<9x8x128xbf16, #tpu.memory_space<vmem>>, %arg4: memref<1x128xf32, #tpu.memory_space<vmem>>, %arg5: memref<1x8x8x128xf32, #tpu.memory_space<vmem>>) attributes {dimension_semantics = [#tpu.dimension_semantics<parallel>, #tpu.dimension_semantics<arbitrary>], iteration_bounds = array<i64: 2, 1>, scalar_prefetch = 0 : i64, scratch_operands = 0 : i64, tpu.core_type = #tpu.core_type<tc>, window_params = [{transform_indices = @transform_0, window_bounds = array<i64: 1, 10, 10, 8>}, {pipeline_mode = #tpu.pipeline_mode<synchronous>, transform_indices = @transform_1, window_bounds = array<i64: 9, 8, 128>}, {pipeline_mode = #tpu.pipeline_mode<synchronous>, transform_indices = @transform_2, window_bounds = array<i64: 1, 128>}, {transform_indices = @transform_3, window_bounds = array<i64: 1, 8, 8, 128>}]} {
    %c8_i32 = arith.constant 8 : i32
    %0 = arith.muli %arg1, %c8_i32 : i32
    %cst = arith.constant 0.000000e+00 : f32
    %1 = vector.broadcast %cst : f32 to vector<64x128xf32>
    %c0_i32 = arith.constant 0 : i32
    %2 = arith.addi %0, %c0_i32 : i32
    %c0 = arith.constant 0 : index
    %3 = arith.index_cast %2 : i32 to index
    %c0_0 = arith.constant 0 : index
    %c0_1 = arith.constant 0 : index
    %4 = vector.load %arg2[%c0, %3, %c0_0, %c0_1] : memref<1x10x10x8xbf16, #tpu.memory_space<vmem>>, vector<1x8x10x8xbf16>
    %5 = vector.shape_cast %4 : vector<1x8x10x8xbf16> to vector<8x10x8xbf16>
    %6 = vector.extract_strided_slice %5 {offsets = [0, 0, 0], sizes = [8, 8, 8], strides = [1, 1, 1]} : vector<8x10x8xbf16> to vector<8x8x8xbf16>
    %7 = vector.shape_cast %6 : vector<8x8x8xbf16> to vector<64x8xbf16>
    %c0_2 = arith.constant 0 : index
    %c0_3 = arith.constant 0 : index
    %c0_4 = arith.constant 0 : index
    %8 = vector.load %arg3[%c0_2, %c0_3, %c0_4] : memref<9x8x128xbf16, #tpu.memory_space<vmem>>, vector<1x8x128xbf16>
    %9 = vector.shape_cast %8 : vector<1x8x128xbf16> to vector<8x128xbf16>
    %cst_5 = arith.constant dense<0.000000e+00> : vector<64x128xf32>
    %10 = tpu.matmul %7, %9, %cst_5 {dimension_numbers = #tpu.dot_dimension_numbers<[1], [0], [0], [1], [0, 0, 1, 1], [], []>} : vector<64x8xbf16>, vector<8x128xbf16>, vector<64x128xf32> -> vector<64x128xf32>
    %11 = arith.addf %1, %10 : vector<64x128xf32>
    %12 = vector.extract_strided_slice %5 {offsets = [0, 1, 0], sizes = [8, 8, 8], strides = [1, 1, 1]} : vector<8x10x8xbf16> to vector<8x8x8xbf16>
    %13 = vector.shape_cast %12 : vector<8x8x8xbf16> to vector<64x8xbf16>
    %c1 = arith.constant 1 : index
    %c0_6 = arith.constant 0 : index
    %c0_7 = arith.constant 0 : index
    %14 = vector.load %arg3[%c1, %c0_6, %c0_7] : memref<9x8x128xbf16, #tpu.memory_space<vmem>>, vector<1x8x128xbf16>
    %15 = vector.shape_cast %14 : vector<1x8x128xbf16> to vector<8x128xbf16>
    %cst_8 = arith.constant dense<0.000000e+00> : vector<64x128xf32>
    %16 = tpu.matmul %13, %15, %cst_8 {dimension_numbers = #tpu.dot_dimension_numbers<[1], [0], [0], [1], [0, 0, 1, 1], [], []>} : vector<64x8xbf16>, vector<8x128xbf16>, vector<64x128xf32> -> vector<64x128xf32>
    %17 = arith.addf %11, %16 : vector<64x128xf32>
    %18 = vector.extract_strided_slice %5 {offsets = [0, 2, 0], sizes = [8, 8, 8], strides = [1, 1, 1]} : vector<8x10x8xbf16> to vector<8x8x8xbf16>
    %19 = vector.shape_cast %18 : vector<8x8x8xbf16> to vector<64x8xbf16>
    %c2 = arith.constant 2 : index
    %c0_9 = arith.constant 0 : index
    %c0_10 = arith.constant 0 : index
    %20 = vector.load %arg3[%c2, %c0_9, %c0_10] : memref<9x8x128xbf16, #tpu.memory_space<vmem>>, vector<1x8x128xbf16>
    %21 = vector.shape_cast %20 : vector<1x8x128xbf16> to vector<8x128xbf16>
    %cst_11 = arith.constant dense<0.000000e+00> : vector<64x128xf32>
    %22 = tpu.matmul %19, %21, %cst_11 {dimension_numbers = #tpu.dot_dimension_numbers<[1], [0], [0], [1], [0, 0, 1, 1], [], []>} : vector<64x8xbf16>, vector<8x128xbf16>, vector<64x128xf32> -> vector<64x128xf32>
    %23 = arith.addf %17, %22 : vector<64x128xf32>
    %c1_i32 = arith.constant 1 : i32
    %24 = arith.addi %0, %c1_i32 : i32
    %c0_12 = arith.constant 0 : index
    %25 = arith.index_cast %24 : i32 to index
    %c0_13 = arith.constant 0 : index
    %c0_14 = arith.constant 0 : index
    %26 = vector.load %arg2[%c0_12, %25, %c0_13, %c0_14] : memref<1x10x10x8xbf16, #tpu.memory_space<vmem>>, vector<1x8x10x8xbf16>
    %27 = vector.shape_cast %26 : vector<1x8x10x8xbf16> to vector<8x10x8xbf16>
    %28 = vector.extract_strided_slice %27 {offsets = [0, 0, 0], sizes = [8, 8, 8], strides = [1, 1, 1]} : vector<8x10x8xbf16> to vector<8x8x8xbf16>
    %29 = vector.shape_cast %28 : vector<8x8x8xbf16> to vector<64x8xbf16>
    %c3 = arith.constant 3 : index
    %c0_15 = arith.constant 0 : index
    %c0_16 = arith.constant 0 : index
    %30 = vector.load %arg3[%c3, %c0_15, %c0_16] : memref<9x8x128xbf16, #tpu.memory_space<vmem>>, vector<1x8x128xbf16>
    %31 = vector.shape_cast %30 : vector<1x8x128xbf16> to vector<8x128xbf16>
    %cst_17 = arith.constant dense<0.000000e+00> : vector<64x128xf32>
    %32 = tpu.matmul %29, %31, %cst_17 {dimension_numbers = #tpu.dot_dimension_numbers<[1], [0], [0], [1], [0, 0, 1, 1], [], []>} : vector<64x8xbf16>, vector<8x128xbf16>, vector<64x128xf32> -> vector<64x128xf32>
    %33 = arith.addf %23, %32 : vector<64x128xf32>
    %34 = vector.extract_strided_slice %27 {offsets = [0, 1, 0], sizes = [8, 8, 8], strides = [1, 1, 1]} : vector<8x10x8xbf16> to vector<8x8x8xbf16>
    %35 = vector.shape_cast %34 : vector<8x8x8xbf16> to vector<64x8xbf16>
    %c4 = arith.constant 4 : index
    %c0_18 = arith.constant 0 : index
    %c0_19 = arith.constant 0 : index
    %36 = vector.load %arg3[%c4, %c0_18, %c0_19] : memref<9x8x128xbf16, #tpu.memory_space<vmem>>, vector<1x8x128xbf16>
    %37 = vector.shape_cast %36 : vector<1x8x128xbf16> to vector<8x128xbf16>
    %cst_20 = arith.constant dense<0.000000e+00> : vector<64x128xf32>
    %38 = tpu.matmul %35, %37, %cst_20 {dimension_numbers = #tpu.dot_dimension_numbers<[1], [0], [0], [1], [0, 0, 1, 1], [], []>} : vector<64x8xbf16>, vector<8x128xbf16>, vector<64x128xf32> -> vector<64x128xf32>
    %39 = arith.addf %33, %38 : vector<64x128xf32>
    %40 = vector.extract_strided_slice %27 {offsets = [0, 2, 0], sizes = [8, 8, 8], strides = [1, 1, 1]} : vector<8x10x8xbf16> to vector<8x8x8xbf16>
    %41 = vector.shape_cast %40 : vector<8x8x8xbf16> to vector<64x8xbf16>
    %c5 = arith.constant 5 : index
    %c0_21 = arith.constant 0 : index
    %c0_22 = arith.constant 0 : index
    %42 = vector.load %arg3[%c5, %c0_21, %c0_22] : memref<9x8x128xbf16, #tpu.memory_space<vmem>>, vector<1x8x128xbf16>
    %43 = vector.shape_cast %42 : vector<1x8x128xbf16> to vector<8x128xbf16>
    %cst_23 = arith.constant dense<0.000000e+00> : vector<64x128xf32>
    %44 = tpu.matmul %41, %43, %cst_23 {dimension_numbers = #tpu.dot_dimension_numbers<[1], [0], [0], [1], [0, 0, 1, 1], [], []>} : vector<64x8xbf16>, vector<8x128xbf16>, vector<64x128xf32> -> vector<64x128xf32>
    %45 = arith.addf %39, %44 : vector<64x128xf32>
    %c2_i32 = arith.constant 2 : i32
    %46 = arith.addi %0, %c2_i32 : i32
    %c0_24 = arith.constant 0 : index
    %47 = arith.index_cast %46 : i32 to index
    %c0_25 = arith.constant 0 : index
    %c0_26 = arith.constant 0 : index
    %48 = vector.load %arg2[%c0_24, %47, %c0_25, %c0_26] : memref<1x10x10x8xbf16, #tpu.memory_space<vmem>>, vector<1x8x10x8xbf16>
    %49 = vector.shape_cast %48 : vector<1x8x10x8xbf16> to vector<8x10x8xbf16>
    %50 = vector.extract_strided_slice %49 {offsets = [0, 0, 0], sizes = [8, 8, 8], strides = [1, 1, 1]} : vector<8x10x8xbf16> to vector<8x8x8xbf16>
    %51 = vector.shape_cast %50 : vector<8x8x8xbf16> to vector<64x8xbf16>
    %c6 = arith.constant 6 : index
    %c0_27 = arith.constant 0 : index
    %c0_28 = arith.constant 0 : index
    %52 = vector.load %arg3[%c6, %c0_27, %c0_28] : memref<9x8x128xbf16, #tpu.memory_space<vmem>>, vector<1x8x128xbf16>
    %53 = vector.shape_cast %52 : vector<1x8x128xbf16> to vector<8x128xbf16>
    %cst_29 = arith.constant dense<0.000000e+00> : vector<64x128xf32>
    %54 = tpu.matmul %51, %53, %cst_29 {dimension_numbers = #tpu.dot_dimension_numbers<[1], [0], [0], [1], [0, 0, 1, 1], [], []>} : vector<64x8xbf16>, vector<8x128xbf16>, vector<64x128xf32> -> vector<64x128xf32>
    %55 = arith.addf %45, %54 : vector<64x128xf32>
    %56 = vector.extract_strided_slice %49 {offsets = [0, 1, 0], sizes = [8, 8, 8], strides = [1, 1, 1]} : vector<8x10x8xbf16> to vector<8x8x8xbf16>
    %57 = vector.shape_cast %56 : vector<8x8x8xbf16> to vector<64x8xbf16>
    %c7 = arith.constant 7 : index
    %c0_30 = arith.constant 0 : index
    %c0_31 = arith.constant 0 : index
    %58 = vector.load %arg3[%c7, %c0_30, %c0_31] : memref<9x8x128xbf16, #tpu.memory_space<vmem>>, vector<1x8x128xbf16>
    %59 = vector.shape_cast %58 : vector<1x8x128xbf16> to vector<8x128xbf16>
    %cst_32 = arith.constant dense<0.000000e+00> : vector<64x128xf32>
    %60 = tpu.matmul %57, %59, %cst_32 {dimension_numbers = #tpu.dot_dimension_numbers<[1], [0], [0], [1], [0, 0, 1, 1], [], []>} : vector<64x8xbf16>, vector<8x128xbf16>, vector<64x128xf32> -> vector<64x128xf32>
    %61 = arith.addf %55, %60 : vector<64x128xf32>
    %62 = vector.extract_strided_slice %49 {offsets = [0, 2, 0], sizes = [8, 8, 8], strides = [1, 1, 1]} : vector<8x10x8xbf16> to vector<8x8x8xbf16>
    %63 = vector.shape_cast %62 : vector<8x8x8xbf16> to vector<64x8xbf16>
    %c8 = arith.constant 8 : index
    %c0_33 = arith.constant 0 : index
    %c0_34 = arith.constant 0 : index
    %64 = vector.load %arg3[%c8, %c0_33, %c0_34] : memref<9x8x128xbf16, #tpu.memory_space<vmem>>, vector<1x8x128xbf16>
    %65 = vector.shape_cast %64 : vector<1x8x128xbf16> to vector<8x128xbf16>
    %cst_35 = arith.constant dense<0.000000e+00> : vector<64x128xf32>
    %66 = tpu.matmul %63, %65, %cst_35 {dimension_numbers = #tpu.dot_dimension_numbers<[1], [0], [0], [1], [0, 0, 1, 1], [], []>} : vector<64x8xbf16>, vector<8x128xbf16>, vector<64x128xf32> -> vector<64x128xf32>
    %67 = arith.addf %61, %66 : vector<64x128xf32>
    %c0_36 = arith.constant 0 : index
    %c0_37 = arith.constant 0 : index
    %68 = vector.load %arg4[%c0_36, %c0_37] : memref<1x128xf32, #tpu.memory_space<vmem>>, vector<1x128xf32>
    %69 = vector.broadcast %68 : vector<1x128xf32> to vector<64x128xf32>
    %70 = arith.addf %67, %69 : vector<64x128xf32>
    %cst_38 = arith.constant 0.000000e+00 : f32
    %71 = vector.broadcast %cst_38 : f32 to vector<64x128xf32>
    %72 = arith.cmpf oge, %70, %71 : vector<64x128xf32>
    %cst_39 = arith.constant 0.00999999977 : f32
    %73 = vector.broadcast %cst_39 : f32 to vector<64x128xf32>
    %74 = arith.mulf %73, %70 : vector<64x128xf32>
    %75 = arith.select %72, %70, %74 : vector<64x128xi1>, vector<64x128xf32>
    %76 = vector.shape_cast %75 : vector<64x128xf32> to vector<8x8x128xf32>
    %c0_40 = arith.constant 0 : index
    %c0_41 = arith.constant 0 : index
    %c0_42 = arith.constant 0 : index
    %c0_43 = arith.constant 0 : index
    %77 = vector.load %arg5[%c0_40, %c0_41, %c0_42, %c0_43] : memref<1x8x8x128xf32, #tpu.memory_space<vmem>>, vector<1x8x8x128xf32>
    %78 = vector.shape_cast %77 : vector<1x8x8x128xf32> to vector<8x8x128xf32>
    %79 = vector.shape_cast %76 : vector<8x8x128xf32> to vector<1x8x8x128xf32>
    tpu.vector_store %arg5[%c0_40, %c0_41, %c0_42, %c0_43], %79 {strides = array<i32>} : memref<1x8x8x128xf32, #tpu.memory_space<vmem>>, vector<1x8x8x128xf32>,
    return
  }
  func.func @transform_0(%arg0: i32, %arg1: i32) -> (i32, i32, i32, i32) {
    %c0_i32 = arith.constant 0 : i32
    %c0_i32_0 = arith.constant 0 : i32
    %c0_i32_1 = arith.constant 0 : i32
    %c0_i32_2 = arith.constant 0 : i32
    return %arg0, %c0_i32, %c0_i32_0, %c0_i32_1 : i32, i32, i32, i32
  }
  func.func @transform_1(%arg0: i32, %arg1: i32) -> (i32, i32, i32) {
    %c0_i32 = arith.constant 0 : i32
    %c0_i32_0 = arith.constant 0 : i32
    %c0_i32_1 = arith.constant 0 : i32
    %c0_i32_2 = arith.constant 0 : i32
    return %c0_i32, %c0_i32_0, %c0_i32_1 : i32, i32, i32
  }
  func.func @transform_2(%arg0: i32, %arg1: i32) -> (i32, i32) {
    %c0_i32 = arith.constant 0 : i32
    %c0_i32_0 = arith.constant 0 : i32
    %c0_i32_1 = arith.constant 0 : i32
    return %c0_i32, %c0_i32_0 : i32, i32
  }
  func.func @transform_3(%arg0: i32, %arg1: i32) -> (i32, i32, i32, i32) {
    %c0_i32 = arith.constant 0 : i32
    %c0_i32_0 = arith.constant 0 : i32
    %c0_i32_1 = arith.constant 0 : i32
    return %arg0, %arg1, %c0_i32, %c0_i32_0 : i32, i32, i32, i32
  }
}

module attributes {stable_mosaic.version = 11 : i64} {
  func.func @_selective_scan_kernel(%arg0: i32, %arg1: i32, %arg2: i32, %arg3: memref<1x1x64x8xf32, #tpu.memory_space<vmem>>, %arg4: memref<1x1x64x8xf32, #tpu.memory_space<vmem>>, %arg5: memref<1x1x64x8xf32, #tpu.memory_space<vmem>>, %arg6: memref<1x1x64x8xf32, #tpu.memory_space<vmem>>, %arg7: memref<1x8x8xf32, #tpu.memory_space<vmem>>, %arg8: memref<1x1x8xf32, #tpu.memory_space<vmem>>, %arg9: memref<1x1x8xf32, #tpu.memory_space<vmem>>, %arg10: memref<1x1x64x8xf32, #tpu.memory_space<vmem>>, %arg11: memref<8x8xf32, #tpu.memory_space<vmem>>, %arg12: memref<64x8xf32, #tpu.memory_space<vmem>>, %arg13: memref<64x8xf32, #tpu.memory_space<vmem>>) attributes {dimension_semantics = [#tpu.dimension_semantics<parallel>, #tpu.dimension_semantics<parallel>, #tpu.dimension_semantics<arbitrary>], iteration_bounds = array<i64: 2, 4, 1>, scalar_prefetch = 0 : i64, scratch_operands = 3 : i64, tpu.core_type = #tpu.core_type<tc>, window_params = [{transform_indices = @transform_0, window_bounds = array<i64: 1, 1, 64, 8>}, {transform_indices = @transform_1, window_bounds = array<i64: 1, 1, 64, 8>}, {transform_indices = @transform_2, window_bounds = array<i64: 1, 1, 64, 8>}, {transform_indices = @transform_3, window_bounds = array<i64: 1, 1, 64, 8>}, {transform_indices = @transform_4, window_bounds = array<i64: 1, 8, 8>}, {transform_indices = @transform_5, window_bounds = array<i64: 1, 1, 8>}, {transform_indices = @transform_6, window_bounds = array<i64: 1, 1, 8>}, {transform_indices = @transform_7, window_bounds = array<i64: 1, 1, 64, 8>}]} {
    %c0 = arith.constant 0 : index
    %c0_0 = arith.constant 0 : index
    %c0_1 = arith.constant 0 : index
    %0 = vector.load %arg7[%c0, %c0_0, %c0_1] : memref<1x8x8xf32, #tpu.memory_space<vmem>>, vector<1x8x8xf32>
    %1 = vector.shape_cast %0 : vector<1x8x8xf32> to vector<8x8xf32>
    %c0_2 = arith.constant 0 : index
    %c0_3 = arith.constant 0 : index
    %c0_4 = arith.constant 0 : index
    %c0_5 = arith.constant 0 : index
    %2 = vector.load %arg4[%c0_2, %c0_3, %c0_4, %c0_5] : memref<1x1x64x8xf32, #tpu.memory_space<vmem>>, vector<1x1x64x8xf32>
    %3 = vector.shape_cast %2 : vector<1x1x64x8xf32> to vector<64x8xf32>
    %c0_6 = arith.constant 0 : index
    %c0_7 = arith.constant 0 : index
    %c0_8 = arith.constant 0 : index
    %4 = vector.load %arg9[%c0_6, %c0_7, %c0_8] : memref<1x1x8xf32, #tpu.memory_space<vmem>>, vector<1x1x8xf32>
    %5 = vector.shape_cast %4 : vector<1x1x8xf32> to vector<1x8xf32>
    %6 = vector.broadcast %5 : vector<1x8xf32> to vector<64x8xf32>
    %7 = arith.addf %3, %6 : vector<64x8xf32>
    %cst = arith.constant 2.000000e+01 : f32
    %8 = vector.broadcast %cst : f32 to vector<64x8xf32>
    %9 = arith.cmpf ogt, %7, %8 : vector<64x8xf32>
    %cst_9 = arith.constant 2.000000e+01 : f32
    %10 = vector.broadcast %cst_9 : f32 to vector<64x8xf32>
    %11 = arith.minimumf %7, %10 : vector<64x8xf32>
    %12 = math.exp %11 : vector<64x8xf32>
    %cst_10 = arith.constant 1.000000e+00 : f32
    %13 = vector.broadcast %cst_10 : f32 to vector<64x8xf32>
    %14 = arith.addf %13, %12 : vector<64x8xf32>
    %15 = math.log %14 : vector<64x8xf32>
    %16 = arith.select %9, %7, %15 : vector<64x8xi1>, vector<64x8xf32>
    %c0_11 = arith.constant 0 : index
    %c0_12 = arith.constant 0 : index
    %17 = vector.load %arg12[%c0_11, %c0_12] : memref<64x8xf32, #tpu.memory_space<vmem>>, vector<64x8xf32>
    tpu.vector_store %arg12[%c0_11, %c0_12], %16 {strides = array<i32>} : memref<64x8xf32, #tpu.memory_space<vmem>>, vector<64x8xf32>,
    %c0_13 = arith.constant 0 : index
    %c0_14 = arith.constant 0 : index
    %c0_15 = arith.constant 0 : index
    %c0_16 = arith.constant 0 : index
    %18 = vector.load %arg3[%c0_13, %c0_14, %c0_15, %c0_16] : memref<1x1x64x8xf32, #tpu.memory_space<vmem>>, vector<1x1x64x8xf32>
    %19 = vector.shape_cast %18 : vector<1x1x64x8xf32> to vector<64x8xf32>
    %20 = arith.mulf %16, %19 : vector<64x8xf32>
    %c0_17 = arith.constant 0 : index
    %c0_18 = arith.constant 0 : index
    %21 = vector.load %arg13[%c0_17, %c0_18] : memref<64x8xf32, #tpu.memory_space<vmem>>, vector<64x8xf32>
    tpu.vector_store %arg13[%c0_17, %c0_18], %20 {strides = array<i32>} : memref<64x8xf32, #tpu.memory_space<vmem>>, vector<64x8xf32>,
    %c0_i32 = arith.constant 0 : i32
    %22 = arith.cmpi eq, %arg2, %c0_i32 : i32
    %23 = arith.extui %22 : i1 to i32
    %c0_i32_19 = arith.constant 0 : i32
    %24 = arith.cmpi ne, %23, %c0_i32_19 : i32
    scf.if %24 {
      %cst_41 = arith.constant 0.000000e+00 : f32
      %41 = vector.broadcast %cst_41 : f32 to vector<8x8xf32>
      %c0_42 = arith.constant 0 : index
      %c0_43 = arith.constant 0 : index
      %42 = vector.load %arg11[%c0_42, %c0_43] : memref<8x8xf32, #tpu.memory_space<vmem>>, vector<8x8xf32>
      tpu.vector_store %arg11[%c0_42, %c0_43], %41 {strides = array<i32>} : memref<8x8xf32, #tpu.memory_space<vmem>>, vector<8x8xf32>,
    } else {
    }
    %c0_20 = arith.constant 0 : index
    %c0_21 = arith.constant 0 : index
    %25 = vector.load %arg11[%c0_20, %c0_21] : memref<8x8xf32, #tpu.memory_space<vmem>>, vector<8x8xf32>
    %c0_i32_22 = arith.constant 0 : i32
    %c8_i32 = arith.constant 8 : i32
    %26 = arith.addi %c0_i32_22, %c8_i32 : i32
    %c1_i32 = arith.constant 1 : i32
    %27 = scf.for %arg14 = %c0_i32_22 to %26 step %c1_i32 iter_args(%arg15 = %25) -> (vector<8x8xf32>)  : i32 {
      %c8_i32_41 = arith.constant 8 : i32
      %41 = arith.muli %arg14, %c8_i32_41 : i32
      %42 = tpu.assume_multiple %41, 8 : i32
      %c0_42 = arith.constant 0 : index
      %c0_43 = arith.constant 0 : index
      %43 = arith.index_cast %42 : i32 to index
      %c0_44 = arith.constant 0 : index
      %44 = vector.load %arg5[%c0_42, %c0_43, %43, %c0_44] : memref<1x1x64x8xf32, #tpu.memory_space<vmem>>, vector<1x1x8x8xf32>
      %45 = vector.shape_cast %44 : vector<1x1x8x8xf32> to vector<8x8xf32>
      %46 = tpu.transpose %45, [1, 0] : vector<8x8xf32> -> vector<8x8xf32>
      %c0_45 = arith.constant 0 : index
      %c0_46 = arith.constant 0 : index
      %47 = arith.index_cast %42 : i32 to index
      %c0_47 = arith.constant 0 : index
      %48 = vector.load %arg6[%c0_45, %c0_46, %47, %c0_47] : memref<1x1x64x8xf32, #tpu.memory_space<vmem>>, vector<1x1x8x8xf32>
      %49 = vector.shape_cast %48 : vector<1x1x8x8xf32> to vector<8x8xf32>
      %50 = tpu.transpose %49, [1, 0] : vector<8x8xf32> -> vector<8x8xf32>
      %c0_i32_48 = arith.constant 0 : i32
      %51 = arith.addi %42, %c0_i32_48 : i32
      %52 = arith.index_cast %51 : i32 to index
      %c0_49 = arith.constant 0 : index
      %53 = vector.load %arg12[%52, %c0_49] : memref<64x8xf32, #tpu.memory_space<vmem>>, vector<1x8xf32>
      %c0_i32_50 = arith.constant 0 : i32
      %54 = arith.addi %42, %c0_i32_50 : i32
      %55 = arith.index_cast %54 : i32 to index
      %c0_51 = arith.constant 0 : index
      %56 = vector.load %arg13[%55, %c0_51] : memref<64x8xf32, #tpu.memory_space<vmem>>, vector<1x8xf32>
      %57 = vector.extract_strided_slice %46 {offsets = [0, 0], sizes = [8, 1], strides = [1, 1]} : vector<8x8xf32> to vector<8x1xf32>
      %58 = vector.extract_strided_slice %50 {offsets = [0, 0], sizes = [8, 1], strides = [1, 1]} : vector<8x8xf32> to vector<8x1xf32>
      %59 = vector.broadcast %53 : vector<1x8xf32> to vector<8x8xf32>
      %60 = arith.mulf %59, %1 : vector<8x8xf32>
      %61 = math.exp %60 : vector<8x8xf32>
      %62 = arith.mulf %61, %arg15 : vector<8x8xf32>
      %63 = vector.broadcast %57 : vector<8x1xf32> to vector<8x8xf32>
      %64 = vector.broadcast %56 : vector<1x8xf32> to vector<8x8xf32>
      %65 = arith.mulf %63, %64 : vector<8x8xf32>
      %66 = arith.addf %62, %65 : vector<8x8xf32>
      %67 = vector.broadcast %58 : vector<8x1xf32> to vector<8x8xf32>
      %68 = arith.mulf %66, %67 : vector<8x8xf32>
      %cst_52 = arith.constant dense<0.000000e+00> : vector<8xf32>
      %69 = vector.multi_reduction <add>, %68, %cst_52 [0] : vector<8x8xf32> to vector<8xf32>
      %70 = vector.shape_cast %69 : vector<8xf32> to vector<1x8xf32>
      %c0_i32_53 = arith.constant 0 : i32
      %71 = arith.addi %42, %c0_i32_53 : i32
      %c0_54 = arith.constant 0 : index
      %c0_55 = arith.constant 0 : index
      %72 = arith.index_cast %71 : i32 to index
      %c0_56 = arith.constant 0 : index
      %73 = vector.load %arg10[%c0_54, %c0_55, %72, %c0_56] : memref<1x1x64x8xf32, #tpu.memory_space<vmem>>, vector<1x1x1x8xf32>
      %74 = vector.shape_cast %73 : vector<1x1x1x8xf32> to vector<1x8xf32>
      %75 = vector.shape_cast %70 : vector<1x8xf32> to vector<1x1x1x8xf32>
      tpu.vector_store %arg10[%c0_54, %c0_55, %72, %c0_56], %75 {strides = array<i32>} : memref<1x1x64x8xf32, #tpu.memory_space<vmem>>, vector<1x1x1x8xf32>,
      %c1_i32_57 = arith.constant 1 : i32
      %76 = arith.addi %42, %c1_i32_57 : i32
      %77 = arith.index_cast %76 : i32 to index
      %c0_58 = arith.constant 0 : index
      %78 = vector.load %arg12[%77, %c0_58] : memref<64x8xf32, #tpu.memory_space<vmem>>, vector<1x8xf32>
      %c1_i32_59 = arith.constant 1 : i32
      %79 = arith.addi %42, %c1_i32_59 : i32
      %80 = arith.index_cast %79 : i32 to index
      %c0_60 = arith.constant 0 : index
      %81 = vector.load %arg13[%80, %c0_60] : memref<64x8xf32, #tpu.memory_space<vmem>>, vector<1x8xf32>
      %82 = vector.extract_strided_slice %46 {offsets = [0, 1], sizes = [8, 1], strides = [1, 1]} : vector<8x8xf32> to vector<8x1xf32>
      %83 = vector.extract_strided_slice %50 {offsets = [0, 1], sizes = [8, 1], strides = [1, 1]} : vector<8x8xf32> to vector<8x1xf32>
      %84 = vector.broadcast %78 : vector<1x8xf32> to vector<8x8xf32>
      %85 = arith.mulf %84, %1 : vector<8x8xf32>
      %86 = math.exp %85 : vector<8x8xf32>
      %87 = arith.mulf %86, %66 : vector<8x8xf32>
      %88 = vector.broadcast %82 : vector<8x1xf32> to vector<8x8xf32>
      %89 = vector.broadcast %81 : vector<1x8xf32> to vector<8x8xf32>
      %90 = arith.mulf %88, %89 : vector<8x8xf32>
      %91 = arith.addf %87, %90 : vector<8x8xf32>
      %92 = vector.broadcast %83 : vector<8x1xf32> to vector<8x8xf32>
      %93 = arith.mulf %91, %92 : vector<8x8xf32>
      %cst_61 = arith.constant dense<0.000000e+00> : vector<8xf32>
      %94 = vector.multi_reduction <add>, %93, %cst_61 [0] : vector<8x8xf32> to vector<8xf32>
      %95 = vector.shape_cast %94 : vector<8xf32> to vector<1x8xf32>
      %c1_i32_62 = arith.constant 1 : i32
      %96 = arith.addi %42, %c1_i32_62 : i32
      %c0_63 = arith.constant 0 : index
      %c0_64 = arith.constant 0 : index
      %97 = arith.index_cast %96 : i32 to index
      %c0_65 = arith.constant 0 : index
      %98 = vector.load %arg10[%c0_63, %c0_64, %97, %c0_65] : memref<1x1x64x8xf32, #tpu.memory_space<vmem>>, vector<1x1x1x8xf32>
      %99 = vector.shape_cast %98 : vector<1x1x1x8xf32> to vector<1x8xf32>
      %100 = vector.shape_cast %95 : vector<1x8xf32> to vector<1x1x1x8xf32>
      tpu.vector_store %arg10[%c0_63, %c0_64, %97, %c0_65], %100 {strides = array<i32>} : memref<1x1x64x8xf32, #tpu.memory_space<vmem>>, vector<1x1x1x8xf32>,
      %c2_i32 = arith.constant 2 : i32
      %101 = arith.addi %42, %c2_i32 : i32
      %102 = arith.index_cast %101 : i32 to index
      %c0_66 = arith.constant 0 : index
      %103 = vector.load %arg12[%102, %c0_66] : memref<64x8xf32, #tpu.memory_space<vmem>>, vector<1x8xf32>
      %c2_i32_67 = arith.constant 2 : i32
      %104 = arith.addi %42, %c2_i32_67 : i32
      %105 = arith.index_cast %104 : i32 to index
      %c0_68 = arith.constant 0 : index
      %106 = vector.load %arg13[%105, %c0_68] : memref<64x8xf32, #tpu.memory_space<vmem>>, vector<1x8xf32>
      %107 = vector.extract_strided_slice %46 {offsets = [0, 2], sizes = [8, 1], strides = [1, 1]} : vector<8x8xf32> to vector<8x1xf32>
      %108 = vector.extract_strided_slice %50 {offsets = [0, 2], sizes = [8, 1], strides = [1, 1]} : vector<8x8xf32> to vector<8x1xf32>
      %109 = vector.broadcast %103 : vector<1x8xf32> to vector<8x8xf32>
      %110 = arith.mulf %109, %1 : vector<8x8xf32>
      %111 = math.exp %110 : vector<8x8xf32>
      %112 = arith.mulf %111, %91 : vector<8x8xf32>
      %113 = vector.broadcast %107 : vector<8x1xf32> to vector<8x8xf32>
      %114 = vector.broadcast %106 : vector<1x8xf32> to vector<8x8xf32>
      %115 = arith.mulf %113, %114 : vector<8x8xf32>
      %116 = arith.addf %112, %115 : vector<8x8xf32>
      %117 = vector.broadcast %108 : vector<8x1xf32> to vector<8x8xf32>
      %118 = arith.mulf %116, %117 : vector<8x8xf32>
      %cst_69 = arith.constant dense<0.000000e+00> : vector<8xf32>
      %119 = vector.multi_reduction <add>, %118, %cst_69 [0] : vector<8x8xf32> to vector<8xf32>
      %120 = vector.shape_cast %119 : vector<8xf32> to vector<1x8xf32>
      %c2_i32_70 = arith.constant 2 : i32
      %121 = arith.addi %42, %c2_i32_70 : i32
      %c0_71 = arith.constant 0 : index
      %c0_72 = arith.constant 0 : index
      %122 = arith.index_cast %121 : i32 to index
      %c0_73 = arith.constant 0 : index
      %123 = vector.load %arg10[%c0_71, %c0_72, %122, %c0_73] : memref<1x1x64x8xf32, #tpu.memory_space<vmem>>, vector<1x1x1x8xf32>
      %124 = vector.shape_cast %123 : vector<1x1x1x8xf32> to vector<1x8xf32>
      %125 = vector.shape_cast %120 : vector<1x8xf32> to vector<1x1x1x8xf32>
      tpu.vector_store %arg10[%c0_71, %c0_72, %122, %c0_73], %125 {strides = array<i32>} : memref<1x1x64x8xf32, #tpu.memory_space<vmem>>, vector<1x1x1x8xf32>,
      %c3_i32 = arith.constant 3 : i32
      %126 = arith.addi %42, %c3_i32 : i32
      %127 = arith.index_cast %126 : i32 to index
      %c0_74 = arith.constant 0 : index
      %128 = vector.load %arg12[%127, %c0_74] : memref<64x8xf32, #tpu.memory_space<vmem>>, vector<1x8xf32>
      %c3_i32_75 = arith.constant 3 : i32
      %129 = arith.addi %42, %c3_i32_75 : i32
      %130 = arith.index_cast %129 : i32 to index
      %c0_76 = arith.constant 0 : index
      %131 = vector.load %arg13[%130, %c0_76] : memref<64x8xf32, #tpu.memory_space<vmem>>, vector<1x8xf32>
      %132 = vector.extract_strided_slice %46 {offsets = [0, 3], sizes = [8, 1], strides = [1, 1]} : vector<8x8xf32> to vector<8x1xf32>
      %133 = vector.extract_strided_slice %50 {offsets = [0, 3], sizes = [8, 1], strides = [1, 1]} : vector<8x8xf32> to vector<8x1xf32>
      %134 = vector.broadcast %128 : vector<1x8xf32> to vector<8x8xf32>
      %135 = arith.mulf %134, %1 : vector<8x8xf32>
      %136 = math.exp %135 : vector<8x8xf32>
      %137 = arith.mulf %136, %116 : vector<8x8xf32>
      %138 = vector.broadcast %132 : vector<8x1xf32> to vector<8x8xf32>
      %139 = vector.broadcast %131 : vector<1x8xf32> to vector<8x8xf32>
      %140 = arith.mulf %138, %139 : vector<8x8xf32>
      %141 = arith.addf %137, %140 : vector<8x8xf32>
      %142 = vector.broadcast %133 : vector<8x1xf32> to vector<8x8xf32>
      %143 = arith.mulf %141, %142 : vector<8x8xf32>
      %cst_77 = arith.constant dense<0.000000e+00> : vector<8xf32>
      %144 = vector.multi_reduction <add>, %143, %cst_77 [0] : vector<8x8xf32> to vector<8xf32>
      %145 = vector.shape_cast %144 : vector<8xf32> to vector<1x8xf32>
      %c3_i32_78 = arith.constant 3 : i32
      %146 = arith.addi %42, %c3_i32_78 : i32
      %c0_79 = arith.constant 0 : index
      %c0_80 = arith.constant 0 : index
      %147 = arith.index_cast %146 : i32 to index
      %c0_81 = arith.constant 0 : index
      %148 = vector.load %arg10[%c0_79, %c0_80, %147, %c0_81] : memref<1x1x64x8xf32, #tpu.memory_space<vmem>>, vector<1x1x1x8xf32>
      %149 = vector.shape_cast %148 : vector<1x1x1x8xf32> to vector<1x8xf32>
      %150 = vector.shape_cast %145 : vector<1x8xf32> to vector<1x1x1x8xf32>
      tpu.vector_store %arg10[%c0_79, %c0_80, %147, %c0_81], %150 {strides = array<i32>} : memref<1x1x64x8xf32, #tpu.memory_space<vmem>>, vector<1x1x1x8xf32>,
      %c4_i32 = arith.constant 4 : i32
      %151 = arith.addi %42, %c4_i32 : i32
      %152 = arith.index_cast %151 : i32 to index
      %c0_82 = arith.constant 0 : index
      %153 = vector.load %arg12[%152, %c0_82] : memref<64x8xf32, #tpu.memory_space<vmem>>, vector<1x8xf32>
      %c4_i32_83 = arith.constant 4 : i32
      %154 = arith.addi %42, %c4_i32_83 : i32
      %155 = arith.index_cast %154 : i32 to index
      %c0_84 = arith.constant 0 : index
      %156 = vector.load %arg13[%155, %c0_84] : memref<64x8xf32, #tpu.memory_space<vmem>>, vector<1x8xf32>
      %157 = vector.extract_strided_slice %46 {offsets = [0, 4], sizes = [8, 1], strides = [1, 1]} : vector<8x8xf32> to vector<8x1xf32>
      %158 = vector.extract_strided_slice %50 {offsets = [0, 4], sizes = [8, 1], strides = [1, 1]} : vector<8x8xf32> to vector<8x1xf32>
      %159 = vector.broadcast %153 : vector<1x8xf32> to vector<8x8xf32>
      %160 = arith.mulf %159, %1 : vector<8x8xf32>
      %161 = math.exp %160 : vector<8x8xf32>
      %162 = arith.mulf %161, %141 : vector<8x8xf32>
      %163 = vector.broadcast %157 : vector<8x1xf32> to vector<8x8xf32>
      %164 = vector.broadcast %156 : vector<1x8xf32> to vector<8x8xf32>
      %165 = arith.mulf %163, %164 : vector<8x8xf32>
      %166 = arith.addf %162, %165 : vector<8x8xf32>
      %167 = vector.broadcast %158 : vector<8x1xf32> to vector<8x8xf32>
      %168 = arith.mulf %166, %167 : vector<8x8xf32>
      %cst_85 = arith.constant dense<0.000000e+00> : vector<8xf32>
      %169 = vector.multi_reduction <add>, %168, %cst_85 [0] : vector<8x8xf32> to vector<8xf32>
      %170 = vector.shape_cast %169 : vector<8xf32> to vector<1x8xf32>
      %c4_i32_86 = arith.constant 4 : i32
      %171 = arith.addi %42, %c4_i32_86 : i32
      %c0_87 = arith.constant 0 : index
      %c0_88 = arith.constant 0 : index
      %172 = arith.index_cast %171 : i32 to index
      %c0_89 = arith.constant 0 : index
      %173 = vector.load %arg10[%c0_87, %c0_88, %172, %c0_89] : memref<1x1x64x8xf32, #tpu.memory_space<vmem>>, vector<1x1x1x8xf32>
      %174 = vector.shape_cast %173 : vector<1x1x1x8xf32> to vector<1x8xf32>
      %175 = vector.shape_cast %170 : vector<1x8xf32> to vector<1x1x1x8xf32>
      tpu.vector_store %arg10[%c0_87, %c0_88, %172, %c0_89], %175 {strides = array<i32>} : memref<1x1x64x8xf32, #tpu.memory_space<vmem>>, vector<1x1x1x8xf32>,
      %c5_i32 = arith.constant 5 : i32
      %176 = arith.addi %42, %c5_i32 : i32
      %177 = arith.index_cast %176 : i32 to index
      %c0_90 = arith.constant 0 : index
      %178 = vector.load %arg12[%177, %c0_90] : memref<64x8xf32, #tpu.memory_space<vmem>>, vector<1x8xf32>
      %c5_i32_91 = arith.constant 5 : i32
      %179 = arith.addi %42, %c5_i32_91 : i32
      %180 = arith.index_cast %179 : i32 to index
      %c0_92 = arith.constant 0 : index
      %181 = vector.load %arg13[%180, %c0_92] : memref<64x8xf32, #tpu.memory_space<vmem>>, vector<1x8xf32>
      %182 = vector.extract_strided_slice %46 {offsets = [0, 5], sizes = [8, 1], strides = [1, 1]} : vector<8x8xf32> to vector<8x1xf32>
      %183 = vector.extract_strided_slice %50 {offsets = [0, 5], sizes = [8, 1], strides = [1, 1]} : vector<8x8xf32> to vector<8x1xf32>
      %184 = vector.broadcast %178 : vector<1x8xf32> to vector<8x8xf32>
      %185 = arith.mulf %184, %1 : vector<8x8xf32>
      %186 = math.exp %185 : vector<8x8xf32>
      %187 = arith.mulf %186, %166 : vector<8x8xf32>
      %188 = vector.broadcast %182 : vector<8x1xf32> to vector<8x8xf32>
      %189 = vector.broadcast %181 : vector<1x8xf32> to vector<8x8xf32>
      %190 = arith.mulf %188, %189 : vector<8x8xf32>
      %191 = arith.addf %187, %190 : vector<8x8xf32>
      %192 = vector.broadcast %183 : vector<8x1xf32> to vector<8x8xf32>
      %193 = arith.mulf %191, %192 : vector<8x8xf32>
      %cst_93 = arith.constant dense<0.000000e+00> : vector<8xf32>
      %194 = vector.multi_reduction <add>, %193, %cst_93 [0] : vector<8x8xf32> to vector<8xf32>
      %195 = vector.shape_cast %194 : vector<8xf32> to vector<1x8xf32>
      %c5_i32_94 = arith.constant 5 : i32
      %196 = arith.addi %42, %c5_i32_94 : i32
      %c0_95 = arith.constant 0 : index
      %c0_96 = arith.constant 0 : index
      %197 = arith.index_cast %196 : i32 to index
      %c0_97 = arith.constant 0 : index
      %198 = vector.load %arg10[%c0_95, %c0_96, %197, %c0_97] : memref<1x1x64x8xf32, #tpu.memory_space<vmem>>, vector<1x1x1x8xf32>
      %199 = vector.shape_cast %198 : vector<1x1x1x8xf32> to vector<1x8xf32>
      %200 = vector.shape_cast %195 : vector<1x8xf32> to vector<1x1x1x8xf32>
      tpu.vector_store %arg10[%c0_95, %c0_96, %197, %c0_97], %200 {strides = array<i32>} : memref<1x1x64x8xf32, #tpu.memory_space<vmem>>, vector<1x1x1x8xf32>,
      %c6_i32 = arith.constant 6 : i32
      %201 = arith.addi %42, %c6_i32 : i32
      %202 = arith.index_cast %201 : i32 to index
      %c0_98 = arith.constant 0 : index
      %203 = vector.load %arg12[%202, %c0_98] : memref<64x8xf32, #tpu.memory_space<vmem>>, vector<1x8xf32>
      %c6_i32_99 = arith.constant 6 : i32
      %204 = arith.addi %42, %c6_i32_99 : i32
      %205 = arith.index_cast %204 : i32 to index
      %c0_100 = arith.constant 0 : index
      %206 = vector.load %arg13[%205, %c0_100] : memref<64x8xf32, #tpu.memory_space<vmem>>, vector<1x8xf32>
      %207 = vector.extract_strided_slice %46 {offsets = [0, 6], sizes = [8, 1], strides = [1, 1]} : vector<8x8xf32> to vector<8x1xf32>
      %208 = vector.extract_strided_slice %50 {offsets = [0, 6], sizes = [8, 1], strides = [1, 1]} : vector<8x8xf32> to vector<8x1xf32>
      %209 = vector.broadcast %203 : vector<1x8xf32> to vector<8x8xf32>
      %210 = arith.mulf %209, %1 : vector<8x8xf32>
      %211 = math.exp %210 : vector<8x8xf32>
      %212 = arith.mulf %211, %191 : vector<8x8xf32>
      %213 = vector.broadcast %207 : vector<8x1xf32> to vector<8x8xf32>
      %214 = vector.broadcast %206 : vector<1x8xf32> to vector<8x8xf32>
      %215 = arith.mulf %213, %214 : vector<8x8xf32>
      %216 = arith.addf %212, %215 : vector<8x8xf32>
      %217 = vector.broadcast %208 : vector<8x1xf32> to vector<8x8xf32>
      %218 = arith.mulf %216, %217 : vector<8x8xf32>
      %cst_101 = arith.constant dense<0.000000e+00> : vector<8xf32>
      %219 = vector.multi_reduction <add>, %218, %cst_101 [0] : vector<8x8xf32> to vector<8xf32>
      %220 = vector.shape_cast %219 : vector<8xf32> to vector<1x8xf32>
      %c6_i32_102 = arith.constant 6 : i32
      %221 = arith.addi %42, %c6_i32_102 : i32
      %c0_103 = arith.constant 0 : index
      %c0_104 = arith.constant 0 : index
      %222 = arith.index_cast %221 : i32 to index
      %c0_105 = arith.constant 0 : index
      %223 = vector.load %arg10[%c0_103, %c0_104, %222, %c0_105] : memref<1x1x64x8xf32, #tpu.memory_space<vmem>>, vector<1x1x1x8xf32>
      %224 = vector.shape_cast %223 : vector<1x1x1x8xf32> to vector<1x8xf32>
      %225 = vector.shape_cast %220 : vector<1x8xf32> to vector<1x1x1x8xf32>
      tpu.vector_store %arg10[%c0_103, %c0_104, %222, %c0_105], %225 {strides = array<i32>} : memref<1x1x64x8xf32, #tpu.memory_space<vmem>>, vector<1x1x1x8xf32>,
      %c7_i32 = arith.constant 7 : i32
      %226 = arith.addi %42, %c7_i32 : i32
      %227 = arith.index_cast %226 : i32 to index
      %c0_106 = arith.constant 0 : index
      %228 = vector.load %arg12[%227, %c0_106] : memref<64x8xf32, #tpu.memory_space<vmem>>, vector<1x8xf32>
      %c7_i32_107 = arith.constant 7 : i32
      %229 = arith.addi %42, %c7_i32_107 : i32
      %230 = arith.index_cast %229 : i32 to index
      %c0_108 = arith.constant 0 : index
      %231 = vector.load %arg13[%230, %c0_108] : memref<64x8xf32, #tpu.memory_space<vmem>>, vector<1x8xf32>
      %232 = vector.extract_strided_slice %46 {offsets = [0, 7], sizes = [8, 1], strides = [1, 1]} : vector<8x8xf32> to vector<8x1xf32>
      %233 = vector.extract_strided_slice %50 {offsets = [0, 7], sizes = [8, 1], strides = [1, 1]} : vector<8x8xf32> to vector<8x1xf32>
      %234 = vector.broadcast %228 : vector<1x8xf32> to vector<8x8xf32>
      %235 = arith.mulf %234, %1 : vector<8x8xf32>
      %236 = math.exp %235 : vector<8x8xf32>
      %237 = arith.mulf %236, %216 : vector<8x8xf32>
      %238 = vector.broadcast %232 : vector<8x1xf32> to vector<8x8xf32>
      %239 = vector.broadcast %231 : vector<1x8xf32> to vector<8x8xf32>
      %240 = arith.mulf %238, %239 : vector<8x8xf32>
      %241 = arith.addf %237, %240 : vector<8x8xf32>
      %242 = vector.broadcast %233 : vector<8x1xf32> to vector<8x8xf32>
      %243 = arith.mulf %241, %242 : vector<8x8xf32>
      %cst_109 = arith.constant dense<0.000000e+00> : vector<8xf32>
      %244 = vector.multi_reduction <add>, %243, %cst_109 [0] : vector<8x8xf32> to vector<8xf32>
      %245 = vector.shape_cast %244 : vector<8xf32> to vector<1x8xf32>
      %c7_i32_110 = arith.constant 7 : i32
      %246 = arith.addi %42, %c7_i32_110 : i32
      %c0_111 = arith.constant 0 : index
      %c0_112 = arith.constant 0 : index
      %247 = arith.index_cast %246 : i32 to index
      %c0_113 = arith.constant 0 : index
      %248 = vector.load %arg10[%c0_111, %c0_112, %247, %c0_113] : memref<1x1x64x8xf32, #tpu.memory_space<vmem>>, vector<1x1x1x8xf32>
      %249 = vector.shape_cast %248 : vector<1x1x1x8xf32> to vector<1x8xf32>
      %250 = vector.shape_cast %245 : vector<1x8xf32> to vector<1x1x1x8xf32>
      tpu.vector_store %arg10[%c0_111, %c0_112, %247, %c0_113], %250 {strides = array<i32>} : memref<1x1x64x8xf32, #tpu.memory_space<vmem>>, vector<1x1x1x8xf32>,
      scf.yield %241 : vector<8x8xf32>
    }
    %c8_i32_23 = arith.constant 8 : i32
    %c0_24 = arith.constant 0 : index
    %c0_25 = arith.constant 0 : index
    %28 = vector.load %arg11[%c0_24, %c0_25] : memref<8x8xf32, #tpu.memory_space<vmem>>, vector<8x8xf32>
    tpu.vector_store %arg11[%c0_24, %c0_25], %27 {strides = array<i32>} : memref<8x8xf32, #tpu.memory_space<vmem>>, vector<8x8xf32>,
    %c0_26 = arith.constant 0 : index
    %c0_27 = arith.constant 0 : index
    %c0_28 = arith.constant 0 : index
    %c0_29 = arith.constant 0 : index
    %29 = vector.load %arg10[%c0_26, %c0_27, %c0_28, %c0_29] : memref<1x1x64x8xf32, #tpu.memory_space<vmem>>, vector<1x1x64x8xf32>
    %30 = vector.shape_cast %29 : vector<1x1x64x8xf32> to vector<64x8xf32>
    %c0_30 = arith.constant 0 : index
    %c0_31 = arith.constant 0 : index
    %c0_32 = arith.constant 0 : index
    %31 = vector.load %arg8[%c0_30, %c0_31, %c0_32] : memref<1x1x8xf32, #tpu.memory_space<vmem>>, vector<1x1x8xf32>
    %32 = vector.shape_cast %31 : vector<1x1x8xf32> to vector<1x8xf32>
    %c0_33 = arith.constant 0 : index
    %c0_34 = arith.constant 0 : index
    %c0_35 = arith.constant 0 : index
    %c0_36 = arith.constant 0 : index
    %33 = vector.load %arg3[%c0_33, %c0_34, %c0_35, %c0_36] : memref<1x1x64x8xf32, #tpu.memory_space<vmem>>, vector<1x1x64x8xf32>
    %34 = vector.shape_cast %33 : vector<1x1x64x8xf32> to vector<64x8xf32>
    %35 = vector.broadcast %32 : vector<1x8xf32> to vector<64x8xf32>
    %36 = arith.mulf %35, %34 : vector<64x8xf32>
    %37 = arith.addf %30, %36 : vector<64x8xf32>
    %c0_37 = arith.constant 0 : index
    %c0_38 = arith.constant 0 : index
    %c0_39 = arith.constant 0 : index
    %c0_40 = arith.constant 0 : index
    %38 = vector.load %arg10[%c0_37, %c0_38, %c0_39, %c0_40] : memref<1x1x64x8xf32, #tpu.memory_space<vmem>>, vector<1x1x64x8xf32>
    %39 = vector.shape_cast %38 : vector<1x1x64x8xf32> to vector<64x8xf32>
    %40 = vector.shape_cast %37 : vector<64x8xf32> to vector<1x1x64x8xf32>
    tpu.vector_store %arg10[%c0_37, %c0_38, %c0_39, %c0_40], %40 {strides = array<i32>} : memref<1x1x64x8xf32, #tpu.memory_space<vmem>>, vector<1x1x64x8xf32>,
    return
  }
  func.func @transform_0(%arg0: i32, %arg1: i32, %arg2: i32) -> (i32, i32, i32, i32) {
    %c0_i32 = arith.constant 0 : i32
    %c0_i32_0 = arith.constant 0 : i32
    return %arg0, %arg1, %arg2, %c0_i32 : i32, i32, i32, i32
  }
  func.func @transform_1(%arg0: i32, %arg1: i32, %arg2: i32) -> (i32, i32, i32, i32) {
    %c0_i32 = arith.constant 0 : i32
    %c0_i32_0 = arith.constant 0 : i32
    return %arg0, %arg1, %arg2, %c0_i32 : i32, i32, i32, i32
  }
  func.func @transform_2(%arg0: i32, %arg1: i32, %arg2: i32) -> (i32, i32, i32, i32) {
    %c0_i32 = arith.constant 0 : i32
    %c0_i32_0 = arith.constant 0 : i32
    return %arg0, %arg1, %arg2, %c0_i32 : i32, i32, i32, i32
  }
  func.func @transform_3(%arg0: i32, %arg1: i32, %arg2: i32) -> (i32, i32, i32, i32) {
    %c0_i32 = arith.constant 0 : i32
    %c0_i32_0 = arith.constant 0 : i32
    return %arg0, %arg1, %arg2, %c0_i32 : i32, i32, i32, i32
  }
  func.func @transform_4(%arg0: i32, %arg1: i32, %arg2: i32) -> (i32, i32, i32) {
    %c0_i32 = arith.constant 0 : i32
    %c0_i32_0 = arith.constant 0 : i32
    %c0_i32_1 = arith.constant 0 : i32
    return %arg1, %c0_i32, %c0_i32_0 : i32, i32, i32
  }
  func.func @transform_5(%arg0: i32, %arg1: i32, %arg2: i32) -> (i32, i32, i32) {
    %c0_i32 = arith.constant 0 : i32
    %c0_i32_0 = arith.constant 0 : i32
    %c0_i32_1 = arith.constant 0 : i32
    return %arg1, %c0_i32, %c0_i32_0 : i32, i32, i32
  }
  func.func @transform_6(%arg0: i32, %arg1: i32, %arg2: i32) -> (i32, i32, i32) {
    %c0_i32 = arith.constant 0 : i32
    %c0_i32_0 = arith.constant 0 : i32
    %c0_i32_1 = arith.constant 0 : i32
    return %arg1, %c0_i32, %c0_i32_0 : i32, i32, i32
  }
  func.func @transform_7(%arg0: i32, %arg1: i32, %arg2: i32) -> (i32, i32, i32, i32) {
    %c0_i32 = arith.constant 0 : i32
    %c0_i32_0 = arith.constant 0 : i32
    return %arg0, %arg1, %arg2, %c0_i32 : i32, i32, i32, i32
  }
}

module attributes {stable_mosaic.version = 11 : i64} {
  func.func @_mm_k1_bias_kernel(%arg0: i32, %arg1: i32, %arg2: memref<128x8xbf16, #tpu.memory_space<vmem>>, %arg3: memref<8x128xbf16, #tpu.memory_space<vmem>>, %arg4: memref<1x128xf32, #tpu.memory_space<vmem>>, %arg5: memref<128x128xf32, #tpu.memory_space<vmem>>) attributes {dimension_semantics = [#tpu.dimension_semantics<parallel>, #tpu.dimension_semantics<parallel>], iteration_bounds = array<i64: 1, 1>, scalar_prefetch = 0 : i64, scratch_operands = 0 : i64, tpu.core_type = #tpu.core_type<tc>, window_params = [{transform_indices = @transform_0, window_bounds = array<i64: 128, 8>}, {transform_indices = @transform_1, window_bounds = array<i64: 8, 128>}, {transform_indices = @transform_2, window_bounds = array<i64: 1, 128>}, {transform_indices = @transform_3, window_bounds = array<i64: 128, 128>}]} {
    %c0 = arith.constant 0 : index
    %c0_0 = arith.constant 0 : index
    %0 = vector.load %arg2[%c0, %c0_0] : memref<128x8xbf16, #tpu.memory_space<vmem>>, vector<128x8xbf16>
    %c0_1 = arith.constant 0 : index
    %c0_2 = arith.constant 0 : index
    %1 = vector.load %arg3[%c0_1, %c0_2] : memref<8x128xbf16, #tpu.memory_space<vmem>>, vector<8x128xbf16>
    %cst = arith.constant dense<0.000000e+00> : vector<128x128xf32>
    %2 = tpu.matmul %0, %1, %cst {dimension_numbers = #tpu.dot_dimension_numbers<[1], [0], [0], [1], [0, 0, 1, 1], [], []>} : vector<128x8xbf16>, vector<8x128xbf16>, vector<128x128xf32> -> vector<128x128xf32>
    %c0_3 = arith.constant 0 : index
    %c0_4 = arith.constant 0 : index
    %3 = vector.load %arg4[%c0_3, %c0_4] : memref<1x128xf32, #tpu.memory_space<vmem>>, vector<1x128xf32>
    %4 = vector.broadcast %3 : vector<1x128xf32> to vector<128x128xf32>
    %5 = arith.addf %2, %4 : vector<128x128xf32>
    %c0_5 = arith.constant 0 : index
    %c0_6 = arith.constant 0 : index
    %6 = vector.load %arg5[%c0_5, %c0_6] : memref<128x128xf32, #tpu.memory_space<vmem>>, vector<128x128xf32>
    tpu.vector_store %arg5[%c0_5, %c0_6], %5 {strides = array<i32>} : memref<128x128xf32, #tpu.memory_space<vmem>>, vector<128x128xf32>,
    return
  }
  func.func @transform_0(%arg0: i32, %arg1: i32) -> (i32, i32) {
    %c0_i32 = arith.constant 0 : i32
    %c0_i32_0 = arith.constant 0 : i32
    return %arg0, %c0_i32 : i32, i32
  }
  func.func @transform_1(%arg0: i32, %arg1: i32) -> (i32, i32) {
    %c0_i32 = arith.constant 0 : i32
    %c0_i32_0 = arith.constant 0 : i32
    return %c0_i32, %arg1 : i32, i32
  }
  func.func @transform_2(%arg0: i32, %arg1: i32) -> (i32, i32) {
    %c0_i32 = arith.constant 0 : i32
    %c0_i32_0 = arith.constant 0 : i32
    return %c0_i32, %arg1 : i32, i32
  }
  func.func @transform_3(%arg0: i32, %arg1: i32) -> (i32, i32) {
    %c0_i32 = arith.constant 0 : i32
    return %arg0, %arg1 : i32, i32
  }
}

</mosaic_0001>

<bundles_post_ra>
// kernel: vsslayer_forward.18
= control target key start
LH: loop header
LB: loop body
LE: loop exit
PB: predicated region body
PF: predicated region fallthrough
CT: control target
= control target key end

     0   :  { %vm34_vm0 = vcmask 31744   ;;  %vm323_vm1 = vcmask 1041408   ;;  %s843_s0 = inlined_call_operand.vmem [shape: f32[128,4], index: 0, kind: input, shape index: {}]   ;;  %s844_s3 = inlined_call_operand.vmem [shape: bf16[4,128], index: 3, kind: input, shape index: {}]   ;;  %s845_s1 = inlined_call_operand.vmem [shape: f32[1,4], index: 1, kind: input, shape index: {}]   ;;  %s846_s2 = inlined_call_operand.vmem [shape: f32[1,4], index: 2, kind: input, shape index: {}]   ;;  %s847_s4 = inlined_call_operand.vmem [shape: f32[128,128], index: 4, kind: output, shape index: {}]  }
   0x1   :  { %v18_v0 = vld [vmem:[%s843_s0] sm:$0xff]  ;;  %v19_v2 = vld [vmem:[%s843_s0 + $0x8] sm:$0xff]  ;;  %v20_v8 = vld [vmem:[%s843_s0 + $0x10] sm:$0xff] }
   0x2   :  { %v26_v1 = vld [vmem:[%s843_s0 + $0x40] sm:$0xff]  ;;  %v35_v3 = vsel %vm34_vm0, %v18_v0, 0.0  ;;  %v27_v5 = vld [vmem:[%s843_s0 + $0x48] sm:$0xff]  ;;  %v38_v6 = vsel %vm34_vm0, %v19_v2, 0.0  ;;  %v21_v9 = vld [vmem:[%s843_s0 + $0x18] sm:$0xff]  ;;  %v41_v10 = vsel %vm34_vm0, %v20_v8, 0.0 }
   0x3   :  { %v59_v4 = vsel %vm34_vm0, %v26_v1, 0.0  ;;  %36 = vadd.xlane.f32.xlu0 %v35_v3  ;;  %v62_v7 = vsel %vm34_vm0, %v27_v5, 0.0  ;;  %v44_v11 = vsel %vm34_vm0, %v21_v9, 0.0  ;;  %v569_v12 = vld [vmem:[%s843_s0 + $0x50] sm:$0xff]  ;;  %v574_v13 = vld [vmem:[%s843_s0 + $0x58] sm:$0xff]  ;;  %v583_v16 = vld [vmem:[%s843_s0 + $0x20] sm:$0xff] }
   0x4   :  { %60 = vadd.xlane.f32.xlu1 %v59_v4  ;;  %v65_v14 = vsel %vm34_vm0, %v569_v12, 0.0  ;;  %v68_v15 = vsel %vm34_vm0, %v574_v13, 0.0  ;;  %v588_v17 = vld [vmem:[%s843_s0 + $0x28] sm:$0xff]  ;;  %v47_v18 = vsel %vm34_vm0, %v583_v16, 0.0  ;;  %v597_v20 = vld [vmem:[%s843_s0 + $0x60] sm:$0xff]  ;;  %v611_v24 = vld [vmem:[%s843_s0 + $0x30] sm:$0xff] }
   0x5   :  { %v50_v19 = vsel %vm34_vm0, %v588_v17, 0.0  ;;  %v602_v21 = vld [vmem:[%s843_s0 + $0x68] sm:$0xff]  ;;  %v71_v22 = vsel %vm34_vm0, %v597_v20, 0.0  ;;  %v616_v25 = vld [vmem:[%s843_s0 + $0x38] sm:$0xff]  ;;  %v53_v26 = vsel %vm34_vm0, %v611_v24, 0.0  ;;  %v625_v28 = vld [vmem:[%s843_s0 + $0x70] sm:$0xff] }
   0x6   :  { %v74_v23 = vsel %vm34_vm0, %v602_v21, 0.0  ;;  %v56_v27 = vsel %vm34_vm0, %v616_v25, 0.0  ;;  %v630_v29 = vld [vmem:[%s843_s0 + $0x78] sm:$0xff]  ;;  %v77_v30 = vsel %vm34_vm0, %v625_v28, 0.0 }
   0x7   :  { %39 = vadd.xlane.f32.xlu0 %v38_v6  ;;  %v80_v31 = vsel %vm34_vm0, %v630_v29, 0.0 }
   0x8   :  { %63 = vadd.xlane.f32.xlu1 %v62_v7 }
   0xb   :  { %42 = vadd.xlane.f32.xlu0 %v41_v10 }
   0xc   :  { %45 = vadd.xlane.f32.xlu1 %v44_v11 }
   0xf   :  { %66 = vadd.xlane.f32.xlu0 %v65_v14 }
  0x10   :  { %69 = vadd.xlane.f32.xlu1 %v68_v15 }
  0x13   :  { %48 = vadd.xlane.f32.xlu0 %v47_v18 }
  0x14   :  { %51 = vadd.xlane.f32.xlu1 %v50_v19 }
  0x17   :  { %72 = vadd.xlane.f32.xlu0 %v71_v22 }
  0x18   :  { %75 = vadd.xlane.f32.xlu1 %v74_v23 }
  0x1b   :  { %54 = vadd.xlane.f32.xlu0 %v53_v26 }
  0x1c   :  { %57 = vadd.xlane.f32.xlu1 %v56_v27 }
  0x1f   :  { %78 = vadd.xlane.f32.xlu0 %v77_v30 }
  0x20   :  { %81 = vadd.xlane.f32.xlu1 %v80_v31 }
  0x90   :  { %v37_v32 = vpop.xlane.xlu0 %36 }
  0x91   :  { %v61_v33 = vpop.xlane.xlu1 %60  ;;  %v84_v34 = vmul.f32 0.25, %v37_v32 }
  0x92   :  { %v92_v35 = vmul.f32 0.25, %v61_v33 }
  0x93   :  { %v636_v36 = vsub.f32 %v18_v0, %v84_v34 }
  0x94   :  { %v638_v37 = vsub.f32 %v26_v1, %v92_v35  ;;  %v40_v38 = vpop.xlane.xlu0 %39 }
  0x95   :  { %v64_v39 = vpop.xlane.xlu1 %63  ;;  %v85_v40 = vmul.f32 0.25, %v40_v38  ;;  %v116_v42 = vmul.f32 %v636_v36, %v636_v36 }
  0x96   :  { %v93_v41 = vmul.f32 0.25, %v64_v39  ;;  %v124_v43 = vmul.f32 %v638_v37, %v638_v37 }
  0x97   :  { %v644_v44 = vsub.f32 %v19_v2, %v85_v40  ;;  %v132_v46 = vsel %vm34_vm0, %v116_v42, 0.0 }
  0x98   :  { %v646_v45 = vsub.f32 %v27_v5, %v93_v41  ;;  %133 = vadd.xlane.f32.xlu0 %v132_v46  ;;  %v43_v47 = vpop.xlane.xlu0 %42  ;;  %v156_v49 = vsel %vm34_vm0, %v124_v43, 0.0 }
  0x99   :  { %v46_v48 = vpop.xlane.xlu1 %45  ;;  %v86_v50 = vmul.f32 0.25, %v43_v47  ;;  %v117_v52 = vmul.f32 %v644_v44, %v644_v44 }
  0x9a   :  { %v87_v51 = vmul.f32 0.25, %v46_v48  ;;  %v125_v53 = vmul.f32 %v646_v45, %v646_v45 }
  0x9b   :  { %v654_v54 = vsub.f32 %v20_v8, %v86_v50  ;;  %v135_v56 = vsel %vm34_vm0, %v117_v52, 0.0 }
  0x9c   :  { %v656_v55 = vsub.f32 %v21_v9, %v87_v51  ;;  %157 = vadd.xlane.f32.xlu0 %v156_v49  ;;  %136 = vadd.xlane.f32.xlu1 %v135_v56  ;;  %v67_v57 = vpop.xlane.xlu0 %66  ;;  %v159_v59 = vsel %vm34_vm0, %v125_v53, 0.0 }
  0x9d   :  { %v70_v58 = vpop.xlane.xlu1 %69  ;;  %v94_v60 = vmul.f32 0.25, %v67_v57  ;;  %v118_v62 = vmul.f32 %v654_v54, %v654_v54 }
  0x9e   :  { %v95_v61 = vmul.f32 0.25, %v70_v58  ;;  %v119_v63 = vmul.f32 %v656_v55, %v656_v55 }
  0x9f   :  { %v665_v0 = vsub.f32 %v569_v12, %v94_v60  ;;  %v138_v2 = vsel %vm34_vm0, %v118_v62, 0.0 }
  0xa0   :  { %v668_v1 = vsub.f32 %v574_v13, %v95_v61  ;;  %160 = vadd.xlane.f32.xlu1 %v159_v59  ;;  %139 = vadd.xlane.f32.xlu0 %v138_v2  ;;  %v49_v3 = vpop.xlane.xlu0 %48  ;;  %v141_v5 = vsel %vm34_vm0, %v119_v63, 0.0 }
  0xa1   :  { %v52_v4 = vpop.xlane.xlu1 %51  ;;  %v88_v6 = vmul.f32 0.25, %v49_v3  ;;  %v126_v8 = vmul.f32 %v665_v0, %v665_v0 }
  0xa2   :  { %v89_v7 = vmul.f32 0.25, %v52_v4  ;;  %v127_v9 = vmul.f32 %v668_v1, %v668_v1 }
  0xa3   :  { %v677_v10 = vsub.f32 %v583_v16, %v88_v6  ;;  %v162_v12 = vsel %vm34_vm0, %v126_v8, 0.0 }
  0xa4   :  { %v680_v11 = vsub.f32 %v588_v17, %v89_v7  ;;  %142 = vadd.xlane.f32.xlu1 %v141_v5  ;;  %163 = vadd.xlane.f32.xlu0 %v162_v12  ;;  %v73_v13 = vpop.xlane.xlu0 %72  ;;  %v165_v15 = vsel %vm34_vm0, %v127_v9, 0.0 }
  0xa5   :  { %v76_v14 = vpop.xlane.xlu1 %75  ;;  %v96_v18 = vmul.f32 0.25, %v73_v13  ;;  %v120_v22 = vmul.f32 %v677_v10, %v677_v10 }
  0xa6   :  { %v97_v19 = vmul.f32 0.25, %v76_v14  ;;  %v121_v16 = vmul.f32 %v680_v11, %v680_v11 }
  0xa7   :  { %v689_v23 = vsub.f32 %v597_v20, %v96_v18  ;;  %v144_v26 = vsel %vm34_vm0, %v120_v22, 0.0 }
  0xa8   :  { %v692_v17 = vsub.f32 %v602_v21, %v97_v19  ;;  %166 = vadd.xlane.f32.xlu1 %v165_v15  ;;  %145 = vadd.xlane.f32.xlu0 %v144_v26  ;;  %v55_v27 = vpop.xlane.xlu0 %54  ;;  %v147_v31 = vsel %vm34_vm0, %v121_v16, 0.0 }
  0xa9   :  { %v58_v30 = vpop.xlane.xlu1 %57  ;;  %v90_v32 = vmul.f32 0.25, %v55_v27  ;;  %v128_v34 = vmul.f32 %v689_v23, %v689_v23 }
  0xaa   :  { %v91_v33 = vmul.f32 0.25, %v58_v30  ;;  %v129_v20 = vmul.f32 %v692_v17, %v692_v17 }
  0xab   :  { %v701_v35 = vsub.f32 %v611_v24, %v90_v32  ;;  %v168_v38 = vsel %vm34_vm0, %v128_v34, 0.0 }
  0xac   :  { %v704_v21 = vsub.f32 %v616_v25, %v91_v33  ;;  %148 = vadd.xlane.f32.xlu1 %v147_v31  ;;  %169 = vadd.xlane.f32.xlu0 %v168_v38  ;;  %v79_v39 = vpop.xlane.xlu0 %78  ;;  %v171_v41 = vsel %vm34_vm0, %v129_v20, 0.0  ;;  %v733_v31 = vld [vmem:[%s845_s1] ss:$0 sm:$0xff] }
  0xad   :  { %v82_v40 = vpop.xlane.xlu1 %81  ;;  %v98_v42 = vmul.f32 0.25, %v79_v39  ;;  %v122_v46 = vmul.f32 %v701_v35, %v701_v35 }
  0xae   :  { %v99_v43 = vmul.f32 0.25, %v82_v40  ;;  %v123_v24 = vmul.f32 %v704_v21, %v704_v21 }
  0xaf   :  { %v713_v47 = vsub.f32 %v625_v28, %v98_v42  ;;  %v150_v48 = vsel %vm34_vm0, %v122_v46, 0.0 }
  0xb0   :  { %v716_v25 = vsub.f32 %v630_v29, %v99_v43  ;;  %172 = vadd.xlane.f32.xlu1 %v171_v41  ;;  %151 = vadd.xlane.f32.xlu0 %v150_v48  ;;  %v153_v49 = vsel %vm34_vm0, %v123_v24, 0.0  ;;  %v298_v29 = vld [vmem:[%s844_s3] sm:$0x3] }
  0xb1   :  { %v130_v50 = vmul.f32 %v713_v47, %v713_v47  ;;  %483 = vmatprep.subr.msk.bf16.mxu0 %vm323_vm1, %v298_v29  ;;  %484 = vmatprep.subr.msk.bf16.mxu1 %vm323_vm1, %v298_v29  ;;  %v325_v53 = vsel %vm323_vm1, %v298_v29, 0  ;;  %v740_v43 = vld [vmem:[%s846_s2] ss:$0 sm:$0xff] }
  0xb2   :  { %v131_v51 = vmul.f32 %v716_v25, %v716_v25  ;;  %464 = vmatpush3.bf16.msra.mxu0 %v325_v53  ;;  %482 = vmatpush3.bf16.msra.mxu1 %v325_v53 }
  0xb3   :  { %v174_v52 = vsel %vm34_vm0, %v130_v50, 0.0 }
  0xb4   :  { %154 = vadd.xlane.f32.xlu1 %v153_v49  ;;  %175 = vadd.xlane.f32.xlu0 %v174_v52  ;;  %v177_v28 = vsel %vm34_vm0, %v131_v51, 0.0 }
  0xb8   :  { %178 = vadd.xlane.f32.xlu1 %v177_v28 }
 0x125   :  { %v134_v56 = vpop.xlane.xlu0 %133 }
 0x126   :  { %v180_v57 = vmul.f32 0.25, %v134_v56 }
 0x128   :  { %v196_v58 = vadd.f32 1e-06, %v180_v57 }
 0x129   :  { %v137_v59 = vpop.xlane.xlu1 %136  ;;  %v158_v60 = vpop.xlane.xlu0 %157 }
 0x12a   :  { %485 = vrsqrt.f32 %v196_v58  ;;  %v181_v61 = vmul.f32 0.25, %v137_v59  ;;  %v188_v62 = vmul.f32 0.25, %v158_v60 }
 0x12c   :  { %v197_v63 = vadd.f32 1e-06, %v181_v61  ;;  %v204_v2 = vadd.f32 1e-06, %v188_v62 }
 0x12d   :  { %v161_v3 = vpop.xlane.xlu1 %160  ;;  %v140_v4 = vpop.xlane.xlu0 %139 }
 0x12e   :  { %487 = vrsqrt.f32 %v197_v63  ;;  %v189_v5 = vmul.f32 0.25, %v161_v3  ;;  %v182_v6 = vmul.f32 0.25, %v140_v4 }
 0x12f   :  { %489 = vrsqrt.f32 %v204_v2 }
 0x130   :  { %v205_v7 = vadd.f32 1e-06, %v189_v5  ;;  %v198_v8 = vadd.f32 1e-06, %v182_v6 }
 0x131   :  { %v143_v9 = vpop.xlane.xlu1 %142  ;;  %v164_v12 = vpop.xlane.xlu0 %163 }
 0x132   :  { %491 = vrsqrt.f32 %v205_v7  ;;  %v183_v13 = vmul.f32 0.25, %v143_v9  ;;  %v190_v14 = vmul.f32 0.25, %v164_v12 }
 0x133   :  { %493 = vrsqrt.f32 %v198_v8 }
 0x134   :  { %v486_v15 = vpop.eup %485  ;;  %v199_v18 = vadd.f32 1e-06, %v183_v13  ;;  %v206_v19 = vadd.f32 1e-06, %v190_v14 }
 0x135   :  { %v167_v22 = vpop.xlane.xlu1 %166  ;;  %v146_v16 = vpop.xlane.xlu0 %145  ;;  %v228_v26 = vmul.f32 %v486_v15, %v636_v36 }
 0x136   :  { %495 = vrsqrt.f32 %v199_v18  ;;  %v191_v27 = vmul.f32 0.25, %v167_v22  ;;  %v184_v30 = vmul.f32 0.25, %v146_v16 }
 0x137   :  { %497 = vrsqrt.f32 %v206_v19  ;;  %v251_v41 = vmul.f32 %v733_v31, %v228_v26 }
 0x138   :  { %v488_v32 = vpop.eup %487  ;;  %v207_v33 = vadd.f32 1e-06, %v191_v27  ;;  %v200_v34 = vadd.f32 1e-06, %v184_v30 }
 0x139   :  { %v490_v20 = vpop.eup %489  ;;  %v149_v38 = vpop.xlane.xlu1 %148  ;;  %v229_v40 = vmul.f32 %v488_v32, %v644_v44  ;;  %v274_v28 = vadd.f32 %v740_v43, %v251_v41 }
 0x13a   :  { %v170_v39 = vpop.xlane.xlu0 %169  ;;  %499 = vrsqrt.f32 %v207_v33  ;;  %v185_v36 = vmul.f32 0.25, %v149_v38  ;;  %v236_v46 = vmul.f32 %v490_v20, %v638_v37 }
 0x13b   :  { %v192_v42 = vmul.f32 0.25, %v170_v39  ;;  %501 = vrsqrt.f32 %v200_v34  ;;  %v252_v24 = vmul.f32 %v733_v31, %v229_v40 }
 0x13c   :  { %v492_v48 = vpop.eup %491  ;;  %v201_v49 = vadd.f32 1e-06, %v185_v36  ;;  %v259_v56 = vmul.f32 %v733_v31, %v236_v46 }
 0x13d   :  { %v208_v50 = vadd.f32 1e-06, %v192_v42  ;;  %v494_v51 = vpop.eup %493  ;;  %v173_v44 = vpop.xlane.xlu1 %172  ;;  %v275_v29 = vadd.f32 %v740_v43, %v252_v24  ;;  %v237_v53 = vmul.f32 %v492_v48, %v646_v45 }
 0x13e   :  { %v152_v52 = vpop.xlane.xlu0 %151  ;;  %v230_v57 = vmul.f32 %v494_v51, %v654_v54  ;;  %503 = vrsqrt.f32 %v201_v49  ;;  %v193_v37 = vmul.f32 0.25, %v173_v44  ;;  %v282_v5 = vadd.f32 %v740_v43, %v259_v56 }
 0x13f   :  { %v186_v58 = vmul.f32 0.25, %v152_v52  ;;  %505 = vrsqrt.f32 %v208_v50  ;;  %v290_v59 = vpack.c.bf16 %v275_v29, %v274_v28  ;;  %v260_v60 = vmul.f32 %v733_v31, %v237_v53 }
 0x140   :  { %v496_v61 = vpop.eup %495  ;;  %v209_v62 = vadd.f32 1e-06, %v193_v37  ;;  %v253_v6 = vmul.f32 %v733_v31, %v230_v57 }
 0x141   :  { %v202_v63 = vadd.f32 1e-06, %v186_v58  ;;  %v498_v2 = vpop.eup %497  ;;  %v231_v3 = vmul.f32 %v496_v61, %v656_v55  ;;  %v155_v4 = vpop.xlane.xlu1 %154  ;;  %465 = vmatprep.mubr.msk.bf16.mxu0 %vm34_vm0, %v290_v59  ;;  %v283_v54 = vadd.f32 %v740_v43, %v260_v60 }
 0x142   :  { %v176_v45 = vpop.xlane.xlu0 %175  ;;  %v238_v7 = vmul.f32 %v498_v2, %v665_v0  ;;  %507 = vrsqrt.f32 %v209_v62  ;;  %v187_v8 = vmul.f32 0.25, %v155_v4  ;;  %v276_v16 = vadd.f32 %v740_v43, %v253_v6 }
 0x143   :  { %v194_v9 = vmul.f32 0.25, %v176_v45  ;;  %509 = vrsqrt.f32 %v202_v63  ;;  %v294_v12 = vpack.c.bf16 %v283_v54, %v282_v5  ;;  %v254_v13 = vmul.f32 %v733_v31, %v231_v3 }
 0x144   :  { %v500_v55 = vpop.eup %499  ;;  %v203_v14 = vadd.f32 1e-06, %v187_v8  ;;  %v261_v26 = vmul.f32 %v733_v31, %v238_v7 }
 0x145   :  { %v210_v15 = vadd.f32 1e-06, %v194_v9  ;;  %v502_v18 = vpop.eup %501  ;;  %v239_v19 = vmul.f32 %v500_v55, %v668_v1  ;;  %v179_v22 = vpop.xlane.xlu1 %178  ;;  %473 = vmatprep.mubr.msk.bf16.mxu1 %vm34_vm0, %v294_v12  ;;  %v277_v0 = vadd.f32 %v740_v43, %v254_v13 }
 0x146   :  { %v232_v27 = vmul.f32 %v502_v18, %v677_v10  ;;  %511 = vrsqrt.f32 %v203_v14  ;;  %v195_v30 = vmul.f32 0.25, %v179_v22  ;;  %v284_v39 = vadd.f32 %v740_v43, %v261_v26 }
 0x147   :  { %513 = vrsqrt.f32 %v210_v15  ;;  %v291_v32 = vpack.c.bf16 %v277_v0, %v276_v16  ;;  %v262_v33 = vmul.f32 %v733_v31, %v239_v19 }
 0x148   :  { %v504_v34 = vpop.eup %503  ;;  %v211_v20 = vadd.f32 1e-06, %v195_v30  ;;  %v255_v41 = vmul.f32 %v733_v31, %v232_v27 }
 0x149   :  { %v506_v1 = vpop.eup %505  ;;  %v233_v38 = vmul.f32 %v504_v34, %v680_v11  ;;  %466 = vmatmul.mubr.msk.bf16.vlgmr.msra.gmra.mrb[0].mxu0 %vm34_vm0, %v291_v32  ;;  %v285_v40 = vadd.f32 %v740_v43, %v262_v33 }
 0x14a   :  { %v240_v10 = vmul.f32 %v506_v1, %v689_v23  ;;  %515 = vrsqrt.f32 %v211_v20  ;;  %v278_v11 = vadd.f32 %v740_v43, %v255_v41 }
 0x14b   :  { %v295_v36 = vpack.c.bf16 %v285_v40, %v284_v39  ;;  %v256_v42 = vmul.f32 %v733_v31, %v233_v38 }
 0x14c   :  { %v508_v46 = vpop.eup %507  ;;  %v263_v50 = vmul.f32 %v733_v31, %v240_v10 }
 0x14d   :  { %v510_v24 = vpop.eup %509  ;;  %v241_v48 = vmul.f32 %v508_v46, %v692_v17  ;;  %474 = vmatmul.mubr.msk.bf16.vlgmr.msra.gmra.mrb[0].mxu1 %vm34_vm0, %v295_v36  ;;  %v279_v49 = vadd.f32 %v740_v43, %v256_v42 }
 0x14e   :  { %v234_v51 = vmul.f32 %v510_v24, %v701_v35  ;;  %v286_v17 = vadd.f32 %v740_v43, %v263_v50 }
 0x14f   :  { %v292_v44 = vpack.c.bf16 %v279_v49, %v278_v11  ;;  %v264_v23 = vmul.f32 %v733_v31, %v241_v48 }
 0x150   :  { %v512_v52 = vpop.eup %511  ;;  %v257_v56 = vmul.f32 %v733_v31, %v234_v51 }
 0x151   :  { %v514_v28 = vpop.eup %513  ;;  %v235_v29 = vmul.f32 %v512_v52, %v704_v21  ;;  %469 = vmatprep.mubr.msk.bf16.mxu0 %vm34_vm0, %v292_v44  ;;  %v287_v53 = vadd.f32 %v740_v43, %v264_v23 }
 0x152   :  { %v242_v57 = vmul.f32 %v514_v28, %v713_v47  ;;  %v280_v21 = vadd.f32 %v740_v43, %v257_v56 }
 0x153   :  { %v296_v37 = vpack.c.bf16 %v287_v53, %v286_v17  ;;  %v258_v35 = vmul.f32 %v733_v31, %v235_v29 }
 0x154   :  { %v516_v58 = vpop.eup %515  ;;  %v265_v61 = vmul.f32 %v733_v31, %v242_v57 }
 0x155   :  { %v243_v59 = vmul.f32 %v516_v58, %v716_v25  ;;  %477 = vmatprep.mubr.msk.bf16.mxu1 %vm34_vm0, %v296_v37  ;;  %v281_v60 = vadd.f32 %v740_v43, %v258_v35 }
 0x156   :  { %v288_v47 = vadd.f32 %v740_v43, %v265_v61 }
 0x157   :  { %v293_v62 = vpack.c.bf16 %v281_v60, %v280_v21  ;;  %v266_v63 = vmul.f32 %v733_v31, %v243_v59 }
 0x159   :  { %470 = vmatmul.mubr.msk.bf16.gmra.mrb[4].mxu0 %vm34_vm0, %v293_v62  ;;  %v289_v2 = vadd.f32 %v740_v43, %v266_v63 }
 0x15b   :  { %v297_v3 = vpack.c.bf16 %v289_v2, %v288_v47 }
 0x15d   :  { %478 = vmatmul.mubr.msk.bf16.gmra.mrb[4].mxu1 %vm34_vm0, %v297_v3 }
 0x21c   :  { %v467_v25 = vpop.f32.mrb[0].mxu0 }
 0x21d   :  { %426 = vst [vmem:[%s847_s4 + $0x10] sm:$0xff] %v467_v25  ;;  %v361_v4 = vpop.f32.mrb[1].mxu0 }
 0x21e   :  { %424 = vst [vmem:[%s847_s4] sm:$0xff] %v361_v4  ;;  %v468_v31 = vpop.f32.mrb[2].mxu0 }
 0x21f   :  { %427 = vst [vmem:[%s847_s4 + $0x18] sm:$0xff] %v468_v31  ;;  %v364_v45 = vpop.f32.mrb[3].mxu0 }
 0x220   :  { %425 = vst [vmem:[%s847_s4 + $0x8] sm:$0xff] %v364_v45  ;;  %v475_v43 = vpop.f32.mrb[0].mxu1 }
 0x221   :  { %434 = vst [vmem:[%s847_s4 + $0x50] sm:$0xff] %v475_v43  ;;  %v393_v5 = vpop.f32.mrb[1].mxu1 }
 0x222   :  { %432 = vst [vmem:[%s847_s4 + $0x40] sm:$0xff] %v393_v5  ;;  %v476_v54 = vpop.f32.mrb[2].mxu1 }
 0x223   :  { %435 = vst [vmem:[%s847_s4 + $0x58] sm:$0xff] %v476_v54  ;;  %v396_v6 = vpop.f32.mrb[3].mxu1 }
 0x224   :  { %433 = vst [vmem:[%s847_s4 + $0x48] sm:$0xff] %v396_v6 }
 0x22c   :  { %v471_v7 = vpop.f32.mrb[4].mxu0 }
 0x22d   :  { %430 = vst [vmem:[%s847_s4 + $0x30] sm:$0xff] %v471_v7  ;;  %v377_v8 = vpop.f32.mrb[5].mxu0 }
 0x22e   :  { %428 = vst [vmem:[%s847_s4 + $0x20] sm:$0xff] %v377_v8  ;;  %v472_v9 = vpop.f32.mrb[6].mxu0 }
 0x22f   :  { %431 = vst [vmem:[%s847_s4 + $0x38] sm:$0xff] %v472_v9  ;;  %v380_v12 = vpop.f32.mrb[7].mxu0 }
 0x230   :  { %429 = vst [vmem:[%s847_s4 + $0x28] sm:$0xff] %v380_v12  ;;  %v479_v13 = vpop.f32.mrb[4].mxu1 }
 0x231   :  { %438 = vst [vmem:[%s847_s4 + $0x70] sm:$0xff] %v479_v13  ;;  %v409_v55 = vpop.f32.mrb[5].mxu1 }
 0x232   :  { %436 = vst [vmem:[%s847_s4 + $0x60] sm:$0xff] %v409_v55  ;;  %v480_v14 = vpop.f32.mrb[6].mxu1 }
 0x233   :  { %439 = vst [vmem:[%s847_s4 + $0x78] sm:$0xff] %v480_v14  ;;  %v412_v15 = vpop.f32.mrb[7].mxu1 }
 0x234   :  { %437 = vst [vmem:[%s847_s4 + $0x68] sm:$0xff] %v412_v15 }

// kernel: vsslayer_forward.19
= control target key start
LH: loop header
LB: loop body
LE: loop exit
PB: predicated region body
PF: predicated region fallthrough
CT: control target
= control target key end

     0   :  { %s1199_s18 = smov 0   ;;  %s1201_s19 = smov 0   ;;  %s1632_s0 = inlined_call_operand.vmem [shape: f32[2,10,10,8], index: 0, kind: input, shape index: {}]   ;;  %s1633_s1 = inlined_call_operand.vmem [shape: f32[9,8], index: 1, kind: input, shape index: {}]   ;;  %s1634_s2 = inlined_call_operand.vmem [shape: f32[1,8], index: 2, kind: input, shape index: {}]   ;;  %s1635_s3 = inlined_call_operand.vmem [shape: f32[1,8], index: 3, kind: input, shape index: {}]   ;;  %s1636_s4 = inlined_call_operand.vmem [shape: f32[1,8], index: 4, kind: input, shape index: {}]   ;;  %s1637_s5 = inlined_call_operand.vmem [shape: f32[2,8,8,8], index: 5, kind: output, shape index: {}]  }
   0x1   :  { %s1203_s20 = smov 0  }
   0x2 LB: > { %s27_s21 = sadd.s32 1, %s1163_s19  ;;  %p1037_p0 = scmp.ge.s32.totalorder %s1167_s20, 1  ;;  %s1167_s20 = sphi %s1203_s20, %s15_s20   ;;  %s1163_s19 = sphi %s1201_s19, %s1639_s19   ;;  %s1159_s18 = sphi %s1199_s18, %s1638_s18  }
   0x3   : > { %p29_p1 = scmp.ge.s32.totalorder %s27_s21, 2  ;;  %p201_p2 = scmp.lt.s32.totalorder %s1167_s20, 3 }
   0x5   : > { %s1641_s21 = smov (%p29_p1, %s27_s21), 0  ;;  %p202_p3 = pnand %p1037_p0, %p201_p2 }
   0x6   : > { %p233_p4 = scmp.lt.s32.totalorder (!%p202_p3), %s1159_s18, 1  ;;  %v1223_v0 = vld [vmem:[%s1633_s1] ss:$0 sm:$0xff] (!%p202_p3)  ;;  %v1228_v1 = vld [vmem:[%s1633_s1 + $0x1] ss:$0 sm:$0xff] (!%p202_p3)  ;;  %vm325_vm0 = vcmask (!%p202_p3), 1046528  }
   0x7   : > { %205 = sbr.rel (%p202_p3) target bundleno = 159 (0x9f), region = 40  ;;  %v1233_v2 = vld [vmem:[%s1633_s1 + $0x2] ss:$0 sm:$0xff] (!%p202_p3)  ;;  %v1243_v3 = vld [vmem:[%s1633_s1 + $0x3] ss:$0 sm:$0xff] (!%p202_p3)  ;;  %vm403_vm1 = vcmask (!%p202_p3), 1045504  }
   0x8   : > { %v1248_v4 = vld [vmem:[%s1633_s1 + $0x4] ss:$0 sm:$0xff] (!%p202_p3)  ;;  %v1255_v7 = vld [vmem:[%s1633_s1 + $0x5] ss:$0 sm:$0xff] (!%p202_p3)  ;;  %v1270_v18 = vld [vmem:[%s1633_s1 + $0x6] ss:$0 sm:$0xff] (!%p202_p3) }
   0x9   : > { %v1275_v19 = vld [vmem:[%s1633_s1 + $0x7] ss:$0 sm:$0xff] (!%p202_p3)  ;;  %v1281_v24 = vld [vmem:[%s1633_s1 + $0x8] ss:$0 sm:$0xff] (!%p202_p3)  ;;  %vm933_vm2 = vcmask (!%p202_p3), 64512  }
   0xe   : > { %s1643_s18 = smov (!%p233_p4, %s1159_s18), 1 }
   0xf   : > { %s1088_s22 = smul.u32 160, %s1643_s18  ;;  %s1087_s27 = sshll.u32 %s1643_s18, 6 }
  0x10   : > { %s1478_s7 = scalar_lea.vmem %s1637_s5, %s1087_s27 }
  0x11   : > { %s1238_s6 = scalar_lea.vmem %s1632_s0, %s1088_s22 }
  0x12   : > { %v251_v5 = vld [vmem:[%s1238_s6] sm:$0xff]  ;;  %v252_v6 = vld [vmem:[%s1238_s6 + $0x8] sm:$0x3]  ;;  %v1044_v12 = vld [vmem:[%s1238_s6 + $0x10] sm:$0xff] }
  0x13   : > { %v272_v8 = vmul.f32 %v1223_v0, %v251_v5  ;;  %v293_v9 = vmul.f32 %v1228_v1, %v251_v5  ;;  %v294_v10 = vmul.f32 %v1228_v1, %v252_v6  ;;  %v371_v11 = vmul.f32 %v1233_v2, %v251_v5  ;;  %v1045_v13 = vld [vmem:[%s1238_s6 + $0x18] sm:$0x3]  ;;  %v1285_v29 = vld [vmem:[%s1238_s6 + $0x20] sm:$0xff]  ;;  %v1064_v30 = vld [vmem:[%s1238_s6 + $0x28] sm:$0x3] }
  0x14   : > { %v372_v14 = vmul.f32 %v1233_v2, %v252_v6  ;;  %v468_v15 = vmul.f32 %v1243_v3, %v1044_v12  ;;  %v489_v16 = vmul.f32 %v1248_v4, %v1044_v12  ;;  %v490_v17 = vmul.f32 %v1248_v4, %v1045_v13  ;;  %v254_v39 = vld [vmem:[%s1238_s6 + $0x18] sm:$0x3]  ;;  %v1047_v56 = vld [vmem:[%s1238_s6 + $0x28] sm:$0x3] }
  0x15   : > { %v326_v20 = vrot.slane %v293_v9, 1  ;;  %v327_v21 = vrot.slane %v294_v10, 1  ;;  %v404_v22 = vrot.slane %v371_v11, 2  ;;  %v566_v23 = vmul.f32 %v1255_v7, %v1044_v12  ;;  %v1066_v11 = vld [vmem:[%s1238_s6 + $0x38] sm:$0x3] }
  0x16   : > { %v405_v25 = vrot.slane %v372_v14, 2  ;;  %v521_v26 = vrot.slane %v489_v16, 1  ;;  %v522_v27 = vrot.slane %v490_v17, 1  ;;  %v567_v28 = vmul.f32 %v1255_v7, %v1045_v13  ;;  %v1321_v16 = vld [vmem:[%s1238_s6 + $0x30] sm:$0xff] }
  0x17   : > { %v328_v31 = vsel %vm325_vm0, %v326_v20, %v327_v21  ;;  %v598_v32 = vrot.slane %v566_v23, 2  ;;  %v662_v33 = vmul.f32 %v1270_v18, %v1285_v29  ;;  %v683_v34 = vmul.f32 %v1275_v19, %v1285_v29 }
  0x18   : > { %v358_v35 = vadd.f32 %v328_v31, %v272_v8  ;;  %v406_v36 = vsel %vm403_vm1, %v404_v22, %v405_v25  ;;  %v523_v37 = vsel %vm325_vm0, %v521_v26, %v522_v27  ;;  %v599_v38 = vrot.slane %v567_v28, 2 }
  0x19   : > { %v684_v40 = vmul.f32 %v1275_v19, %v1064_v30  ;;  %v715_v41 = vrot.slane %v683_v34, 1  ;;  %v760_v42 = vmul.f32 %v1281_v24, %v1285_v29  ;;  %v761_v43 = vmul.f32 %v1281_v24, %v1064_v30  ;;  %v256_v34 = vld [vmem:[%s1238_s6 + $0x28] sm:$0x3] }
  0x1a   : > { %v436_v44 = vadd.f32 %v406_v36, %v358_v35  ;;  %v600_v45 = vsel %vm403_vm1, %v598_v32, %v599_v38  ;;  %v273_v46 = vmul.f32 %v1044_v12, %v1223_v0  ;;  %v295_v47 = vmul.f32 %v1044_v12, %v1228_v1  ;;  %v1337_v38 = vld [vmem:[%s1634_s2] ss:$0 sm:$0xff] }
  0x1b   : > { %v716_v48 = vrot.slane %v684_v40, 1  ;;  %v792_v49 = vrot.slane %v760_v42, 2  ;;  %v793_v50 = vrot.slane %v761_v43, 2  ;;  %v296_v51 = vmul.f32 %v1228_v1, %v254_v39 }
  0x1c   : > { %v476_v52 = vadd.f32 %v468_v15, %v436_v44  ;;  %v329_v53 = vrot.slane %v295_v47, 1  ;;  %v373_v54 = vmul.f32 %v1044_v12, %v1233_v2  ;;  %v374_v55 = vmul.f32 %v1233_v2, %v254_v39  ;;  %v1049_v47 = vld [vmem:[%s1238_s6 + $0x38] sm:$0x3] }
  0x1d   : > { %v717_v57 = vsel %vm325_vm0, %v715_v41, %v716_v48  ;;  %v794_v58 = vsel %vm403_vm1, %v792_v49, %v793_v50  ;;  %v330_v59 = vrot.slane %v296_v51, 1  ;;  %v469_v60 = vmul.f32 %v1285_v29, %v1243_v3 }
  0x1e   : > { %v553_v61 = vadd.f32 %v523_v37, %v476_v52  ;;  %v407_v62 = vrot.slane %v373_v54, 2  ;;  %v408_v63 = vrot.slane %v374_v55, 2  ;;  %v491_v5 = vmul.f32 %v1285_v29, %v1248_v4 }
  0x1f   : > { %v331_v6 = vsel %vm325_vm0, %v329_v53, %v330_v59  ;;  %v492_v8 = vmul.f32 %v1248_v4, %v1047_v56  ;;  %v568_v9 = vmul.f32 %v1285_v29, %v1255_v7  ;;  %v569_v10 = vmul.f32 %v1255_v7, %v1047_v56 }
  0x20   : > { %v630_v12 = vadd.f32 %v600_v45, %v553_v61  ;;  %v359_v13 = vadd.f32 %v331_v6, %v273_v46  ;;  %v409_v14 = vsel %vm403_vm1, %v407_v62, %v408_v63  ;;  %v524_v15 = vrot.slane %v491_v5, 1 }
  0x21   : > { %v525_v17 = vrot.slane %v492_v8, 1  ;;  %v601_v20 = vrot.slane %v568_v9, 2  ;;  %v602_v21 = vrot.slane %v569_v10, 2  ;;  %v663_v22 = vmul.f32 %v1270_v18, %v1321_v16  ;;  %v1068_v9 = vld [vmem:[%s1238_s6 + $0x48] sm:$0x3] }
  0x22   : > { %v670_v23 = vadd.f32 %v662_v33, %v630_v12  ;;  %v437_v25 = vadd.f32 %v409_v14, %v359_v13  ;;  %v685_v26 = vmul.f32 %v1275_v19, %v1321_v16  ;;  %v686_v27 = vmul.f32 %v1275_v19, %v1066_v11  ;;  %v1366_v14 = vld [vmem:[%s1238_s6 + $0x40] sm:$0xff] }
  0x23   : > { %v526_v28 = vsel %vm325_vm0, %v524_v15, %v525_v17  ;;  %v603_v30 = vsel %vm403_vm1, %v601_v20, %v602_v21  ;;  %v762_v31 = vmul.f32 %v1281_v24, %v1321_v16  ;;  %v763_v32 = vmul.f32 %v1281_v24, %v1066_v11 }
  0x24   : > { %v747_v35 = vadd.f32 %v717_v57, %v670_v23  ;;  %v477_v36 = vadd.f32 %v469_v60, %v437_v25  ;;  %v718_v33 = vrot.slane %v685_v26, 1  ;;  %v719_v37 = vrot.slane %v686_v27, 1 }
  0x25   : > { %v795_v39 = vrot.slane %v762_v31, 2  ;;  %v796_v40 = vrot.slane %v763_v32, 2  ;;  %v274_v41 = vmul.f32 %v1285_v29, %v1223_v0  ;;  %v297_v42 = vmul.f32 %v1285_v29, %v1228_v1  ;;  %v258_v31 = vld [vmem:[%s1238_s6 + $0x38] sm:$0x3] }
  0x26   : > { %v824_v43 = vadd.f32 %v794_v58, %v747_v35  ;;  %v554_v44 = vadd.f32 %v526_v28, %v477_v36  ;;  %v720_v45 = vsel %vm325_vm0, %v718_v33, %v719_v37  ;;  %v298_v46 = vmul.f32 %v1228_v1, %v256_v34 }
  0x27   : > { %v797_v48 = vsel %vm403_vm1, %v795_v39, %v796_v40  ;;  %v332_v49 = vrot.slane %v297_v42, 1  ;;  %v375_v50 = vmul.f32 %v1285_v29, %v1233_v2  ;;  %v376_v51 = vmul.f32 %v1233_v2, %v256_v34 }
  0x28   : > { %v1351_v52 = vadd.f32 %v1337_v38, %v824_v43  ;;  %v631_v53 = vadd.f32 %v603_v30, %v554_v44  ;;  %v333_v54 = vrot.slane %v298_v46, 1  ;;  %v470_v55 = vmul.f32 %v1321_v16, %v1243_v3 }
  0x29   : > { %v410_v56 = vrot.slane %v375_v50, 2  ;;  %v411_v57 = vrot.slane %v376_v51, 2  ;;  %v493_v58 = vmul.f32 %v1321_v16, %v1248_v4  ;;  %v494_v59 = vmul.f32 %v1248_v4, %v1049_v47 }
  0x2a   : > { %v847_v29 = vsub.f32 0.0, %v1351_v52  ;;  %v671_v60 = vadd.f32 %v663_v22, %v631_v53  ;;  %v334_v61 = vsel %vm325_vm0, %v332_v49, %v333_v54  ;;  %v570_v62 = vmul.f32 %v1321_v16, %v1255_v7 }
  0x2b   : > { %v360_v63 = vadd.f32 %v334_v61, %v274_v41  ;;  %v412_v5 = vsel %vm403_vm1, %v410_v56, %v411_v57  ;;  %v527_v6 = vrot.slane %v493_v58, 1  ;;  %v528_v8 = vrot.slane %v494_v59, 1 }
  0x2c   : > { %v855_v10 = vmul.f32 1.442695, %v847_v29  ;;  %v748_v11 = vadd.f32 %v720_v45, %v671_v60  ;;  %v571_v12 = vmul.f32 %v1255_v7, %v1049_v47  ;;  %v604_v13 = vrot.slane %v570_v62, 2  ;;  %v1051_v45 = vld [vmem:[%s1238_s6 + $0x48] sm:$0x3] }
  0x2d   : > { %v438_v15 = vadd.f32 %v412_v5, %v360_v63  ;;  %v529_v17 = vsel %vm325_vm0, %v527_v6, %v528_v8  ;;  %v664_v20 = vmul.f32 %v1270_v18, %v1366_v14  ;;  %v687_v21 = vmul.f32 %v1275_v19, %v1366_v14  ;;  %v1405_v5 = vld [vmem:[%s1238_s6 + $0x50] sm:$0xff]  ;;  %v1070_v6 = vld [vmem:[%s1238_s6 + $0x58] sm:$0x3] }
  0x2e   : > { %1113 = vpow2.f32 %v855_v10  ;;  %v825_v22 = vadd.f32 %v797_v48, %v748_v11  ;;  %v605_v23 = vrot.slane %v571_v12, 2  ;;  %v688_v25 = vmul.f32 %v1275_v19, %v1068_v9 }
  0x2f   : > { %v478_v26 = vadd.f32 %v470_v55, %v438_v15  ;;  %v721_v27 = vrot.slane %v687_v21, 1  ;;  %v764_v28 = vmul.f32 %v1281_v24, %v1366_v14  ;;  %v765_v30 = vmul.f32 %v1281_v24, %v1068_v9 }
  0x30   : > { %v1379_v32 = vadd.f32 %v1337_v38, %v825_v22  ;;  %v606_v34 = vsel %vm403_vm1, %v604_v13, %v605_v23  ;;  %v722_v35 = vrot.slane %v688_v25, 1  ;;  %v275_v36 = vmul.f32 %v1321_v16, %v1223_v0 }
  0x31   : > { %v555_v33 = vadd.f32 %v529_v17, %v478_v26  ;;  %v798_v37 = vrot.slane %v764_v28, 2  ;;  %v799_v39 = vrot.slane %v765_v30, 2  ;;  %v299_v40 = vmul.f32 %v1321_v16, %v1228_v1  ;;  %v260_v26 = vld [vmem:[%s1238_s6 + $0x48] sm:$0x3] }
  0x32   : > { %v848_v41 = vsub.f32 0.0, %v1379_v32  ;;  %v723_v42 = vsel %vm325_vm0, %v721_v27, %v722_v35  ;;  %v300_v43 = vmul.f32 %v1228_v1, %v258_v31  ;;  %v377_v44 = vmul.f32 %v1321_v16, %v1233_v2 }
  0x33   : > { %v632_v46 = vadd.f32 %v606_v34, %v555_v33  ;;  %v800_v47 = vsel %vm403_vm1, %v798_v37, %v799_v39  ;;  %v335_v48 = vrot.slane %v299_v40, 1  ;;  %v378_v49 = vmul.f32 %v1233_v2, %v258_v31 }
  0x34   : > { %v857_v50 = vmul.f32 1.442695, %v848_v41  ;;  %v336_v51 = vrot.slane %v300_v43, 1  ;;  %v413_v53 = vrot.slane %v377_v44, 2  ;;  %v471_v54 = vmul.f32 %v1366_v14, %v1243_v3 }
  0x35   : > { %v672_v55 = vadd.f32 %v664_v20, %v632_v46  ;;  %v414_v56 = vrot.slane %v378_v49, 2  ;;  %v495_v16 = vmul.f32 %v1366_v14, %v1248_v4  ;;  %v496_v57 = vmul.f32 %v1248_v4, %v1051_v45  ;;  %v1053_v49 = vld [vmem:[%s1238_s6 + $0x58] sm:$0x3] }
  0x36   : > { %1115 = vpow2.f32 %v857_v50  ;;  %v337_v58 = vsel %vm325_vm0, %v335_v48, %v336_v51  ;;  %v572_v59 = vmul.f32 %v1366_v14, %v1255_v7  ;;  %v573_v29 = vmul.f32 %v1255_v7, %v1051_v45 }
  0x37   : > { %v749_v60 = vadd.f32 %v723_v42, %v672_v55  ;;  %v361_v61 = vadd.f32 %v337_v58, %v275_v36  ;;  %v415_v62 = vsel %vm403_vm1, %v413_v53, %v414_v56  ;;  %v530_v63 = vrot.slane %v495_v16, 1 }
  0x38   : > { %v1114_v8 = vpop.eup %1113  ;;  %v531_v9 = vrot.slane %v496_v57, 1  ;;  %v607_v10 = vrot.slane %v572_v59, 2  ;;  %v608_v11 = vrot.slane %v573_v29, 2  ;;  %v665_v12 = vmul.f32 %v1270_v18, %v1405_v5 }
  0x39   : > { %v871_v13 = vadd.f32 1.0, %v1114_v8  ;;  %v826_v15 = vadd.f32 %v800_v47, %v749_v60  ;;  %v439_v17 = vadd.f32 %v415_v62, %v361_v61  ;;  %v689_v20 = vmul.f32 %v1275_v19, %v1405_v5 }
  0x3a   : > { %v532_v21 = vsel %vm325_vm0, %v530_v63, %v531_v9  ;;  %v609_v22 = vsel %vm403_vm1, %v607_v10, %v608_v11  ;;  %v690_v23 = vmul.f32 %v1275_v19, %v1070_v6  ;;  %v766_v25 = vmul.f32 %v1281_v24, %v1405_v5  ;;  %v1445_v63 = vld [vmem:[%s1238_s6 + $0x60] sm:$0xff] }
  0x3b   : > { %1117 = vrcp.f32 %v871_v13  ;;  %v1419_v27 = vadd.f32 %v1337_v38, %v826_v15  ;;  %v479_v28 = vadd.f32 %v471_v54, %v439_v17  ;;  %v724_v30 = vrot.slane %v689_v20, 1  ;;  %v1453_v13 = vld [vmem:[%s1635_s3] ss:$0 sm:$0xff] }
  0x3c   : > { %v725_v31 = vrot.slane %v690_v23, 1  ;;  %v767_v34 = vmul.f32 %v1281_v24, %v1070_v6  ;;  %v801_v35 = vrot.slane %v766_v25, 2  ;;  %v276_v36 = vmul.f32 %v1366_v14, %v1223_v0  ;;  %v1072_v6 = vld [vmem:[%s1238_s6 + $0x68] sm:$0x3] }
  0x3d   : > { %v849_v33 = vsub.f32 0.0, %v1419_v27  ;;  %v556_v37 = vadd.f32 %v532_v21, %v479_v28  ;;  %v301_v39 = vmul.f32 %v1366_v14, %v1228_v1  ;;  %v302_v40 = vmul.f32 %v1228_v1, %v260_v26  ;;  %v1464_v28 = vld [vmem:[%s1636_s4] ss:$0 sm:$0xff] }
  0x3e   : > { %v726_v41 = vsel %vm325_vm0, %v724_v30, %v725_v31  ;;  %v802_v42 = vrot.slane %v767_v34, 2  ;;  %v379_v43 = vmul.f32 %v1366_v14, %v1233_v2  ;;  %v380_v44 = vmul.f32 %v1233_v2, %v260_v26 }
  0x3f   : > { %v859_v45 = vmul.f32 1.442695, %v849_v33  ;;  %v633_v46 = vadd.f32 %v609_v22, %v556_v37  ;;  %v338_v47 = vrot.slane %v301_v39, 1  ;;  %v339_v48 = vrot.slane %v302_v40, 1  ;;  %v262_v39 = vld [vmem:[%s1238_s6 + $0x58] sm:$0x3] }
  0x40   : > { %v1116_v50 = vpop.eup %1115  ;;  %v803_v51 = vsel %vm403_vm1, %v801_v35, %v802_v42  ;;  %v416_v53 = vrot.slane %v379_v43, 2  ;;  %v417_v54 = vrot.slane %v380_v44, 2  ;;  %v472_v55 = vmul.f32 %v1405_v5, %v1243_v3 }
  0x41   : > { %v872_v56 = vadd.f32 1.0, %v1116_v50  ;;  %1119 = vpow2.f32 %v859_v45  ;;  %v673_v14 = vadd.f32 %v665_v12, %v633_v46  ;;  %v340_v16 = vsel %vm325_vm0, %v338_v47, %v339_v48 }
  0x42   : > { %v362_v57 = vadd.f32 %v340_v16, %v276_v36  ;;  %v418_v58 = vsel %vm403_vm1, %v416_v53, %v417_v54  ;;  %v497_v59 = vmul.f32 %v1405_v5, %v1248_v4  ;;  %v498_v29 = vmul.f32 %v1248_v4, %v1053_v49  ;;  %v1055_v16 = vld [vmem:[%s1238_s6 + $0x68] sm:$0x3] }
  0x43   : > { %1121 = vrcp.f32 %v872_v56  ;;  %v750_v60 = vadd.f32 %v726_v41, %v673_v14  ;;  %v574_v61 = vmul.f32 %v1405_v5, %v1255_v7  ;;  %v575_v62 = vmul.f32 %v1255_v7, %v1053_v49 }
  0x44   : > { %v440_v8 = vadd.f32 %v418_v58, %v362_v57  ;;  %v533_v9 = vrot.slane %v497_v59, 1  ;;  %v534_v10 = vrot.slane %v498_v29, 1  ;;  %v666_v11 = vmul.f32 %v1270_v18, %v1445_v63 }
  0x45   : > { %v1118_v12 = vpop.eup %1117  ;;  %v827_v15 = vadd.f32 %v803_v51, %v750_v60  ;;  %v610_v17 = vrot.slane %v574_v61, 2  ;;  %v611_v20 = vrot.slane %v575_v62, 2  ;;  %v691_v21 = vmul.f32 %v1275_v19, %v1445_v63 }
  0x46   : > { %v895_v22 = vmul.f32 %v1118_v12, %v1351_v52  ;;  %v480_v23 = vadd.f32 %v472_v55, %v440_v8  ;;  %v535_v25 = vsel %vm325_vm0, %v533_v9, %v534_v10  ;;  %v692_v26 = vmul.f32 %v1275_v19, %v1072_v6 }
  0x47   : > { %v1467_v30 = vadd.f32 %v1337_v38, %v827_v15  ;;  %v612_v31 = vsel %vm403_vm1, %v610_v17, %v611_v20  ;;  %v727_v34 = vrot.slane %v691_v21, 1  ;;  %v768_v35 = vmul.f32 %v1281_v24, %v1445_v63  ;;  %v1074_v15 = vld [vmem:[%s1238_s6 + $0x78] sm:$0x3] }
  0x48   : > { %v910_v52 = vmul.f32 %v1453_v13, %v895_v22  ;;  %v557_v36 = vadd.f32 %v535_v25, %v480_v23  ;;  %v728_v33 = vrot.slane %v692_v26, 1  ;;  %v769_v37 = vmul.f32 %v1281_v24, %v1072_v6  ;;  %v1509_v23 = vld [vmem:[%s1238_s6 + $0x70] sm:$0xff] }
  0x49   : > { %v850_v40 = vsub.f32 0.0, %v1467_v30  ;;  %v804_v41 = vrot.slane %v768_v35, 2  ;;  %v277_v42 = vmul.f32 %v1405_v5, %v1223_v0  ;;  %v303_v43 = vmul.f32 %v1405_v5, %v1228_v1 }
  0x4a   : > { %v925_v44 = vadd.f32 %v1464_v28, %v910_v52  ;;  %v634_v45 = vadd.f32 %v612_v31, %v557_v36  ;;  %v729_v46 = vsel %vm325_vm0, %v727_v34, %v728_v33  ;;  %v805_v47 = vrot.slane %v769_v37, 2 }
  0x4b   : > { %v1120_v48 = vpop.eup %1119  ;;  %v861_v49 = vmul.f32 1.442695, %v850_v40  ;;  %v304_v50 = vmul.f32 %v1228_v1, %v262_v39  ;;  %v341_v51 = vrot.slane %v303_v43, 1  ;;  %v381_v53 = vmul.f32 %v1405_v5, %v1233_v2 }
  0x4c   : > { %934 = vst.msk [vmem:[%s1478_s7] sm:$0xff] %vm933_vm2, %v925_v44  ;;  %v873_v54 = vadd.f32 1.0, %v1120_v48  ;;  %v674_v55 = vadd.f32 %v666_v11, %v634_v45  ;;  %v806_v56 = vsel %vm403_vm1, %v804_v41, %v805_v47  ;;  %v382_v14 = vmul.f32 %v1233_v2, %v262_v39 }
  0x4d   : > { %v1122_v57 = vpop.eup %1121  ;;  %1123 = vpow2.f32 %v861_v49  ;;  %v342_v58 = vrot.slane %v304_v50, 1  ;;  %v419_v59 = vrot.slane %v381_v53, 2  ;;  %v473_v29 = vmul.f32 %v1445_v63, %v1243_v3 }
  0x4e   : > { %v896_v60 = vmul.f32 %v1122_v57, %v1379_v32  ;;  %1125 = vrcp.f32 %v873_v54  ;;  %v751_v5 = vadd.f32 %v729_v46, %v674_v55  ;;  %v420_v61 = vrot.slane %v382_v14, 2 }
  0x4f   : > { %v343_v62 = vsel %vm325_vm0, %v341_v51, %v342_v58  ;;  %v499_v6 = vmul.f32 %v1445_v63, %v1248_v4  ;;  %v500_v8 = vmul.f32 %v1248_v4, %v1055_v16  ;;  %v576_v9 = vmul.f32 %v1445_v63, %v1255_v7 }
  0x50   : > { %v911_v10 = vmul.f32 %v1453_v13, %v896_v60  ;;  %v828_v11 = vadd.f32 %v806_v56, %v751_v5  ;;  %v363_v12 = vadd.f32 %v343_v62, %v277_v42  ;;  %v421_v32 = vsel %vm403_vm1, %v419_v59, %v420_v61  ;;  %v264_v42 = vld [vmem:[%s1238_s6 + $0x68] sm:$0x3]  ;;  %v1057_v61 = vld [vmem:[%s1238_s6 + $0x78] sm:$0x3] }
  0x51   : > { %v536_v17 = vrot.slane %v499_v6, 1  ;;  %v537_v20 = vrot.slane %v500_v8, 1  ;;  %v577_v21 = vmul.f32 %v1255_v7, %v1055_v16  ;;  %v613_v22 = vrot.slane %v576_v9, 2 }
  0x52   : > { %v926_v25 = vadd.f32 %v1464_v28, %v911_v10  ;;  %v1513_v26 = vadd.f32 %v1337_v38, %v828_v11  ;;  %v441_v31 = vadd.f32 %v421_v32, %v363_v12  ;;  %v667_v34 = vmul.f32 %v1270_v18, %v1509_v23 }
  0x53   : > { %v538_v35 = vsel %vm325_vm0, %v536_v17, %v537_v20  ;;  %v614_v52 = vrot.slane %v577_v21, 2  ;;  %v693_v36 = vmul.f32 %v1275_v19, %v1509_v23  ;;  %v694_v33 = vmul.f32 %v1275_v19, %v1074_v15  ;;  %v1076_v17 = vld [vmem:[%s1238_s6 + $0x88] sm:$0x3] }
  0x54   : > { %935 = vst.msk [vmem:[%s1478_s7 + $0x8] sm:$0xff] %vm933_vm2, %v926_v25  ;;  %v851_v37 = vsub.f32 0.0, %v1513_v26  ;;  %v481_v39 = vadd.f32 %v473_v29, %v441_v31  ;;  %v770_v40 = vmul.f32 %v1281_v24, %v1509_v23  ;;  %v771_v41 = vmul.f32 %v1281_v24, %v1074_v15 }
  0x55   : > { %v615_v43 = vsel %vm403_vm1, %v613_v22, %v614_v52  ;;  %v730_v44 = vrot.slane %v693_v36, 1  ;;  %v731_v45 = vrot.slane %v694_v33, 1  ;;  %v278_v46 = vmul.f32 %v1445_v63, %v1223_v0  ;;  %v1075_v36 = vld [vmem:[%s1238_s6 + $0x80] sm:$0xff] }
  0x56   : > { %v863_v47 = vmul.f32 1.442695, %v851_v37  ;;  %v558_v48 = vadd.f32 %v538_v35, %v481_v39  ;;  %v807_v49 = vrot.slane %v770_v40, 2  ;;  %v808_v50 = vrot.slane %v771_v41, 2 }
  0x57   : > { %v1124_v51 = vpop.eup %1123  ;;  %v732_v53 = vsel %vm325_vm0, %v730_v44, %v731_v45  ;;  %v305_v54 = vmul.f32 %v1445_v63, %v1228_v1  ;;  %v306_v55 = vmul.f32 %v1228_v1, %v264_v42  ;;  %v383_v56 = vmul.f32 %v1445_v63, %v1233_v2 }
  0x58   : > { %v1126_v14 = vpop.eup %1125  ;;  %v874_v16 = vadd.f32 1.0, %v1124_v51  ;;  %1127 = vpow2.f32 %v863_v47  ;;  %v635_v57 = vadd.f32 %v615_v43, %v558_v48  ;;  %v809_v58 = vsel %vm403_vm1, %v807_v49, %v808_v50  ;;  %v266_v49 = vld [vmem:[%s1238_s6 + $0x78] sm:$0x3] }
  0x59   : > { %v897_v59 = vmul.f32 %v1126_v14, %v1419_v27  ;;  %v344_v29 = vrot.slane %v305_v54, 1  ;;  %v345_v60 = vrot.slane %v306_v55, 1  ;;  %v384_v5 = vmul.f32 %v1233_v2, %v264_v42 }
  0x5a   : > { %1129 = vrcp.f32 %v874_v16  ;;  %v675_v62 = vadd.f32 %v667_v34, %v635_v57  ;;  %v422_v6 = vrot.slane %v383_v56, 2  ;;  %v474_v63 = vmul.f32 %v1509_v23, %v1243_v3 }
  0x5b   : > { %v912_v8 = vmul.f32 %v1453_v13, %v897_v59  ;;  %v346_v9 = vsel %vm325_vm0, %v344_v29, %v345_v60  ;;  %v423_v10 = vrot.slane %v384_v5, 2  ;;  %v501_v27 = vmul.f32 %v1509_v23, %v1248_v4 }
  0x5c   : > { %v752_v11 = vadd.f32 %v732_v53, %v675_v62  ;;  %v364_v12 = vadd.f32 %v346_v9, %v278_v46  ;;  %v502_v32 = vmul.f32 %v1248_v4, %v1057_v61  ;;  %v578_v15 = vmul.f32 %v1509_v23, %v1255_v7 }
  0x5d   : > { %v927_v20 = vadd.f32 %v1464_v28, %v912_v8  ;;  %v424_v21 = vsel %vm403_vm1, %v422_v6, %v423_v10  ;;  %v539_v22 = vrot.slane %v501_v27, 1  ;;  %v579_v25 = vmul.f32 %v1255_v7, %v1057_v61  ;;  %v1059_v6 = vld [vmem:[%s1238_s6 + $0x88] sm:$0x3] }
  0x5e   : > { %v829_v31 = vadd.f32 %v809_v58, %v752_v11  ;;  %v442_v34 = vadd.f32 %v424_v21, %v364_v12  ;;  %v540_v35 = vrot.slane %v502_v32, 1  ;;  %v616_v52 = vrot.slane %v578_v15, 2  ;;  %v1077_v15 = vld [vmem:[%s1238_s6 + $0x90] sm:$0xff] }
  0x5f   : > { %936 = vst.msk [vmem:[%s1478_s7 + $0x10] sm:$0xff] %vm933_vm2, %v927_v20  ;;  %v617_v33 = vrot.slane %v579_v25, 2  ;;  %v668_v37 = vmul.f32 %v1270_v18, %v1075_v36  ;;  %v695_v39 = vmul.f32 %v1275_v19, %v1075_v36  ;;  %v696_v40 = vmul.f32 %v1275_v19, %v1076_v17 }
  0x60   : > { %v1561_v41 = vadd.f32 %v1337_v38, %v829_v31  ;;  %v482_v42 = vadd.f32 %v474_v63, %v442_v34  ;;  %v541_v43 = vsel %vm325_vm0, %v539_v22, %v540_v35  ;;  %v772_v44 = vmul.f32 %v1281_v24, %v1075_v36  ;;  %v1078_v22 = vld [vmem:[%s1238_s6 + $0x98] sm:$0x3] }
  0x61   : > { %v618_v45 = vsel %vm403_vm1, %v616_v52, %v617_v33  ;;  %v733_v46 = vrot.slane %v695_v39, 1  ;;  %v734_v47 = vrot.slane %v696_v40, 1  ;;  %v773_v48 = vmul.f32 %v1281_v24, %v1076_v17 }
  0x62   : > { %v1128_v50 = vpop.eup %1127  ;;  %v852_v51 = vsub.f32 0.0, %v1561_v41  ;;  %v559_v53 = vadd.f32 %v541_v43, %v482_v42  ;;  %v810_v54 = vrot.slane %v772_v44, 2  ;;  %v279_v55 = vmul.f32 %v1509_v23, %v1223_v0 }
  0x63   : > { %v875_v56 = vadd.f32 1.0, %v1128_v50  ;;  %v735_v14 = vsel %vm325_vm0, %v733_v46, %v734_v47  ;;  %v811_v16 = vrot.slane %v773_v48, 2  ;;  %v307_v57 = vmul.f32 %v1509_v23, %v1228_v1 }
  0x64   : > { %v1130_v58 = vpop.eup %1129  ;;  %v865_v59 = vmul.f32 1.442695, %v852_v51  ;;  %v636_v29 = vadd.f32 %v618_v45, %v559_v53  ;;  %v308_v60 = vmul.f32 %v1228_v1, %v266_v49  ;;  %v385_v5 = vmul.f32 %v1509_v23, %v1233_v2 }
  0x65   : > { %v898_v61 = vmul.f32 %v1130_v58, %v1467_v30  ;;  %1131 = vrcp.f32 %v875_v56  ;;  %v812_v0 = vsel %vm403_vm1, %v810_v54, %v811_v16  ;;  %v347_v62 = vrot.slane %v307_v57, 1 }
  0x66   : > { %1133 = vpow2.f32 %v865_v59  ;;  %v676_v63 = vadd.f32 %v668_v37, %v636_v29  ;;  %v348_v8 = vrot.slane %v308_v60, 1  ;;  %v386_v9 = vmul.f32 %v1233_v2, %v266_v49 }
  0x67   : > { %v913_v10 = vmul.f32 %v1453_v13, %v898_v61  ;;  %v425_v1 = vrot.slane %v385_v5, 2  ;;  %v475_v27 = vmul.f32 %v1075_v36, %v1243_v3  ;;  %v503_v30 = vmul.f32 %v1075_v36, %v1248_v4 }
  0x68   : > { %v753_v23 = vadd.f32 %v735_v14, %v676_v63  ;;  %v349_v11 = vsel %vm325_vm0, %v347_v62, %v348_v8  ;;  %v426_v12 = vrot.slane %v386_v9, 2  ;;  %v504_v32 = vmul.f32 %v1248_v4, %v1059_v6 }
  0x69   : > { %v928_v17 = vadd.f32 %v1464_v28, %v913_v10  ;;  %v365_v20 = vadd.f32 %v349_v11, %v279_v55  ;;  %v542_v21 = vrot.slane %v503_v30, 1  ;;  %v580_v2 = vmul.f32 %v1075_v36, %v1255_v7 }
  0x6a   : > { %v830_v25 = vadd.f32 %v812_v0, %v753_v23  ;;  %v427_v3 = vsel %vm403_vm1, %v425_v1, %v426_v12  ;;  %v543_v31 = vrot.slane %v504_v32, 1  ;;  %v581_v34 = vmul.f32 %v1255_v7, %v1059_v6 }
  0x6b   : > { %937 = vst.msk [vmem:[%s1478_s7 + $0x18] sm:$0xff] %vm933_vm2, %v928_v17  ;;  %v443_v35 = vadd.f32 %v427_v3, %v365_v20  ;;  %v619_v52 = vrot.slane %v580_v2, 2  ;;  %v697_v4 = vmul.f32 %v1275_v19, %v1077_v15  ;;  %v698_v36 = vmul.f32 %v1275_v19, %v1078_v22 }
  0x6c   : > { %v845_v33 = vadd.f32 %v1337_v38, %v830_v25  ;;  %v544_v37 = vsel %vm325_vm0, %v542_v21, %v543_v31  ;;  %v620_v39 = vrot.slane %v581_v34, 2  ;;  %v774_v42 = vmul.f32 %v1281_v24, %v1077_v15 }
  0x6d   : > { %v483_v40 = vadd.f32 %v475_v27, %v443_v35  ;;  %v775_v43 = vmul.f32 %v1281_v24, %v1078_v22  ;;  %v736_v45 = vrot.slane %v697_v4, 1  ;;  %v737_v46 = vrot.slane %v698_v36, 1 }
  0x6e   : > { %v853_v44 = vsub.f32 0.0, %v845_v33  ;;  %v621_v7 = vsel %vm403_vm1, %v619_v52, %v620_v39  ;;  %v669_v49 = vmul.f32 %v1270_v18, %v1077_v15  ;;  %v813_v19 = vrot.slane %v774_v42, 2 }
  0x6f   : > { %v1132_v47 = vpop.eup %1131  ;;  %v560_v48 = vadd.f32 %v544_v37, %v483_v40  ;;  %v814_v54 = vrot.slane %v775_v43, 2  ;;  %v738_v14 = vsel %vm325_vm0, %v736_v45, %v737_v46 }
  0x70   : > { %v1134_v50 = vpop.eup %1133  ;;  %v899_v51 = vmul.f32 %v1132_v47, %v1513_v26  ;;  %v867_v53 = vmul.f32 1.442695, %v853_v44 }
  0x71   : > { %v876_v55 = vadd.f32 1.0, %v1134_v50  ;;  %v637_v56 = vadd.f32 %v621_v7, %v560_v48  ;;  %v815_v18 = vsel %vm403_vm1, %v813_v19, %v814_v54 }
  0x72   : > { %v914_v24 = vmul.f32 %v1453_v13, %v899_v51  ;;  %1135 = vpow2.f32 %v867_v53 }
  0x73   : > { %1137 = vrcp.f32 %v876_v55  ;;  %v677_v16 = vadd.f32 %v669_v49, %v637_v56 }
  0x74   : > { %v929_v57 = vadd.f32 %v1464_v28, %v914_v24 }
  0x75   : > { %v754_v58 = vadd.f32 %v738_v14, %v677_v16 }
  0x76   : > { %938 = vst.msk [vmem:[%s1478_s7 + $0x20] sm:$0xff] %vm933_vm2, %v929_v57 }
  0x77   : > { %v831_v26 = vadd.f32 %v815_v18, %v754_v58 }
  0x79   : > { %v846_v59 = vadd.f32 %v1337_v38, %v831_v26 }
  0x7b   : > { %v854_v29 = vsub.f32 0.0, %v846_v59 }
  0x7c   : > { %v1136_v60 = vpop.eup %1135 }
  0x7d   : > { %v1138_v5 = vpop.eup %1137  ;;  %v877_v61 = vadd.f32 1.0, %v1136_v60  ;;  %v869_v0 = vmul.f32 1.442695, %v854_v29 }
  0x7e   : > { %v900_v62 = vmul.f32 %v1138_v5, %v1561_v41 }
  0x7f   : > { %1139 = vrcp.f32 %v877_v61 }
  0x80   : > { %v915_v6 = vmul.f32 %v1453_v13, %v900_v62  ;;  %1141 = vpow2.f32 %v869_v0 }
  0x82   : > { %v930_v63 = vadd.f32 %v1464_v28, %v915_v6 }
  0x84   : > { %939 = vst.msk [vmem:[%s1478_s7 + $0x28] sm:$0xff] %vm933_vm2, %v930_v63 }
  0x89   : > { %v1140_v8 = vpop.eup %1139 }
  0x8a   : > { %v1142_v9 = vpop.eup %1141  ;;  %v901_v38 = vmul.f32 %v1140_v8, %v845_v33 }
  0x8b   : > { %v878_v10 = vadd.f32 1.0, %v1142_v9 }
  0x8c   : > { %v916_v1 = vmul.f32 %v1453_v13, %v901_v38 }
  0x8d   : > { %1143 = vrcp.f32 %v878_v10 }
  0x8e   : > { %v931_v27 = vadd.f32 %v1464_v28, %v916_v1 }
  0x90   : > { %940 = vst.msk [vmem:[%s1478_s7 + $0x30] sm:$0xff] %vm933_vm2, %v931_v27 }
  0x97   : > { %v1144_v41 = vpop.eup %1143 }
  0x98   : > { %v902_v30 = vmul.f32 %v1144_v41, %v846_v59 }
  0x9a   : > { %v917_v23 = vmul.f32 %v1453_v13, %v902_v30 }
  0x9c   : > { %v932_v11 = vadd.f32 %v1464_v28, %v917_v23 }
  0x9e   : > { %941 = vst.msk [vmem:[%s1478_s7 + $0x38] sm:$0xff] %vm933_vm2, %v932_v11 }
  0x9f PF: > { %s15_s20 = sadd.s32 1, %s1167_s20   ;;  %s1638_s18 = smov %s1163_s19 }
  0xa0   : > { %p12_p5 = scmp.ge.s32.totalorder %s15_s20, 4   ;;  %s1639_s19 = smov %s1641_s21 }
  0xa2   :  { %14 = sbr.rel (!%p12_p5) target bundleno = 2 (0x2), region = 73 }

// kernel: vsslayer_forward.20
= control target key start
LH: loop header
LB: loop body
LE: loop exit
PB: predicated region body
PF: predicated region fallthrough
CT: control target
= control target key end

     0   :  { %s662_s9 = smov 0   ;;  %s664_s10 = smov 0   ;;  %s702_s0 = inlined_call_operand.vmem [shape: bf16[8,64,8], index: 0, kind: input, shape index: {}]   ;;  %s703_s1 = inlined_call_operand.vmem [shape: bf16[4,8,128], index: 1, kind: input, shape index: {}]   ;;  %s704_s2 = inlined_call_operand.vmem [shape: f32[8,64,128], index: 2, kind: output, shape index: {}]  }
   0x1   :  { %s666_s11 = smov 0  }
   0x2 LB: > { %s31_s12 = sadd.s32 1, %s641_s10  ;;  %p555_p0 = scmp.ge.s32.totalorder %s645_s11, 1  ;;  %s645_s11 = sphi %s666_s11, %s12_s11   ;;  %s641_s10 = sphi %s664_s10, %s706_s10   ;;  %s637_s9 = sphi %s662_s9, %s705_s9  }
   0x3   : > { %p33_p1 = scmp.ge.s32.totalorder %s31_s12, 8  ;;  %p204_p2 = scmp.lt.s32.totalorder %s645_s11, 9 }
   0x5   : > { %s708_s12 = smov (%p33_p1, %s31_s12), 0  ;;  %p205_p3 = pnand %p555_p0, %p204_p2 }
   0x6   : > { %p266_p4 = scmp.lt.s32.totalorder (!%p205_p3), %s637_s9, 0  ;;  %s267_s13 = ssub.s32 (!%p205_p3), 0, %s637_s9  ;;  %vm340_vm0 = vcmask (!%p205_p3), 64512   ;;  %vm353_vm1 = vcmask (!%p205_p3), 1043456  }
   0x7   : > { %208 = sbr.rel (%p205_p3) target bundleno = 244 (0xf4), region = 28  ;;  %s558_s14 = smin.u32 (!%p205_p3), %s637_s9, %s267_s13 }
   0x8   : > { %p257_p5 = scmp.lt.s32.totalorder (!%p205_p3), %s637_s9, 7  ;;  %s269_s15 = sand.u32 (!%p205_p3), 3, %s558_s14  }
   0x9   : > { %s270_s16 = ssub.s32 (!%p205_p3), 0, %s269_s15 }
   0xe   : > { %s710_s16 = smov (!%p266_p4, %s270_s16), %s269_s15  ;;  %s712_s9 = smov (!%p257_p5, %s637_s9), 7 }
   0xf   : > { %p560_p6 = scmp.lt.s32.totalorder %s710_s16, 0  ;;  %s276_s17 = sadd.s32 4, %s710_s16 }
  0x10   : > { %s574_s18 = sshll.u32 %s712_s9, 5  ;;  %s575_s26 = sshll.u32 %s712_s9, 6 }
  0x11   : > { %s714_s17 = smov (!%p560_p6, %s276_s17), %s710_s16  ;;  %s264_s21 = scalar_lea.vmem %s702_s0, %s574_s18 }
  0x12   : > { %p278_p7 = scmp.lt.s32.totalorder %s714_s17, 3  ;;  %v619_v0 = vld [vmem:[%s264_s21] sm:$0xff]   ;;  %v620_v1 = vld [vmem:[%s264_s21 + $0x10] sm:$0xff]   ;;  %v621_v4 = vld [vmem:[%s264_s21 + $0x8] sm:$0xff]   ;;  %s308_s29 = scalar_lea.vmem %s704_s2, %s575_s26 }
  0x13   : > { %583 = vmatprep.mubr.msk.bf16.mxu0 %vm340_vm0, %v619_v0  ;;  %587 = vmatprep.mubr.msk.bf16.mxu1 %vm340_vm0, %v620_v1  ;;  %v622_v5 = vld [vmem:[%s264_s21 + $0x18] sm:$0xff]  }
  0x14   : > { %s716_s17 = smov (!%p278_p7, %s714_s17), 3 }
  0x15   : > { %s561_s22 = sshll.u32 %s716_s17, 2 }
  0x16   : > { %s284_s25 = scalar_lea.vmem %s703_s1, %s561_s22 }
  0x17   : > { %v319_v2 = vld [vmem:[%s284_s25] sm:$0xf] }
  0x18   : > { %593 = vmatprep.subr.msk.bf16.mxu0 %vm353_vm1, %v319_v2  ;;  %594 = vmatprep.subr.msk.bf16.mxu1 %vm353_vm1, %v319_v2  ;;  %v355_v3 = vsel %vm353_vm1, %v319_v2, 0 }
  0x19   : > { %582 = vmatpush3.bf16.msra.mxu0 %v355_v3  ;;  %592 = vmatpush3.bf16.msra.mxu1 %v355_v3 }
  0x1c   : > { %584 = vmatmul.mubr.msk.bf16.vlgmr.msra.gmra.mrb[0].mxu0 %vm340_vm0, %v621_v4  ;;  %588 = vmatmul.mubr.msk.bf16.vlgmr.msra.gmra.mrb[0].mxu1 %vm340_vm0, %v622_v5 }
  0xef   : > { %v585_v6 = vpop.f32.mrb[0].mxu0  ;;  %v589_v7 = vpop.f32.mrb[0].mxu1 }
  0xf0   : > { %424 = vst [vmem:[%s308_s29 + $0x10] sm:$0xff] %v585_v6  ;;  %428 = vst [vmem:[%s308_s29 + $0x30] sm:$0xff] %v589_v7  ;;  %v391_v8 = vpop.f32.mrb[1].mxu0  ;;  %v407_v9 = vpop.f32.mrb[1].mxu1 }
  0xf1   : > { %422 = vst [vmem:[%s308_s29] sm:$0xff] %v391_v8  ;;  %426 = vst [vmem:[%s308_s29 + $0x20] sm:$0xff] %v407_v9  ;;  %v586_v10 = vpop.f32.mrb[2].mxu0  ;;  %v590_v11 = vpop.f32.mrb[2].mxu1 }
  0xf2   : > { %425 = vst [vmem:[%s308_s29 + $0x18] sm:$0xff] %v586_v10  ;;  %429 = vst [vmem:[%s308_s29 + $0x38] sm:$0xff] %v590_v11  ;;  %v394_v12 = vpop.f32.mrb[3].mxu0  ;;  %v410_v13 = vpop.f32.mrb[3].mxu1 }
  0xf3   : > { %423 = vst [vmem:[%s308_s29 + $0x8] sm:$0xff] %v394_v12  ;;  %427 = vst [vmem:[%s308_s29 + $0x28] sm:$0xff] %v410_v13 }
  0xf4 PF: > { %s12_s11 = sadd.s32 1, %s645_s11   ;;  %s705_s9 = smov %s641_s10 }
  0xf5   : > { %p9_p8 = scmp.ge.s32.totalorder %s12_s11, 10   ;;  %s706_s10 = smov %s708_s12 }
  0xf7   :  { %11 = sbr.rel (!%p9_p8) target bundleno = 2 (0x2), region = 61 }

// kernel: vsslayer_forward.23
= control target key start
LH: loop header
LB: loop body
LE: loop exit
PB: predicated region body
PF: predicated region fallthrough
CT: control target
= control target key end

     0   :  { %vm37_vm0 = vcmask 64512   ;;  %vm470_vm1 = vcmask 1043456   ;;  %s1201_s0 = inlined_call_operand.vmem [shape: f32[128,8], index: 0, kind: input, shape index: {}]   ;;  %s1202_s4 = inlined_call_operand.vmem [shape: bf16[8,128], index: 4, kind: input, shape index: {}]   ;;  %s1203_s1 = inlined_call_operand.vmem [shape: f32[128,8], index: 1, kind: input, shape index: {}]   ;;  %s1204_s2 = inlined_call_operand.vmem [shape: f32[1,8], index: 2, kind: input, shape index: {}]   ;;  %s1205_s3 = inlined_call_operand.vmem [shape: f32[1,8], index: 3, kind: input, shape index: {}]   ;;  %s1206_s5 = inlined_call_operand.vmem [shape: f32[128,128], index: 5, kind: output, shape index: {}]  }
   0x1   :  { %v21_v0 = vld [vmem:[%s1201_s0] sm:$0xff]  ;;  %v22_v2 = vld [vmem:[%s1201_s0 + $0x8] sm:$0xff]  ;;  %v23_v8 = vld [vmem:[%s1201_s0 + $0x10] sm:$0xff] }
   0x2   :  { %v29_v1 = vld [vmem:[%s1201_s0 + $0x40] sm:$0xff]  ;;  %v38_v3 = vsel %vm37_vm0, %v21_v0, 0.0  ;;  %v30_v5 = vld [vmem:[%s1201_s0 + $0x48] sm:$0xff]  ;;  %v41_v6 = vsel %vm37_vm0, %v22_v2, 0.0  ;;  %v24_v9 = vld [vmem:[%s1201_s0 + $0x18] sm:$0xff]  ;;  %v44_v10 = vsel %vm37_vm0, %v23_v8, 0.0 }
   0x3   :  { %v62_v4 = vsel %vm37_vm0, %v29_v1, 0.0  ;;  %39 = vadd.xlane.f32.xlu0 %v38_v3  ;;  %v65_v7 = vsel %vm37_vm0, %v30_v5, 0.0  ;;  %v47_v11 = vsel %vm37_vm0, %v24_v9, 0.0  ;;  %v785_v12 = vld [vmem:[%s1201_s0 + $0x50] sm:$0xff]  ;;  %v790_v13 = vld [vmem:[%s1201_s0 + $0x58] sm:$0xff]  ;;  %v799_v16 = vld [vmem:[%s1201_s0 + $0x20] sm:$0xff] }
   0x4   :  { %63 = vadd.xlane.f32.xlu1 %v62_v4  ;;  %v68_v14 = vsel %vm37_vm0, %v785_v12, 0.0  ;;  %v71_v15 = vsel %vm37_vm0, %v790_v13, 0.0  ;;  %v804_v17 = vld [vmem:[%s1201_s0 + $0x28] sm:$0xff]  ;;  %v50_v18 = vsel %vm37_vm0, %v799_v16, 0.0  ;;  %v813_v20 = vld [vmem:[%s1201_s0 + $0x60] sm:$0xff]  ;;  %v827_v24 = vld [vmem:[%s1201_s0 + $0x30] sm:$0xff] }
   0x5   :  { %v53_v19 = vsel %vm37_vm0, %v804_v17, 0.0  ;;  %v818_v21 = vld [vmem:[%s1201_s0 + $0x68] sm:$0xff]  ;;  %v74_v22 = vsel %vm37_vm0, %v813_v20, 0.0  ;;  %v832_v25 = vld [vmem:[%s1201_s0 + $0x38] sm:$0xff]  ;;  %v56_v26 = vsel %vm37_vm0, %v827_v24, 0.0  ;;  %v841_v28 = vld [vmem:[%s1201_s0 + $0x70] sm:$0xff] }
   0x6   :  { %v77_v23 = vsel %vm37_vm0, %v818_v21, 0.0  ;;  %v59_v27 = vsel %vm37_vm0, %v832_v25, 0.0  ;;  %v846_v29 = vld [vmem:[%s1201_s0 + $0x78] sm:$0xff]  ;;  %v80_v30 = vsel %vm37_vm0, %v841_v28, 0.0 }
   0x7   :  { %42 = vadd.xlane.f32.xlu0 %v41_v6  ;;  %v83_v31 = vsel %vm37_vm0, %v846_v29, 0.0 }
   0x8   :  { %66 = vadd.xlane.f32.xlu1 %v65_v7 }
   0xb   :  { %45 = vadd.xlane.f32.xlu0 %v44_v10 }
   0xc   :  { %48 = vadd.xlane.f32.xlu1 %v47_v11 }
   0xf   :  { %69 = vadd.xlane.f32.xlu0 %v68_v14 }
  0x10   :  { %72 = vadd.xlane.f32.xlu1 %v71_v15 }
  0x13   :  { %51 = vadd.xlane.f32.xlu0 %v50_v18 }
  0x14   :  { %54 = vadd.xlane.f32.xlu1 %v53_v19 }
  0x17   :  { %75 = vadd.xlane.f32.xlu0 %v74_v22 }
  0x18   :  { %78 = vadd.xlane.f32.xlu1 %v77_v23 }
  0x1b   :  { %57 = vadd.xlane.f32.xlu0 %v56_v26 }
  0x1c   :  { %60 = vadd.xlane.f32.xlu1 %v59_v27 }
  0x1f   :  { %81 = vadd.xlane.f32.xlu0 %v80_v30 }
  0x20   :  { %84 = vadd.xlane.f32.xlu1 %v83_v31 }
  0x90   :  { %v40_v32 = vpop.xlane.xlu0 %39 }
  0x91   :  { %v64_v33 = vpop.xlane.xlu1 %63  ;;  %v87_v34 = vmul.f32 0.125, %v40_v32 }
  0x92   :  { %v95_v35 = vmul.f32 0.125, %v64_v33 }
  0x93   :  { %v852_v36 = vsub.f32 %v21_v0, %v87_v34 }
  0x94   :  { %v854_v37 = vsub.f32 %v29_v1, %v95_v35  ;;  %v43_v38 = vpop.xlane.xlu0 %42 }
  0x95   :  { %v67_v39 = vpop.xlane.xlu1 %66  ;;  %v88_v40 = vmul.f32 0.125, %v43_v38  ;;  %v119_v42 = vmul.f32 %v852_v36, %v852_v36 }
  0x96   :  { %v96_v41 = vmul.f32 0.125, %v67_v39  ;;  %v127_v43 = vmul.f32 %v854_v37, %v854_v37 }
  0x97   :  { %v860_v44 = vsub.f32 %v22_v2, %v88_v40  ;;  %v135_v46 = vsel %vm37_vm0, %v119_v42, 0.0 }
  0x98   :  { %v862_v45 = vsub.f32 %v30_v5, %v96_v41  ;;  %136 = vadd.xlane.f32.xlu0 %v135_v46  ;;  %v46_v47 = vpop.xlane.xlu0 %45  ;;  %v159_v49 = vsel %vm37_vm0, %v127_v43, 0.0 }
  0x99   :  { %v49_v48 = vpop.xlane.xlu1 %48  ;;  %v89_v50 = vmul.f32 0.125, %v46_v47  ;;  %v120_v52 = vmul.f32 %v860_v44, %v860_v44 }
  0x9a   :  { %v90_v51 = vmul.f32 0.125, %v49_v48  ;;  %v128_v53 = vmul.f32 %v862_v45, %v862_v45 }
  0x9b   :  { %v870_v54 = vsub.f32 %v23_v8, %v89_v50  ;;  %v138_v56 = vsel %vm37_vm0, %v120_v52, 0.0 }
  0x9c   :  { %v872_v55 = vsub.f32 %v24_v9, %v90_v51  ;;  %160 = vadd.xlane.f32.xlu0 %v159_v49  ;;  %139 = vadd.xlane.f32.xlu1 %v138_v56  ;;  %v70_v57 = vpop.xlane.xlu0 %69  ;;  %v162_v59 = vsel %vm37_vm0, %v128_v53, 0.0  ;;  %v948_v56 = vld [vmem:[%s1203_s1] sm:$0xff] }
  0x9d   :  { %v73_v58 = vpop.xlane.xlu1 %72  ;;  %v97_v60 = vmul.f32 0.125, %v70_v57  ;;  %v121_v62 = vmul.f32 %v870_v54, %v870_v54  ;;  %v953_v57 = vld [vmem:[%s1203_s1 + $0x8] sm:$0xff] }
  0x9e   :  { %v98_v61 = vmul.f32 0.125, %v73_v58  ;;  %v122_v63 = vmul.f32 %v872_v55, %v872_v55  ;;  %v309_v58 = vsub.f32 0.0, %v948_v56 }
  0x9f   :  { %v881_v0 = vsub.f32 %v785_v12, %v97_v60  ;;  %v141_v2 = vsel %vm37_vm0, %v121_v62, 0.0  ;;  %v310_v60 = vsub.f32 0.0, %v953_v57 }
  0xa0   :  { %v884_v1 = vsub.f32 %v790_v13, %v98_v61  ;;  %163 = vadd.xlane.f32.xlu1 %v162_v59  ;;  %142 = vadd.xlane.f32.xlu0 %v141_v2  ;;  %v52_v3 = vpop.xlane.xlu0 %51  ;;  %v144_v5 = vsel %vm37_vm0, %v122_v63, 0.0  ;;  %v959_v59 = vld [vmem:[%s1203_s1 + $0x40] sm:$0xff]  ;;  %v965_v61 = vld [vmem:[%s1203_s1 + $0x48] sm:$0xff]  ;;  %v325_v63 = vmul.f32 1.442695, %v309_v58  ;;  %v971_v2 = vld [vmem:[%s1203_s1 + $0x10] sm:$0xff] }
  0xa1   :  { %v55_v4 = vpop.xlane.xlu1 %54  ;;  %v91_v6 = vmul.f32 0.125, %v52_v3  ;;  %v129_v8 = vmul.f32 %v881_v0, %v881_v0  ;;  %v317_v62 = vsub.f32 0.0, %v959_v59  ;;  %v318_v3 = vsub.f32 0.0, %v965_v61 }
  0xa2   :  { %v92_v7 = vmul.f32 0.125, %v55_v4  ;;  %v130_v9 = vmul.f32 %v884_v1, %v884_v1  ;;  %v327_v4 = vmul.f32 1.442695, %v310_v60  ;;  %632 = vpow2.f32 %v325_v63  ;;  %v1031_v63 = vld [vmem:[%s1203_s1 + $0x70] sm:$0xff] }
  0xa3   :  { %v893_v10 = vsub.f32 %v799_v16, %v91_v6  ;;  %v165_v12 = vsel %vm37_vm0, %v129_v8, 0.0  ;;  %v977_v6 = vld [vmem:[%s1203_s1 + $0x18] sm:$0xff]  ;;  %v983_v8 = vld [vmem:[%s1203_s1 + $0x50] sm:$0xff] }
  0xa4   :  { %v896_v11 = vsub.f32 %v804_v17, %v92_v7  ;;  %145 = vadd.xlane.f32.xlu1 %v144_v5  ;;  %166 = vadd.xlane.f32.xlu0 %v165_v12  ;;  %v76_v13 = vpop.xlane.xlu0 %75  ;;  %v168_v15 = vsel %vm37_vm0, %v130_v9, 0.0  ;;  %v341_v5 = vmul.f32 1.442695, %v317_v62  ;;  %v311_v7 = vsub.f32 0.0, %v971_v2 }
  0xa5   :  { %v79_v14 = vpop.xlane.xlu1 %78  ;;  %v99_v18 = vmul.f32 0.125, %v76_v13  ;;  %v123_v22 = vmul.f32 %v893_v10, %v893_v10  ;;  %v343_v9 = vmul.f32 1.442695, %v318_v3  ;;  %634 = vpow2.f32 %v327_v4 }
  0xa6   :  { %v100_v19 = vmul.f32 0.125, %v79_v14  ;;  %v124_v16 = vmul.f32 %v896_v11, %v896_v11  ;;  %v312_v12 = vsub.f32 0.0, %v977_v6  ;;  %636 = vpow2.f32 %v341_v5  ;;  %v989_v14 = vld [vmem:[%s1203_s1 + $0x58] sm:$0xff] }
  0xa7   :  { %v905_v23 = vsub.f32 %v813_v20, %v99_v18  ;;  %v147_v26 = vsel %vm37_vm0, %v123_v22, 0.0  ;;  %v329_v13 = vmul.f32 1.442695, %v311_v7  ;;  %638 = vpow2.f32 %v343_v9 }
  0xa8   :  { %v908_v17 = vsub.f32 %v818_v21, %v100_v19  ;;  %169 = vadd.xlane.f32.xlu1 %v168_v15  ;;  %148 = vadd.xlane.f32.xlu0 %v147_v26  ;;  %v58_v27 = vpop.xlane.xlu0 %57  ;;  %v150_v31 = vsel %vm37_vm0, %v124_v16, 0.0  ;;  %v319_v15 = vsub.f32 0.0, %v983_v8  ;;  %v331_v18 = vmul.f32 1.442695, %v312_v12  ;;  %v996_v16 = vld [vmem:[%s1203_s1 + $0x20] sm:$0xff] }
  0xa9   :  { %v61_v30 = vpop.xlane.xlu1 %60  ;;  %v93_v32 = vmul.f32 0.125, %v58_v27  ;;  %v131_v34 = vmul.f32 %v905_v23, %v905_v23  ;;  %v320_v19 = vsub.f32 0.0, %v989_v14  ;;  %640 = vpow2.f32 %v329_v13 }
  0xaa   :  { %v94_v33 = vmul.f32 0.125, %v61_v30  ;;  %v132_v20 = vmul.f32 %v908_v17, %v908_v17  ;;  %v345_v22 = vmul.f32 1.442695, %v319_v15  ;;  %642 = vpow2.f32 %v331_v18  ;;  %v1001_v30 = vld [vmem:[%s1203_s1 + $0x28] sm:$0xff]  ;;  %v1038_v18 = vld [vmem:[%s1203_s1 + $0x78] sm:$0xff] }
  0xab   :  { %v917_v35 = vsub.f32 %v827_v24, %v93_v32  ;;  %v171_v38 = vsel %vm37_vm0, %v131_v34, 0.0  ;;  %v347_v27 = vmul.f32 1.442695, %v320_v19  ;;  %v323_v13 = vsub.f32 0.0, %v1031_v63 }
  0xac   :  { %v920_v21 = vsub.f32 %v832_v25, %v94_v33  ;;  %151 = vadd.xlane.f32.xlu1 %v150_v31  ;;  %172 = vadd.xlane.f32.xlu0 %v171_v38  ;;  %v82_v39 = vpop.xlane.xlu0 %81  ;;  %v174_v41 = vsel %vm37_vm0, %v132_v20, 0.0  ;;  %v633_v26 = vpop.eup %632  ;;  %v313_v31 = vsub.f32 0.0, %v996_v16  ;;  %644 = vpow2.f32 %v345_v22  ;;  %v1007_v33 = vld [vmem:[%s1203_s1 + $0x60] sm:$0xff] }
  0xad   :  { %v85_v40 = vpop.xlane.xlu1 %84  ;;  %v101_v42 = vmul.f32 0.125, %v82_v39  ;;  %v125_v46 = vmul.f32 %v917_v35, %v917_v35  ;;  %v357_v20 = vadd.f32 1.0, %v633_v26  ;;  %v314_v38 = vsub.f32 0.0, %v1001_v30 }
  0xae   :  { %v102_v43 = vmul.f32 0.125, %v85_v40  ;;  %v126_v24 = vmul.f32 %v920_v21, %v920_v21  ;;  %646 = vpow2.f32 %v347_v27  ;;  %v333_v39 = vmul.f32 1.442695, %v313_v31  ;;  %v1013_v40 = vld [vmem:[%s1203_s1 + $0x68] sm:$0xff] }
  0xaf   :  { %v929_v47 = vsub.f32 %v841_v28, %v101_v42  ;;  %v153_v48 = vsel %vm37_vm0, %v125_v46, 0.0  ;;  %v635_v32 = vpop.eup %634  ;;  %v1019_v46 = vld [vmem:[%s1203_s1 + $0x30] sm:$0xff]  ;;  %648 = vrcp.f32 %v357_v20  ;;  %v324_v20 = vsub.f32 0.0, %v1038_v18 }
  0xb0   :  { %v932_v25 = vsub.f32 %v846_v29, %v102_v43  ;;  %175 = vadd.xlane.f32.xlu1 %v174_v41  ;;  %154 = vadd.xlane.f32.xlu0 %v153_v48  ;;  %v156_v49 = vsel %vm37_vm0, %v126_v24, 0.0  ;;  %v445_v29 = vld [vmem:[%s1202_s4] sm:$0xf]  ;;  %v637_v34 = vpop.eup %636  ;;  %v358_v42 = vadd.f32 1.0, %v635_v32  ;;  %v321_v43 = vsub.f32 0.0, %v1007_v33 }
  0xb1   :  { %v133_v50 = vmul.f32 %v929_v47, %v929_v47  ;;  %630 = vmatprep.subr.msk.bf16.mxu0 %vm470_vm1, %v445_v29  ;;  %631 = vmatprep.subr.msk.bf16.mxu1 %vm470_vm1, %v445_v29  ;;  %v472_v53 = vsel %vm470_vm1, %v445_v29, 0  ;;  %v639_v41 = vpop.eup %638  ;;  %v365_v24 = vadd.f32 1.0, %v637_v34  ;;  %650 = vpow2.f32 %v333_v39  ;;  %v1026_v29 = vld [vmem:[%s1203_s1 + $0x38] sm:$0xff] }
  0xb2   :  { %v134_v51 = vmul.f32 %v932_v25, %v932_v25  ;;  %611 = vmatpush3.bf16.msra.mxu0 %v472_v53  ;;  %629 = vmatpush3.bf16.msra.mxu1 %v472_v53  ;;  %652 = vrcp.f32 %v358_v42  ;;  %v316_v3 = vsub.f32 0.0, %v1026_v29 }
  0xb3   :  { %v177_v52 = vsel %vm37_vm0, %v133_v50, 0.0  ;;  %v641_v48 = vpop.eup %640  ;;  %v322_v50 = vsub.f32 0.0, %v1013_v40  ;;  %654 = vrcp.f32 %v365_v24 }
  0xb4   :  { %157 = vadd.xlane.f32.xlu1 %v156_v49  ;;  %178 = vadd.xlane.f32.xlu0 %v177_v52  ;;  %v180_v28 = vsel %vm37_vm0, %v134_v51, 0.0  ;;  %v335_v49 = vmul.f32 1.442695, %v314_v38  ;;  %v366_v51 = vadd.f32 1.0, %v639_v41  ;;  %v315_v52 = vsub.f32 0.0, %v1019_v46  ;;  %v643_v53 = vpop.eup %642 }
  0xb5   :  { %v359_v58 = vadd.f32 1.0, %v641_v48  ;;  %v351_v62 = vmul.f32 1.442695, %v322_v50  ;;  %v360_v5 = vadd.f32 1.0, %v643_v53  ;;  %v339_v19 = vmul.f32 1.442695, %v316_v3 }
  0xb6   :  { %v645_v60 = vpop.eup %644  ;;  %656 = vpow2.f32 %v335_v49  ;;  %v337_v4 = vmul.f32 1.442695, %v315_v52  ;;  %v353_v38 = vmul.f32 1.442695, %v323_v13  ;;  %v355_v53 = vmul.f32 1.442695, %v324_v20 }
  0xb7   :  { %658 = vrcp.f32 %v366_v51  ;;  %v367_v12 = vadd.f32 1.0, %v645_v60 }
  0xb8   :  { %181 = vadd.xlane.f32.xlu1 %v180_v28  ;;  %v349_v28 = vmul.f32 1.442695, %v321_v43  ;;  %v647_v7 = vpop.eup %646 }
  0xb9   :  { %v1040_v22 = vpop.eup %648  ;;  %v368_v27 = vadd.f32 1.0, %v647_v7 }
  0xba   :  { %660 = vpow2.f32 %v349_v28 }
  0xbb   :  { %662 = vrcp.f32 %v359_v58  ;;  %v651_v31 = vpop.eup %650 }
  0xbc   :  { %664 = vpow2.f32 %v351_v62  ;;  %v653_v39 = vpop.eup %652  ;;  %v361_v50 = vadd.f32 1.0, %v651_v31 }
  0xbd   :  { %666 = vpow2.f32 %v337_v4  ;;  %v655_v43 = vpop.eup %654 }
  0xbe   :  { %668 = vrcp.f32 %v360_v5 }
  0xbf   :  { %670 = vrcp.f32 %v367_v12 }
  0xc0   :  { %v657_v24 = vpop.eup %656 }
  0xc1   :  { %v659_v51 = vpop.eup %658 }
  0xc4   :  { %v661_v58 = vpop.eup %660 }
  0xc5   :  { %v663_v3 = vpop.eup %662 }
  0xc6   :  { %v665_v4 = vpop.eup %664 }
  0xc7   :  { %v667_v12 = vpop.eup %666 }
 0x125   :  { %v137_v9 = vpop.xlane.xlu0 %136 }
 0x126   :  { %v183_v15 = vmul.f32 0.125, %v137_v9  ;;  %v362_v9 = vadd.f32 1.0, %v657_v24 }
 0x128   :  { %v199_v26 = vadd.f32 1e-05, %v183_v15 }
 0x129   :  { %v140_v32 = vpop.xlane.xlu1 %139  ;;  %v161_v34 = vpop.xlane.xlu0 %160 }
 0x12a   :  { %672 = vrsqrt.f32 %v199_v26  ;;  %v184_v41 = vmul.f32 0.125, %v140_v32  ;;  %v191_v42 = vmul.f32 0.125, %v161_v34  ;;  %v669_v26 = vpop.eup %668  ;;  %v1046_v34 = vld [vmem:[%s1204_s2] ss:$0 sm:$0xff] }
 0x12b   :  { %674 = vpow2.f32 %v339_v19  ;;  %v369_v19 = vadd.f32 1.0, %v661_v58  ;;  %v671_v32 = vpop.eup %670 }
 0x12c   :  { %v200_v48 = vadd.f32 1e-05, %v184_v41  ;;  %v207_v49 = vadd.f32 1e-05, %v191_v42  ;;  %676 = vrcp.f32 %v368_v27  ;;  %v370_v42 = vadd.f32 1.0, %v665_v4 }
 0x12d   :  { %v164_v52 = vpop.xlane.xlu1 %163  ;;  %v143_v28 = vpop.xlane.xlu0 %142  ;;  %678 = vpow2.f32 %v353_v38 }
 0x12e   :  { %680 = vrsqrt.f32 %v200_v48  ;;  %v192_v60 = vmul.f32 0.125, %v164_v52  ;;  %v185_v62 = vmul.f32 0.125, %v143_v28  ;;  %v363_v52 = vadd.f32 1.0, %v667_v12 }
 0x12f   :  { %682 = vrsqrt.f32 %v207_v49 }
 0x130   :  { %v208_v5 = vadd.f32 1e-05, %v192_v60  ;;  %v201_v7 = vadd.f32 1e-05, %v185_v62  ;;  %684 = vrcp.f32 %v361_v50  ;;  %v1052_v60 = vld [vmem:[%s1205_s3] ss:$0 sm:$0xff]  ;;  %v405_v62 = vmul.f32 %v1040_v22, %v948_v56 }
 0x131   :  { %v146_v13 = vpop.xlane.xlu1 %145  ;;  %v167_v15 = vpop.xlane.xlu0 %166  ;;  %686 = vpow2.f32 %v355_v53 }
 0x132   :  { %688 = vrsqrt.f32 %v208_v5  ;;  %v186_v27 = vmul.f32 0.125, %v146_v13  ;;  %v193_v31 = vmul.f32 0.125, %v167_v15  ;;  %v414_v15 = vmul.f32 %v659_v51, %v965_v61 }
 0x133   :  { %690 = vrsqrt.f32 %v201_v7  ;;  %v413_v7 = vmul.f32 %v655_v43, %v959_v59 }
 0x134   :  { %v673_v20 = vpop.eup %672  ;;  %v202_v38 = vadd.f32 1e-05, %v186_v27  ;;  %v209_v41 = vadd.f32 1e-05, %v193_v31  ;;  %692 = vrcp.f32 %v362_v9 }
 0x135   :  { %v675_v24 = vpop.eup %674  ;;  %v170_v48 = vpop.xlane.xlu1 %169  ;;  %v231_v50 = vmul.f32 %v673_v20, %v852_v36  ;;  %694 = vrcp.f32 %v369_v19  ;;  %v406_v36 = vmul.f32 %v653_v39, %v953_v57  ;;  %v1065_v20 = vmul.f32 %v663_v3, %v971_v2 }
 0x136   :  { %v149_v49 = vpop.xlane.xlu0 %148  ;;  %v677_v28 = vpop.eup %676  ;;  %696 = vrsqrt.f32 %v202_v38  ;;  %v194_v53 = vmul.f32 0.125, %v170_v48  ;;  %v1072_v38 = vmul.f32 %v669_v26, %v977_v6  ;;  %v364_v48 = vadd.f32 1.0, %v675_v24 }
 0x137   :  { %v187_v58 = vmul.f32 0.125, %v149_v49  ;;  %v1056_v4 = vpop.eup %678  ;;  %698 = vrsqrt.f32 %v209_v41  ;;  %v254_v5 = vmul.f32 %v1046_v34, %v231_v50  ;;  %v1081_v6 = vmul.f32 %v677_v28, %v989_v14 }
 0x138   :  { %v681_v9 = vpop.eup %680  ;;  %v210_v12 = vadd.f32 1e-05, %v194_v53  ;;  %700 = vrcp.f32 %v370_v42 }
 0x139   :  { %v203_v13 = vadd.f32 1e-05, %v187_v58  ;;  %v683_v19 = vpop.eup %682  ;;  %v152_v27 = vpop.xlane.xlu1 %151  ;;  %v232_v56 = vmul.f32 %v681_v9, %v860_v44  ;;  %v277_v22 = vadd.f32 %v1052_v60, %v254_v5  ;;  %702 = vrcp.f32 %v363_v52 }
 0x13a   :  { %v173_v31 = vpop.xlane.xlu0 %172  ;;  %v1067_v57 = vpop.eup %684  ;;  %704 = vrsqrt.f32 %v210_v12  ;;  %v188_v59 = vmul.f32 0.125, %v152_v27  ;;  %v239_v43 = vmul.f32 %v683_v19, %v854_v37  ;;  %v1075_v44 = vmul.f32 %v671_v32, %v983_v8 }
 0x13b   :  { %v195_v39 = vmul.f32 0.125, %v173_v31  ;;  %v687_v61 = vpop.eup %686  ;;  %706 = vrsqrt.f32 %v203_v13  ;;  %v255_v51 = vmul.f32 %v1046_v34, %v232_v56  ;;  %v421_v53 = vmul.f32 %v405_v62, %v277_v22 }
 0x13c   :  { %v689_v2 = vpop.eup %688  ;;  %v204_v3 = vadd.f32 1e-05, %v188_v59  ;;  %v262_v42 = vmul.f32 %v1046_v34, %v239_v43 }
 0x13d   :  { %v211_v41 = vadd.f32 1e-05, %v195_v39  ;;  %v691_v49 = vpop.eup %690  ;;  %v176_v50 = vpop.xlane.xlu1 %175  ;;  %v278_v37 = vadd.f32 %v1052_v60, %v255_v51  ;;  %v240_v58 = vmul.f32 %v689_v2, %v862_v45 }
 0x13e   :  { %v155_v52 = vpop.xlane.xlu0 %154  ;;  %v1083_v26 = vpop.eup %692  ;;  %v233_v8 = vmul.f32 %v691_v49, %v870_v54  ;;  %708 = vrsqrt.f32 %v204_v3  ;;  %v196_v32 = vmul.f32 0.125, %v176_v50  ;;  %v285_v62 = vadd.f32 %v1052_v60, %v262_v42 }
 0x13f   :  { %v189_v5 = vmul.f32 0.125, %v155_v52  ;;  %v1086_v9 = vpop.eup %694  ;;  %710 = vrsqrt.f32 %v211_v41  ;;  %v422_v24 = vmul.f32 %v406_v36, %v278_v37  ;;  %v263_v12 = vmul.f32 %v1046_v34, %v240_v58 }
 0x140   :  { %v697_v13 = vpop.eup %696  ;;  %v212_v45 = vadd.f32 1e-05, %v196_v32  ;;  %v256_v14 = vmul.f32 %v1046_v34, %v233_v8  ;;  %712 = vrcp.f32 %v364_v48  ;;  %v429_v59 = vmul.f32 %v413_v7, %v285_v62 }
 0x141   :  { %v205_v19 = vadd.f32 1e-05, %v189_v5  ;;  %v699_v28 = vpop.eup %698  ;;  %v234_v54 = vmul.f32 %v697_v13, %v872_v55  ;;  %v158_v27 = vpop.xlane.xlu1 %157  ;;  %v437_v56 = vpack.c.bf16 %v422_v24, %v421_v53  ;;  %v286_v22 = vadd.f32 %v1052_v60, %v263_v12 }
 0x142   :  { %v179_v31 = vpop.xlane.xlu0 %178  ;;  %v701_v36 = vpop.eup %700  ;;  %v241_v39 = vmul.f32 %v699_v28, %v881_v0  ;;  %714 = vrsqrt.f32 %v212_v45  ;;  %v190_v43 = vmul.f32 0.125, %v158_v27  ;;  %v279_v41 = vadd.f32 %v1052_v60, %v256_v14 }
 0x143   :  { %v197_v51 = vmul.f32 0.125, %v179_v31  ;;  %v1094_v2 = vpop.eup %702  ;;  %716 = vrsqrt.f32 %v205_v19  ;;  %612 = vmatprep.mubr.msk.bf16.mxu0 %vm37_vm0, %v437_v56  ;;  %v430_v3 = vmul.f32 %v414_v15, %v286_v22  ;;  %v257_v55 = vmul.f32 %v1046_v34, %v234_v54 }
 0x144   :  { %v705_v42 = vpop.eup %704  ;;  %v206_v48 = vadd.f32 1e-05, %v190_v43  ;;  %v264_v7 = vmul.f32 %v1046_v34, %v241_v39  ;;  %v371_v0 = vadd.f32 1.0, %v1056_v4  ;;  %v372_v8 = vadd.f32 1.0, %v687_v61 }
 0x145   :  { %v213_v49 = vadd.f32 1e-05, %v197_v51  ;;  %v707_v50 = vpop.eup %706  ;;  %v242_v52 = vmul.f32 %v705_v42, %v884_v1  ;;  %v182_v37 = vpop.xlane.xlu1 %181  ;;  %v441_v53 = vpack.c.bf16 %v430_v3, %v429_v59  ;;  %v280_v58 = vadd.f32 %v1052_v60, %v257_v55 }
 0x146   :  { %v235_v15 = vmul.f32 %v707_v50, %v893_v10  ;;  %718 = vrsqrt.f32 %v206_v48  ;;  %v198_v32 = vmul.f32 0.125, %v182_v37  ;;  %v423_v5 = vmul.f32 %v1065_v20, %v279_v41 }
 0x147   :  { %720 = vrsqrt.f32 %v213_v49  ;;  %620 = vmatprep.mubr.msk.bf16.mxu1 %vm37_vm0, %v441_v53  ;;  %v424_v24 = vmul.f32 %v1072_v38, %v280_v58  ;;  %v265_v4 = vmul.f32 %v1046_v34, %v242_v52  ;;  %v287_v1 = vadd.f32 %v1052_v60, %v264_v7 }
 0x148   :  { %v709_v12 = vpop.eup %708  ;;  %v214_v62 = vadd.f32 1e-05, %v198_v32  ;;  %v258_v13 = vmul.f32 %v1046_v34, %v235_v15  ;;  %722 = vrcp.f32 %v371_v0  ;;  %v409_v38 = vmul.f32 %v1067_v57, %v996_v16 }
 0x149   :  { %v711_v61 = vpop.eup %710  ;;  %v236_v10 = vmul.f32 %v709_v12, %v896_v11  ;;  %v438_v45 = vpack.c.bf16 %v424_v24, %v423_v5  ;;  %v288_v20 = vadd.f32 %v1052_v60, %v265_v4  ;;  %724 = vrcp.f32 %v372_v8 }
 0x14a   :  { %v713_v19 = vpop.eup %712  ;;  %v243_v14 = vmul.f32 %v711_v61, %v905_v23  ;;  %726 = vrsqrt.f32 %v214_v62  ;;  %v410_v28 = vmul.f32 %v1083_v26, %v1001_v30  ;;  %v431_v54 = vmul.f32 %v1075_v44, %v287_v1 }
 0x14b   :  { %613 = vmatmul.mubr.msk.bf16.vlgmr.msra.gmra.mrb[0].mxu0 %vm37_vm0, %v438_v45  ;;  %v432_v11 = vmul.f32 %v1081_v6, %v288_v20  ;;  %v259_v27 = vmul.f32 %v1046_v34, %v236_v10  ;;  %v281_v31 = vadd.f32 %v1052_v60, %v258_v13  ;;  %v417_v44 = vmul.f32 %v1086_v9, %v1007_v33 }
 0x14c   :  { %v715_v56 = vpop.eup %714  ;;  %v266_v23 = vmul.f32 %v1046_v34, %v243_v14  ;;  %v418_v6 = vmul.f32 %v701_v36, %v1013_v40  ;;  %v411_v9 = vmul.f32 %v1094_v2, %v1019_v46  ;;  %v412_v36 = vmul.f32 %v713_v19, %v1026_v29 }
 0x14d   :  { %v717_v22 = vpop.eup %716  ;;  %v244_v59 = vmul.f32 %v715_v56, %v908_v17  ;;  %v442_v16 = vpack.c.bf16 %v432_v11, %v431_v54  ;;  %v282_v57 = vadd.f32 %v1052_v60, %v259_v27  ;;  %v425_v26 = vmul.f32 %v409_v38, %v281_v31 }
 0x14e   :  { %v237_v30 = vmul.f32 %v717_v22, %v917_v35  ;;  %v289_v51 = vadd.f32 %v1052_v60, %v266_v23 }
 0x14f   :  { %621 = vmatmul.mubr.msk.bf16.vlgmr.msra.gmra.mrb[0].mxu1 %vm37_vm0, %v442_v16  ;;  %v426_v39 = vmul.f32 %v410_v28, %v282_v57  ;;  %v267_v43 = vmul.f32 %v1046_v34, %v244_v59 }
 0x150   :  { %v719_v3 = vpop.eup %718  ;;  %v260_v17 = vmul.f32 %v1046_v34, %v237_v30  ;;  %v433_v49 = vmul.f32 %v417_v44, %v289_v51 }
 0x151   :  { %v721_v55 = vpop.eup %720  ;;  %v238_v41 = vmul.f32 %v719_v3, %v920_v21  ;;  %v439_v35 = vpack.c.bf16 %v426_v39, %v425_v26  ;;  %v290_v42 = vadd.f32 %v1052_v60, %v267_v43 }
 0x152   :  { %v723_v33 = vpop.eup %722  ;;  %v245_v40 = vmul.f32 %v721_v55, %v929_v47  ;;  %v283_v21 = vadd.f32 %v1052_v60, %v260_v17 }
 0x153   :  { %v725_v48 = vpop.eup %724  ;;  %616 = vmatprep.mubr.msk.bf16.mxu0 %vm37_vm0, %v439_v35  ;;  %v434_v7 = vmul.f32 %v418_v6, %v290_v42  ;;  %v261_v0 = vmul.f32 %v1046_v34, %v238_v41  ;;  %v419_v46 = vmul.f32 %v723_v33, %v1031_v63 }
 0x154   :  { %v727_v50 = vpop.eup %726  ;;  %v268_v52 = vmul.f32 %v1046_v34, %v245_v40  ;;  %v420_v29 = vmul.f32 %v725_v48, %v1038_v18  ;;  %v427_v2 = vmul.f32 %v411_v9, %v283_v21 }
 0x155   :  { %v246_v37 = vmul.f32 %v727_v50, %v932_v25  ;;  %v443_v47 = vpack.c.bf16 %v434_v7, %v433_v49  ;;  %v284_v53 = vadd.f32 %v1052_v60, %v261_v0 }
 0x156   :  { %v291_v15 = vadd.f32 %v1052_v60, %v268_v52 }
 0x157   :  { %624 = vmatprep.mubr.msk.bf16.mxu1 %vm37_vm0, %v443_v47  ;;  %v428_v58 = vmul.f32 %v412_v36, %v284_v53  ;;  %v269_v8 = vmul.f32 %v1046_v34, %v246_v37 }
 0x158   :  { %v435_v25 = vmul.f32 %v419_v46, %v291_v15 }
 0x159   :  { %v440_v32 = vpack.c.bf16 %v428_v58, %v427_v2  ;;  %v292_v5 = vadd.f32 %v1052_v60, %v269_v8 }
 0x15b   :  { %617 = vmatmul.mubr.msk.bf16.gmra.mrb[4].mxu0 %vm37_vm0, %v440_v32  ;;  %v436_v24 = vmul.f32 %v420_v29, %v292_v5 }
 0x15d   :  { %v444_v4 = vpack.c.bf16 %v436_v24, %v435_v25 }
 0x15f   :  { %625 = vmatmul.mubr.msk.bf16.gmra.mrb[4].mxu1 %vm37_vm0, %v444_v4 }
 0x21e   :  { %v614_v63 = vpop.f32.mrb[0].mxu0 }
 0x21f   :  { %573 = vst [vmem:[%s1206_s5 + $0x10] sm:$0xff] %v614_v63  ;;  %v508_v18 = vpop.f32.mrb[1].mxu0 }
 0x220   :  { %571 = vst [vmem:[%s1206_s5] sm:$0xff] %v508_v18  ;;  %v615_v34 = vpop.f32.mrb[2].mxu0 }
 0x221   :  { %574 = vst [vmem:[%s1206_s5 + $0x18] sm:$0xff] %v615_v34  ;;  %v511_v60 = vpop.f32.mrb[3].mxu0 }
 0x222   :  { %572 = vst [vmem:[%s1206_s5 + $0x8] sm:$0xff] %v511_v60  ;;  %v622_v1 = vpop.f32.mrb[0].mxu1 }
 0x223   :  { %581 = vst [vmem:[%s1206_s5 + $0x50] sm:$0xff] %v622_v1  ;;  %v540_v12 = vpop.f32.mrb[1].mxu1 }
 0x224   :  { %579 = vst [vmem:[%s1206_s5 + $0x40] sm:$0xff] %v540_v12  ;;  %v623_v62 = vpop.f32.mrb[2].mxu1 }
 0x225   :  { %582 = vst [vmem:[%s1206_s5 + $0x58] sm:$0xff] %v623_v62  ;;  %v543_v13 = vpop.f32.mrb[3].mxu1 }
 0x226   :  { %580 = vst [vmem:[%s1206_s5 + $0x48] sm:$0xff] %v543_v13 }
 0x22e   :  { %v618_v61 = vpop.f32.mrb[4].mxu0 }
 0x22f   :  { %577 = vst [vmem:[%s1206_s5 + $0x30] sm:$0xff] %v618_v61  ;;  %v524_v10 = vpop.f32.mrb[5].mxu0 }
 0x230   :  { %575 = vst [vmem:[%s1206_s5 + $0x20] sm:$0xff] %v524_v10  ;;  %v619_v45 = vpop.f32.mrb[6].mxu0 }
 0x231   :  { %578 = vst [vmem:[%s1206_s5 + $0x38] sm:$0xff] %v619_v45  ;;  %v527_v20 = vpop.f32.mrb[7].mxu0 }
 0x232   :  { %576 = vst [vmem:[%s1206_s5 + $0x28] sm:$0xff] %v527_v20  ;;  %v626_v19 = vpop.f32.mrb[4].mxu1 }
 0x233   :  { %585 = vst [vmem:[%s1206_s5 + $0x70] sm:$0xff] %v626_v19  ;;  %v556_v14 = vpop.f32.mrb[5].mxu1 }
 0x234   :  { %583 = vst [vmem:[%s1206_s5 + $0x60] sm:$0xff] %v556_v14  ;;  %v627_v38 = vpop.f32.mrb[6].mxu1 }
 0x235   :  { %586 = vst [vmem:[%s1206_s5 + $0x78] sm:$0xff] %v627_v38  ;;  %v559_v28 = vpop.f32.mrb[7].mxu1 }
 0x236   :  { %584 = vst [vmem:[%s1206_s5 + $0x68] sm:$0xff] %v559_v28 }

// kernel: vsslayer_forward.22
= control target key start
LH: loop header
LB: loop body
LE: loop exit
PB: predicated region body
PF: predicated region fallthrough
CT: control target
= control target key end

     0   :  { %s1711_s24 = smov 0   ;;  %s1713_s25 = smov 0   ;;  %s2007_s0 = inlined_call_operand.vmem [shape: f32[2,4,64,8], index: 0, kind: input, shape index: {}]   ;;  %s2008_s1 = inlined_call_operand.vmem [shape: f32[2,4,64,8], index: 1, kind: input, shape index: {}]   ;;  %s2009_s2 = inlined_call_operand.vmem [shape: f32[2,4,64,8], index: 2, kind: input, shape index: {}]   ;;  %s2010_s3 = inlined_call_operand.vmem [shape: f32[2,4,64,8], index: 3, kind: input, shape index: {}]   ;;  %s2011_s4 = inlined_call_operand.vmem [shape: f32[4,8,8], index: 4, kind: input, shape index: {}]   ;;  %s2012_s5 = inlined_call_operand.vmem [shape: f32[4,1,8], index: 5, kind: input, shape index: {}]   ;;  %s2013_s6 = inlined_call_operand.vmem [shape: f32[4,1,8], index: 6, kind: input, shape index: {}]   ;;  %s2014_s7 = inlined_call_operand.vmem [shape: f32[2,4,64,8], index: 7, kind: output, shape index: {}]  }
   0x1   :  { %s1715_s26 = smov 0   ;;  %s1717_s27 = smov 0  }
   0x2   :  { %s1719_s28 = smov 0  }
   0x3 LB: > { %s32_s29 = sadd.s32 1, %s1644_s26  ;;  %s36_s30 = sadd.s32 1, %s1648_s27  ;;  %s1652_s28 = sphi %s1719_s28, %s17_s28   ;;  %s1648_s27 = sphi %s1717_s27, %s2019_s27   ;;  %s1644_s26 = sphi %s1715_s26, %s2018_s26   ;;  %s1640_s25 = sphi %s1713_s25, %s2017_s25   ;;  %s1636_s24 = sphi %s1711_s24, %s2016_s24  }
   0x4   : > { %p34_p0 = scmp.ge.s32.totalorder %s32_s29, 4  ;;  %p1395_p1 = scmp.ge.s32.totalorder %s1652_s28, 1 }
   0x5   : > { %p367_p2 = scmp.lt.s32.totalorder %s1652_s28, 9 }
   0x6   : > { %s2021_s29 = smov (%p34_p0, %s32_s29), 0  ;;  %s2023_s30 = smov (!%p34_p0, %s36_s30), %s1648_s27 }
   0x7   : > { %p368_p3 = pnand %p1395_p1, %p367_p2  ;;  %p38_p4 = scmp.ge.s32.totalorder %s2023_s30, 2 }
   0x8   : > { %vm632_vm0 = vcmask (!%p368_p3), 64512   ;;  %p465_p5 = scmp.lt.s32.totalorder (!%p368_p3), %s1640_s25, 1  ;;  %p467_p6 = scmp.lt.s32.totalorder (!%p368_p3), %s1636_s24, 3  ;;  %v1662_v0 = vmov (!%p368_p3), 0.0  }
   0x9   : > { %s2025_s30 = smov (%p38_p4, %s2023_s30), 0  ;;  %371 = sbr.rel (%p368_p3) target bundleno = 420 (0x1a4), region = 48 }
   0xa   : > { %669 = vst.msk [vmem:[#allocation2] sm:$0xff] (!%p368_p3), %vm632_vm0, %v1662_v0  ;;  %s1863_s21 = smov (!%p368_p3), 0  }
  0x10   : > { %s2027_s25 = smov (!%p465_p5, %s1640_s25), 1  ;;  %s2029_s24 = smov (!%p467_p6, %s1636_s24), 3 }
  0x11   : > { %s1397_s8 = sshll.u32 %s2027_s25, 5  ;;  %s1396_s9 = sshll.u32 %s2029_s24, 3  ;;  %v1760_v2 = vld [vmem:[#allocation2] sm:$0xff]  }
  0x12   : > { %s526_s12 = scalar_lea.vmem %s2012_s5, %s2029_s24  ;;  %s474_s13 = sadd.s32 %s1397_s8, %s1396_s9 }
  0x13   : > { %s523_s16 = scalar_lea.vmem %s2011_s4, %s1396_s9  ;;  %s1752_s17 = sshll.u32 %s474_s13, 3 }
  0x14   : > { %s529_s20 = scalar_lea.vmem %s2013_s6, %s2029_s24  ;;  %v1758_v1 = vld [vmem:[%s523_s16] sm:$0xff]  ;;  %s490_s23 = scalar_lea.vmem %s2008_s1, %s1752_s17 }
  0x15   : > { %s504_s9 = scalar_lea.vmem %s2009_s2, %s1752_s17  ;;  %v1412_v3 = vld [vmem:[%s529_s20] ss:$0 sm:$0xff]  ;;  %s518_s13 = scalar_lea.vmem %s2010_s3, %s1752_s17  ;;  %v546_v5 = vld [vmem:[%s490_s23 + $0x8] sm:$0xff]  ;;  %v547_v6 = vld [vmem:[%s490_s23 + $0x10] sm:$0xff] }
  0x16   : > { %s1778_s16 = scalar_lea.vmem %s2014_s7, %s1752_s17  ;;  %v545_v4 = vld [vmem:[%s490_s23] sm:$0xff]  ;;  %v1782_v8 = vadd.f32 %v1412_v3, %v546_v5  ;;  %v1784_v9 = vadd.f32 %v1412_v3, %v547_v6  ;;  %v548_v10 = vld [vmem:[%s490_s23 + $0x18] sm:$0xff]  ;;  %v550_v12 = vld [vmem:[%s490_s23 + $0x28] sm:$0xff]  ;;  %s1808_s20 = scalar_lea.vmem %s2007_s0, %s1752_s17 }
  0x17   : > { %v1780_v7 = vadd.f32 %v1412_v3, %v545_v4  ;;  %v549_v11 = vld [vmem:[%s490_s23 + $0x20] sm:$0xff]  ;;  %v1786_v13 = vadd.f32 %v1412_v3, %v548_v10  ;;  %v1790_v15 = vadd.f32 %v1412_v3, %v550_v12  ;;  %v551_v20 = vld [vmem:[%s490_s23 + $0x30] sm:$0xff]  ;;  %v552_v21 = vld [vmem:[%s490_s23 + $0x38] sm:$0xff] }
  0x18   : > { %v1788_v14 = vadd.f32 %v1412_v3, %v549_v11  ;;  %v577_v17 = vmin.f32 %v1782_v8, 20.0  ;;  %v578_v18 = vmin.f32 %v1784_v9, 20.0  ;;  %v1798_v29 = vadd.f32 %v1412_v3, %v551_v20  ;;  %v641_v55 = vld [vmem:[%s1808_s20] sm:$0xff]  ;;  %v642_v58 = vld [vmem:[%s1808_s20 + $0x8] sm:$0xff]  ;;  %v643_v62 = vld [vmem:[%s1808_s20 + $0x10] sm:$0xff] }
  0x19   : > { %v576_v16 = vmin.f32 %v1780_v7, 20.0  ;;  %v579_v19 = vmin.f32 %v1786_v13, 20.0  ;;  %v581_v27 = vmin.f32 %v1790_v15, 20.0  ;;  %v1800_v30 = vadd.f32 %v1412_v3, %v552_v21  ;;  %v644_v5 = vld [vmem:[%s1808_s20 + $0x18] sm:$0xff]  ;;  %v645_v12 = vld [vmem:[%s1808_s20 + $0x20] sm:$0xff] }
  0x1a   : > { %v586_v23 = vmul.f32 1.442695, %v577_v17  ;;  %v580_v24 = vmin.f32 %v1788_v14, 20.0  ;;  %v588_v25 = vmul.f32 1.442695, %v578_v18  ;;  %v582_v32 = vmin.f32 %v1798_v29, 20.0 }
  0x1b   : > { %v584_v22 = vmul.f32 1.442695, %v576_v16  ;;  %v590_v26 = vmul.f32 1.442695, %v579_v19  ;;  %v594_v31 = vmul.f32 1.442695, %v581_v27 }
  0x1c   : > { %v592_v28 = vmul.f32 1.442695, %v580_v24  ;;  %v583_v33 = vmin.f32 %v1800_v30, 20.0  ;;  %v596_v34 = vmul.f32 1.442695, %v582_v32  ;;  %vm568_vm1 = vcmp.gt.f32.partialorder %v1780_v7, 20.0 }
  0x1d   : > { %1541 = vpow2.f32 %v584_v22  ;;  %vm569_vm2 = vcmp.gt.f32.partialorder %v1782_v8, 20.0  ;;  %vm570_vm3 = vcmp.gt.f32.partialorder %v1784_v9, 20.0  ;;  %vm571_vm4 = vcmp.gt.f32.partialorder %v1786_v13, 20.0  ;;  %v646_v18 = vld [vmem:[%s1808_s20 + $0x28] sm:$0xff]  ;;  %v647_v22 = vld [vmem:[%s1808_s20 + $0x30] sm:$0xff] }
  0x1e   : > { %1543 = vpow2.f32 %v586_v23  ;;  %v598_v35 = vmul.f32 1.442695, %v583_v33  ;;  %vm572_vm5 = vcmp.gt.f32.partialorder %v1788_v14, 20.0  ;;  %vm573_vm6 = vcmp.gt.f32.partialorder %v1790_v15, 20.0 }
  0x1f   : > { %1545 = vpow2.f32 %v588_v25  ;;  %vm574_vm7 = vcmp.gt.f32.partialorder %v1798_v29, 20.0  ;;  %vm575_vm8 = vcmp.gt.f32.partialorder %v1800_v30, 20.0 }
  0x20   : > { %1547 = vpow2.f32 %v590_v26  ;;  %v648_v26 = vld [vmem:[%s1808_s20 + $0x38] sm:$0xff] }
  0x21   : > { %1549 = vpow2.f32 %v592_v28 }
  0x22   : > { %1551 = vpow2.f32 %v594_v31 }
  0x23   : > { %1553 = vpow2.f32 %v596_v34 }
  0x24   : > { %1555 = vpow2.f32 %v598_v35 }
  0x27   : > { %v1542_v36 = vpop.eup %1541 }
  0x28   : > { %v1544_v37 = vpop.eup %1543  ;;  %v600_v38 = vadd.f32 1.0, %v1542_v36 }
  0x29   : > { %v1546_v39 = vpop.eup %1545  ;;  %v601_v40 = vadd.f32 1.0, %v1544_v37 }
  0x2a   : > { %v1548_v41 = vpop.eup %1547  ;;  %1557 = vlog2.f32 %v600_v38  ;;  %v602_v42 = vadd.f32 1.0, %v1546_v39 }
  0x2b   : > { %v1550_v43 = vpop.eup %1549  ;;  %1559 = vlog2.f32 %v601_v40  ;;  %v603_v44 = vadd.f32 1.0, %v1548_v41 }
  0x2c   : > { %v1552_v45 = vpop.eup %1551  ;;  %1561 = vlog2.f32 %v602_v42  ;;  %v604_v46 = vadd.f32 1.0, %v1550_v43 }
  0x2d   : > { %v1554_v47 = vpop.eup %1553  ;;  %1563 = vlog2.f32 %v603_v44  ;;  %v605_v48 = vadd.f32 1.0, %v1552_v45 }
  0x2e   : > { %v1556_v49 = vpop.eup %1555  ;;  %1565 = vlog2.f32 %v604_v46  ;;  %v606_v50 = vadd.f32 1.0, %v1554_v47 }
  0x2f   : > { %1567 = vlog2.f32 %v605_v48  ;;  %v607_v51 = vadd.f32 1.0, %v1556_v49 }
  0x30   : > { %1569 = vlog2.f32 %v606_v50 }
  0x31   : > { %1571 = vlog2.f32 %v607_v51 }
  0x34   : > { %v1558_v52 = vpop.eup %1557 }
  0x35   : > { %v1560_v53 = vpop.eup %1559  ;;  %v609_v54 = vmul.f32 0.6931472, %v1558_v52 }
  0x36   : > { %v1562_v56 = vpop.eup %1561  ;;  %v611_v57 = vmul.f32 0.6931472, %v1560_v53 }
  0x37   : > { %v1564_v59 = vpop.eup %1563  ;;  %v624_v60 = vsel %vm568_vm1, %v1780_v7, %v609_v54  ;;  %v613_v61 = vmul.f32 0.6931472, %v1562_v56 }
  0x38   : > { %v1566_v63 = vpop.eup %1565  ;;  %633 = vst.msk [vmem:[#allocation3] sm:$0xff] %vm632_vm0, %v624_v60  ;;  %v625_v0 = vsel %vm569_vm2, %v1782_v8, %v611_v57  ;;  %v615_v3 = vmul.f32 0.6931472, %v1564_v59  ;;  %v649_v4 = vmul.f32 %v641_v55, %v624_v60 }
  0x39   : > { %v1568_v6 = vpop.eup %1567  ;;  %634 = vst.msk [vmem:[#allocation3 + $0x8] sm:$0xff] %vm632_vm0, %v625_v0  ;;  %v626_v7 = vsel %vm570_vm3, %v1784_v9, %v613_v61  ;;  %v617_v10 = vmul.f32 0.6931472, %v1566_v63  ;;  %v650_v11 = vmul.f32 %v642_v58, %v625_v0 }
  0x3a   : > { %v1570_v8 = vpop.eup %1569  ;;  %635 = vst.msk [vmem:[#allocation3 + $0x10] sm:$0xff] %vm632_vm0, %v626_v7  ;;  %v627_v16 = vsel %vm571_vm4, %v1786_v13, %v615_v3  ;;  %v619_v17 = vmul.f32 0.6931472, %v1568_v6  ;;  %657 = vst.msk [vmem:[#allocation4] sm:$0xff] %vm632_vm0, %v649_v4  ;;  %v651_v9 = vmul.f32 %v643_v62, %v626_v7 }
  0x3b   : > { %v1572_v19 = vpop.eup %1571  ;;  %636 = vst.msk [vmem:[#allocation3 + $0x18] sm:$0xff] %vm632_vm0, %v627_v16  ;;  %v628_v20 = vsel %vm572_vm5, %v1788_v14, %v617_v10  ;;  %v621_v21 = vmul.f32 0.6931472, %v1570_v8  ;;  %658 = vst.msk [vmem:[#allocation4 + $0x8] sm:$0xff] %vm632_vm0, %v650_v11  ;;  %v652_v13 = vmul.f32 %v644_v5, %v627_v16 }
  0x3c   : > { %637 = vst.msk [vmem:[#allocation3 + $0x20] sm:$0xff] %vm632_vm0, %v628_v20  ;;  %v629_v23 = vsel %vm573_vm6, %v1790_v15, %v619_v17  ;;  %v623_v24 = vmul.f32 0.6931472, %v1572_v19  ;;  %659 = vst.msk [vmem:[#allocation4 + $0x10] sm:$0xff] %vm632_vm0, %v651_v9  ;;  %v653_v25 = vmul.f32 %v645_v12, %v628_v20 }
  0x3d   : > { %638 = vst.msk [vmem:[#allocation3 + $0x28] sm:$0xff] %vm632_vm0, %v629_v23  ;;  %v630_v14 = vsel %vm574_vm7, %v1798_v29, %v621_v21  ;;  %660 = vst.msk [vmem:[#allocation4 + $0x18] sm:$0xff] %vm632_vm0, %v652_v13  ;;  %v654_v27 = vmul.f32 %v646_v18, %v629_v23 }
  0x3e   : > { %639 = vst.msk [vmem:[#allocation3 + $0x30] sm:$0xff] %vm632_vm0, %v630_v14  ;;  %v631_v28 = vsel %vm575_vm8, %v1800_v30, %v623_v24  ;;  %661 = vst.msk [vmem:[#allocation4 + $0x20] sm:$0xff] %vm632_vm0, %v653_v25  ;;  %v655_v15 = vmul.f32 %v647_v22, %v630_v14 }
  0x3f   : > { %640 = vst.msk [vmem:[#allocation3 + $0x38] sm:$0xff] %vm632_vm0, %v631_v28  ;;  %662 = vst.msk [vmem:[#allocation4 + $0x28] sm:$0xff] %vm632_vm0, %v654_v27  ;;  %v656_v31 = vmul.f32 %v648_v26, %v631_v28 }
  0x40   : > { %663 = vst.msk [vmem:[#allocation4 + $0x30] sm:$0xff] %vm632_vm0, %v655_v15 }
  0x41   : > { %664 = vst.msk [vmem:[#allocation4 + $0x38] sm:$0xff] %vm632_vm0, %v656_v31 }
  0x42 LB: >> { %v1663_v29 = vmov 0   ;;  %s1872_s22 = sshll.u32 %s1660_s21, 3  ;;  %v1664_v33 = vmov 2   ;;  %v1665_v36 = vmov 1   ;;  %v1666_v37 = vmov 6   ;;  %s676_s21 = sadd.s32 1, %s1660_s21   ;;  %s1660_s21 = sphi %s1863_s21, %s676_s21   ;;  %v1656_v2 = vphi %v1760_v2, %v2015_v2  }
  0x43   : >> { %1573 = vset.pattern.permute.xlu1 %v1663_v29  ;;  %s679_s8 = scalar_lea.vmem %s504_s9, %s1872_s22  ;;  %s713_s14 = scalar_lea.vmem %s518_s13, %s1872_s22  ;;  %v1667_v38 = vmov 3   ;;  %v1668_v39 = vmov 7   ;;  %v1669_v40 = vmov 4   ;;  %v1670_v41 = vmov 5  }
  0x44   : >> { %v680_v30 = vld [vmem:[%s679_s8] sm:$0xff]  ;;  %s1887_s15 = scalar_lea.vmem [#allocation3], %s1872_s22  ;;  %s1900_s18 = scalar_lea.vmem [#allocation4], %s1872_s22  ;;  %vm784_vm9 = vcmask 57344  }
  0x45   : >> { %681 = vxpose.xlu0.b32.start.end [1/1] (short) (narrow) %v680_v30, 8  ;;  %v714_v32 = vld [vmem:[%s713_s14] sm:$0xff]  ;;  %s1923_s19 = scalar_lea.vmem %s1778_s16, %s1872_s22  ;;  %p673_p7 = scmp.ge.s32.totalorder %s676_s21, 8  }
  0x46   : >> { %v1414_v42 = vld [vmem:[%s1887_s15] ss:$0 sm:$0xff]  ;;  %v1420_v44 = vld [vmem:[%s1887_s15 + $0x1] ss:$0 sm:$0xff]  ;;  %v1428_v47 = vld [vmem:[%s1887_s15 + $0x2] ss:$0 sm:$0xff] }
  0x47   : >> { %v755_v43 = vmul.f32 %v1414_v42, %v1758_v1  ;;  %v795_v46 = vmul.f32 %v1420_v44, %v1758_v1  ;;  %v832_v49 = vmul.f32 %v1428_v47, %v1758_v1  ;;  %v1436_v50 = vld [vmem:[%s1887_s15 + $0x3] ss:$0 sm:$0xff]  ;;  %v1444_v53 = vld [vmem:[%s1887_s15 + $0x4] ss:$0 sm:$0xff]  ;;  %v1452_v58 = vld [vmem:[%s1887_s15 + $0x5] ss:$0 sm:$0xff] }
  0x48   : >> { %v869_v52 = vmul.f32 %v1436_v50, %v1758_v1  ;;  %v906_v56 = vmul.f32 %v1444_v53, %v1758_v1  ;;  %v1415_v57 = vld [vmem:[%s1900_s18] ss:$0 sm:$0xff]  ;;  %v943_v63 = vmul.f32 %v1452_v58, %v1758_v1  ;;  %v1460_v3 = vld [vmem:[%s1887_s15 + $0x6] ss:$0 sm:$0xff]  ;;  %v1421_v5 = vld [vmem:[%s1900_s18 + $0x1] ss:$0 sm:$0xff] }
  0x49   : >> { %715 = vxpose.xlu0.b32.start.end [1/1] (short) (narrow) %v714_v32, 8  ;;  %v756_v45 = vmul.f32 1.442695, %v755_v43  ;;  %v796_v48 = vmul.f32 1.442695, %v795_v46  ;;  %v980_v11 = vmul.f32 %v1460_v3, %v1758_v1 }
  0x4a   : >> { %v833_v51 = vmul.f32 1.442695, %v832_v49  ;;  %v870_v55 = vmul.f32 1.442695, %v869_v52  ;;  %v907_v62 = vmul.f32 1.442695, %v906_v56 }
  0x4b   : >> { %1590 = vpow2.f32 %v756_v45  ;;  %v944_v10 = vmul.f32 1.442695, %v943_v63  ;;  %v1429_v8 = vld [vmem:[%s1900_s18 + $0x2] ss:$0 sm:$0xff]  ;;  %v981_v9 = vmul.f32 1.442695, %v980_v11 }
  0x4c   : >> { %1592 = vpow2.f32 %v796_v48  ;;  %v1437_v13 = vld [vmem:[%s1900_s18 + $0x3] ss:$0 sm:$0xff]  ;;  %v1445_v26 = vld [vmem:[%s1900_s18 + $0x4] ss:$0 sm:$0xff]  ;;  %v1453_v31 = vld [vmem:[%s1900_s18 + $0x5] ss:$0 sm:$0xff] }
  0x4d   : >> { %1594 = vpow2.f32 %v833_v51  ;;  %v1468_v50 = vld [vmem:[%s1887_s15 + $0x7] ss:$0 sm:$0xff] }
  0x4e   : >> { %1596 = vpow2.f32 %v870_v55  ;;  %v1017_v55 = vmul.f32 %v1468_v50, %v1758_v1  ;;  %v1055_v1 = vld [vmem:[%s1808_s20] sm:$0xff] (%p673_p7) }
  0x4f   : >> { %1598 = vpow2.f32 %v907_v62 }
  0x50   : >> { %1600 = vpow2.f32 %v944_v10  ;;  %v1018_v63 = vmul.f32 1.442695, %v1017_v55 }
  0x51   : >> { %1602 = vpow2.f32 %v981_v9 }
  0x52   : >> { %1604 = vpow2.f32 %v1018_v63 }
  0x55   : >> { %v1591_v54 = vpop.eup %1590 }
  0x56   : >> { %v758_v59 = vmul.f32 %v1656_v2, %v1591_v54  ;;  %v1593_v0 = vpop.eup %1592 }
  0x57   : >> { %v1595_v2 = vpop.eup %1594 }
  0x58   : >> { %v1597_v21 = vpop.eup %1596 }
  0x59   : >> { %v1599_v25 = vpop.eup %1598 }
  0x72   : >> { %1575 = vset.pattern.permute.xlu0 %v1664_v33 }
  0xc5   : >> { %v697_v34 = vpop.trf.xlu0 }
  0xc6   : >> { %837 = vperm.xlu0 %1575, %v697_v34   ;;  %761 = vperm.xlu1 %1573, %v697_v34  }
  0xc9   : >> { %v731_v35 = vpop.trf.xlu0 }
  0xca   : >> { %1574 = vset.pattern.permute.xlu1 %v1665_v36  ;;  %1587 = vset.pattern.permute.xlu0 %v1666_v37 }
  0xcb   : >> { %800 = vperm.xlu1 %1574, %v697_v34   ;;  %995 = vperm.xlu0 %1587, %v731_v35  }
  0xcf   : >> { %1576 = vset.pattern.permute.xlu1 %v1667_v38  ;;  %1589 = vset.pattern.permute.xlu0 %v1668_v39 }
  0xd0   : >> { %874 = vperm.xlu1 %1576, %v697_v34  }
  0xd4   : >> { %1577 = vset.pattern.permute.xlu1 %v1669_v40 }
  0xd5   : >> { %911 = vperm.xlu1 %1577, %v697_v34  }
  0xd9   : >> { %1578 = vset.pattern.permute.xlu1 %v1670_v41 }
  0xda   : >> { %948 = vperm.xlu1 %1578, %v697_v34  }
  0xde   : >> { %1579 = vset.pattern.permute.xlu1 %v1666_v37 }
  0xdf   : >> { %985 = vperm.xlu1 %1579, %v697_v34  }
  0xe3   : >> { %1580 = vset.pattern.permute.xlu1 %v1668_v39 }
  0xe4   : >> { %1022 = vperm.xlu1 %1580, %v697_v34  }
  0xe8   : >> { %1581 = vset.pattern.permute.xlu1 %v1663_v29  ;;  %v1601_v29 = vpop.eup %1600 }
  0xe9   : >> { %772 = vperm.xlu1 %1581, %v731_v35  }
  0xed   : >> { %1582 = vset.pattern.permute.xlu1 %v1665_v36  ;;  %v1461_v36 = vld [vmem:[%s1900_s18 + $0x6] ss:$0 sm:$0xff] }
  0xee   : >> { %810 = vperm.xlu1 %1582, %v731_v35  }
  0xf2   : >> { %1583 = vset.pattern.permute.xlu1 %v1664_v33 }
  0xf3   : >> { %847 = vperm.xlu1 %1583, %v731_v35  }
  0xf7   : >> { %1584 = vset.pattern.permute.xlu1 %v1667_v38 }
  0xf8   : >> { %884 = vperm.xlu1 %1584, %v731_v35  }
  0xfc   : >> { %1585 = vset.pattern.permute.xlu1 %v1669_v40 }
  0xfd   : >> { %921 = vperm.xlu1 %1585, %v731_v35  }
 0x101   : >> { %1586 = vset.pattern.permute.xlu1 %v1670_v41 }
 0x102   : >> { %958 = vperm.xlu1 %1586, %v731_v35  }
 0x106   : >> { %1588 = vset.pattern.permute.xlu1 %v1668_v39 }
 0x107   : >> { %1032 = vperm.xlu1 %1588, %v731_v35   ;;  %v1603_v35 = vpop.eup %1602 }
 0x145   : >> { %v762_v60 = vpop.permute.xlu1 %761  ;;  %v838_v16 = vpop.permute.xlu0 %837 }
 0x146   : >> { %v768_v61 = vmul.f32 %v1415_v57, %v762_v60  ;;  %v844_v18 = vmul.f32 %v1429_v8, %v838_v16 }
 0x148   : >> { %v769_v4 = vadd.f32 %v768_v61, %v758_v59 }
 0x14a   : >> { %v801_v6 = vpop.permute.xlu1 %800  ;;  %v798_v7 = vmul.f32 %v1593_v0, %v769_v4  ;;  %v996_v41 = vpop.permute.xlu0 %995 }
 0x14b   : >> { %v807_v12 = vmul.f32 %v1421_v5, %v801_v6 }
 0x14d   : >> { %v808_v17 = vadd.f32 %v807_v12, %v798_v7 }
 0x14f   : >> { %v835_v19 = vmul.f32 %v1595_v2, %v808_v17  ;;  %v875_v20 = vpop.permute.xlu1 %874 }
 0x150   : >> { %v881_v24 = vmul.f32 %v1437_v13, %v875_v20 }
 0x151   : >> { %v845_v22 = vadd.f32 %v844_v18, %v835_v19 }
 0x153   : >> { %v872_v23 = vmul.f32 %v1597_v21, %v845_v22 }
 0x154   : >> { %v912_v14 = vpop.permute.xlu1 %911 }
 0x155   : >> { %v882_v27 = vadd.f32 %v881_v24, %v872_v23  ;;  %v918_v15 = vmul.f32 %v1445_v26, %v912_v14  ;;  %v1605_v26 = vpop.eup %1604  ;;  %v1469_v14 = vld [vmem:[%s1900_s18 + $0x7] ss:$0 sm:$0xff] }
 0x157   : >> { %v909_v28 = vmul.f32 %v1599_v25, %v882_v27 }
 0x159   : >> { %v919_v30 = vadd.f32 %v918_v15, %v909_v28  ;;  %v949_v32 = vpop.permute.xlu1 %948 }
 0x15a   : >> { %v955_v33 = vmul.f32 %v1453_v31, %v949_v32 }
 0x15b   : >> { %v946_v34 = vmul.f32 %v1601_v29, %v919_v30 }
 0x15d   : >> { %v1914_v37 = vadd.f32 %v955_v33, %v946_v34 }
 0x15e   : >> { %v986_v38 = vpop.permute.xlu1 %985 }
 0x15f   : >> { %v992_v39 = vmul.f32 %v1461_v36, %v986_v38  ;;  %v983_v40 = vmul.f32 %v1603_v35, %v1914_v37 }
 0x161   : >> { %v993_v42 = vadd.f32 %v992_v39, %v983_v40 }
 0x163   : >> { %v998_v43 = vmul.f32 %v996_v41, %v993_v42  ;;  %v1023_v44 = vpop.permute.xlu1 %1022  ;;  %v1020_v35 = vmul.f32 %v1605_v26, %v993_v42 }
 0x164   : >> { %v1029_v32 = vmul.f32 %v1469_v14, %v1023_v44 }
 0x165   : >> { %v999_v45 = vsel %vm632_vm0, %v998_v43, 0.0 }
 0x166   : >> { %v1000_v46 = vrot.slane %v999_v45, 4 }
 0x168   : >> { %v1001_v47 = vadd.f32 %v1000_v46, %v999_v45  ;;  %v773_v48 = vpop.permute.xlu1 %772  ;;  %v1030_v45 = vadd.f32 %v1029_v32, %v1020_v35  }
 0x169   : >> { %v775_v49 = vmul.f32 %v773_v48, %v769_v4 }
 0x16a   : >> { %v1002_v51 = vrot.slane %v1001_v47, 2  ;;  %1045 = vst.msk [vmem:[#allocation2] sm:$0xff] (%p673_p7), %vm632_vm0, %v1030_v45 }
 0x16b   : >> { %v776_v52 = vsel %vm632_vm0, %v775_v49, 0.0 }
 0x16c   : >> { %v1003_v53 = vadd.f32 %v1002_v51, %v1001_v47  ;;  %v777_v54 = vrot.slane %v776_v52, 4 }
 0x16d   : >> { %v811_v56 = vpop.permute.xlu1 %810 }
 0x16e   : >> { %v1004_v57 = vrot.slane %v1003_v53, 1  ;;  %v778_v58 = vadd.f32 %v777_v54, %v776_v52  ;;  %v813_v59 = vmul.f32 %v811_v56, %v808_v17 }
 0x170   : >> { %v1005_v60 = vadd.f32 %v1004_v57, %v1003_v53  ;;  %v779_v61 = vrot.slane %v778_v58, 2  ;;  %v814_v62 = vsel %vm632_vm0, %v813_v59, 0.0 }
 0x171   : >> { %v815_v0 = vrot.slane %v814_v62, 4 }
 0x172   : >> { %1463 = vst.msk [vmem:[%s1923_s19 + $0x6] sm:$0x1] %vm784_vm9, %v1005_v60  ;;  %v780_v3 = vadd.f32 %v779_v61, %v778_v58  ;;  %v848_v4 = vpop.permute.xlu1 %847  ;;  %v1472_v61 = vld [vmem:[%s526_s12] ss:$0 sm:$0xff] (%p673_p7) }
 0x173   : >> { %v816_v5 = vadd.f32 %v815_v0, %v814_v62  ;;  %v850_v6 = vmul.f32 %v848_v4, %v845_v22  ;;  %v1069_v62 = vmul.f32 (%p673_p7), %v1472_v61, %v1055_v1  ;;  %v1056_v0 = vld [vmem:[%s1808_s20 + $0x8] sm:$0xff] (%p673_p7) }
 0x174   : >> { %v781_v7 = vrot.slane %v780_v3, 1  ;;  %v1070_v4 = vmul.f32 (%p673_p7), %v1472_v61, %v1056_v0 }
 0x175   : >> { %v817_v10 = vrot.slane %v816_v5, 2  ;;  %v851_v11 = vsel %vm632_vm0, %v850_v6, 0.0 }
 0x176   : >> { %v782_v12 = vadd.f32 %v781_v7, %v780_v3  ;;  %v852_v2 = vrot.slane %v851_v11, 4  ;;  %v1058_v7 = vld [vmem:[%s1808_s20 + $0x18] sm:$0xff] (%p673_p7) }
 0x177   : >> { %v818_v8 = vadd.f32 %v817_v10, %v816_v5  ;;  %v885_v16 = vpop.permute.xlu1 %884  ;;  %v1057_v5 = vld [vmem:[%s1808_s20 + $0x10] sm:$0xff] (%p673_p7) }
 0x178   : >> { %785 = vst.msk [vmem:[%s1923_s19] sm:$0x1] %vm784_vm9, %v782_v12  ;;  %v853_v17 = vadd.f32 %v852_v2, %v851_v11  ;;  %v887_v9 = vmul.f32 %v885_v16, %v882_v27  ;;  %v2015_v2 = vmov %v1030_v45  ;;  %v1071_v11 = vmul.f32 (%p673_p7), %v1472_v61, %v1057_v5 }
 0x179   : >> { %v819_v18 = vrot.slane %v818_v8, 1  ;;  %v1072_v12 = vmul.f32 (%p673_p7), %v1472_v61, %v1058_v7 }
 0x17a   : >> { %v854_v19 = vrot.slane %v853_v17, 2  ;;  %v888_v20 = vsel %vm632_vm0, %v887_v9, 0.0 }
 0x17b   : >> { %v820_v21 = vadd.f32 %v819_v18, %v818_v8  ;;  %v889_v13 = vrot.slane %v888_v20, 4  ;;  %v1059_v8 = vld [vmem:[%s1808_s20 + $0x20] sm:$0xff] (%p673_p7)  ;;  %v1060_v18 = vld [vmem:[%s1808_s20 + $0x28] sm:$0xff] (%p673_p7) }
 0x17c   : >> { %v855_v22 = vadd.f32 %v854_v19, %v853_v17  ;;  %v922_v23 = vpop.permute.xlu1 %921  ;;  %v1073_v9 = vmul.f32 (%p673_p7), %v1472_v61, %v1059_v8 }
 0x17d   : >> { %1423 = vst.msk [vmem:[%s1923_s19 + $0x1] sm:$0x1] %vm784_vm9, %v820_v21  ;;  %v890_v24 = vadd.f32 %v889_v13, %v888_v20  ;;  %v924_v25 = vmul.f32 %v922_v23, %v919_v30  ;;  %v1061_v20 = vld [vmem:[%s1808_s20 + $0x30] sm:$0xff] (%p673_p7) }
 0x17e   : >> { %v856_v28 = vrot.slane %v855_v22, 1  ;;  %v1075_v23 = vmul.f32 (%p673_p7), %v1472_v61, %v1061_v20 }
 0x17f   : >> { %v891_v15 = vrot.slane %v890_v24, 2  ;;  %v925_v31 = vsel %vm632_vm0, %v924_v25, 0.0  ;;  %v1062_v25 = vld [vmem:[%s1808_s20 + $0x38] sm:$0xff] (%p673_p7) }
 0x180   : >> { %v857_v27 = vadd.f32 %v856_v28, %v855_v22  ;;  %v926_v29 = vrot.slane %v925_v31, 4  ;;  %v1074_v22 = vmul.f32 (%p673_p7), %v1472_v61, %v1060_v18  ;;  %v1076_v14 = vmul.f32 (%p673_p7), %v1472_v61, %v1062_v25 }
 0x181   : >> { %v892_v33 = vadd.f32 %v891_v15, %v890_v24  ;;  %v959_v34 = vpop.permute.xlu1 %958 }
 0x182   : >> { %1431 = vst.msk [vmem:[%s1923_s19 + $0x2] sm:$0x1] %vm784_vm9, %v857_v27  ;;  %v927_v36 = vadd.f32 %v926_v29, %v925_v31  ;;  %v961_v38 = vmul.f32 %v959_v34, %v1914_v37 }
 0x183   : >> { %v893_v39 = vrot.slane %v892_v33, 1 }
 0x184   : >> { %v928_v30 = vrot.slane %v927_v36, 2  ;;  %v962_v40 = vsel %vm632_vm0, %v961_v38, 0.0 }
 0x185   : >> { %v894_v41 = vadd.f32 %v893_v39, %v892_v33  ;;  %v963_v43 = vrot.slane %v962_v40, 4 }
 0x186   : >> { %v929_v46 = vadd.f32 %v928_v30, %v927_v36  ;;  %v1033_v47 = vpop.permute.xlu1 %1032 }
 0x187   : >> { %1439 = vst.msk [vmem:[%s1923_s19 + $0x3] sm:$0x1] %vm784_vm9, %v894_v41  ;;  %v964_v44 = vadd.f32 %v963_v43, %v962_v40  ;;  %v1035_v42 = vmul.f32 %v1033_v47, %v1030_v45 }
 0x188   : >> { %v930_v48 = vrot.slane %v929_v46, 1 }
 0x189   : >> { %v965_v49 = vrot.slane %v964_v44, 2  ;;  %v1036_v37 = vsel %vm632_vm0, %v1035_v42, 0.0 }
 0x18a   : >> { %v931_v50 = vadd.f32 %v930_v48, %v929_v46  ;;  %v1037_v51 = vrot.slane %v1036_v37, 4 }
 0x18b   : >> { %v966_v52 = vadd.f32 %v965_v49, %v964_v44 }
 0x18c   : >> { %1447 = vst.msk [vmem:[%s1923_s19 + $0x4] sm:$0x1] %vm784_vm9, %v931_v50  ;;  %v1038_v53 = vadd.f32 %v1037_v51, %v1036_v37 }
 0x18d   : >> { %v967_v54 = vrot.slane %v966_v52, 1 }
 0x18e   : >> { %v1039_v55 = vrot.slane %v1038_v53, 2 }
 0x18f   : >> { %v968_v56 = vadd.f32 %v967_v54, %v966_v52 }
 0x190   : >> { %v1040_v57 = vadd.f32 %v1039_v55, %v1038_v53  ;;  %675 = sbr.rel (!%p673_p7) target bundleno = 66 (0x42), region = 133 }
 0x191   : >> { %1455 = vst.msk [vmem:[%s1923_s19 + $0x5] sm:$0x1] %vm784_vm9, %v968_v56 }
 0x192   : >> { %v1041_v58 = vrot.slane %v1040_v57, 1 }
 0x194   : >> { %v1042_v59 = vadd.f32 %v1041_v58, %v1040_v57 }
 0x196   : >> { %1471 = vst.msk [vmem:[%s1923_s19 + $0x7] sm:$0x1] %vm784_vm9, %v1042_v59 }
 0x19d   : > { %v1046_v60 = vld [vmem:[%s1778_s16] sm:$0xff]  ;;  %v1047_v63 = vld [vmem:[%s1778_s16 + $0x8] sm:$0xff]  ;;  %v1048_v3 = vld [vmem:[%s1778_s16 + $0x10] sm:$0xff] }
 0x19e   : > { %v1049_v6 = vld [vmem:[%s1778_s16 + $0x18] sm:$0xff]  ;;  %v1077_v10 = vadd.f32 %v1069_v62, %v1046_v60  ;;  %v1050_v2 = vld [vmem:[%s1778_s16 + $0x20] sm:$0xff]  ;;  %v1051_v16 = vld [vmem:[%s1778_s16 + $0x28] sm:$0xff]  ;;  %v1078_v17 = vadd.f32 %v1070_v4, %v1047_v63  ;;  %v1079_v21 = vadd.f32 %v1071_v11, %v1048_v3 }
 0x19f   : > { %v1052_v19 = vld [vmem:[%s1778_s16 + $0x30] sm:$0xff]  ;;  %v1080_v13 = vadd.f32 %v1072_v12, %v1049_v6  ;;  %v1053_v24 = vld [vmem:[%s1778_s16 + $0x38] sm:$0xff]  ;;  %v1081_v26 = vadd.f32 %v1073_v9, %v1050_v2  ;;  %v1082_v28 = vadd.f32 %v1074_v22, %v1051_v16 }
 0x1a0   : > { %1085 = vst.msk [vmem:[%s1778_s16] sm:$0xff] %vm632_vm0, %v1077_v10  ;;  %1086 = vst.msk [vmem:[%s1778_s16 + $0x8] sm:$0xff] %vm632_vm0, %v1078_v17  ;;  %v1083_v15 = vadd.f32 %v1075_v23, %v1052_v19  ;;  %v1084_v31 = vadd.f32 %v1076_v14, %v1053_v24 }
 0x1a1   : > { %1087 = vst.msk [vmem:[%s1778_s16 + $0x10] sm:$0xff] %vm632_vm0, %v1079_v21  ;;  %1088 = vst.msk [vmem:[%s1778_s16 + $0x18] sm:$0xff] %vm632_vm0, %v1080_v13 }
 0x1a2   : > { %1089 = vst.msk [vmem:[%s1778_s16 + $0x20] sm:$0xff] %vm632_vm0, %v1081_v26  ;;  %1090 = vst.msk [vmem:[%s1778_s16 + $0x28] sm:$0xff] %vm632_vm0, %v1082_v28 }
 0x1a3   : > { %1091 = vst.msk [vmem:[%s1778_s16 + $0x30] sm:$0xff] %vm632_vm0, %v1083_v15  ;;  %1092 = vst.msk [vmem:[%s1778_s16 + $0x38] sm:$0xff] %vm632_vm0, %v1084_v31 }
 0x1a4 PF: > { %s17_s28 = sadd.s32 1, %s1652_s28   ;;  %s2016_s24 = smov %s1644_s26 }
 0x1a5   : > { %p14_p8 = scmp.ge.s32.totalorder %s17_s28, 10   ;;  %s2017_s25 = smov %s1648_s27 }
 0x1a6   : > { %s2018_s26 = smov %s2021_s29  ;;  %s2019_s27 = smov %s2025_s30 }
 0x1a7   :  { %16 = sbr.rel (!%p14_p8) target bundleno = 3 (0x3), region = 144 }

// kernel: vsslayer_forward.26
= control target key start
LH: loop header
LB: loop body
LE: loop exit
PB: predicated region body
PF: predicated region fallthrough
CT: control target
= control target key end

     0   :  { %vm104_vm0 = vcmask 1043456   ;;  %vm79_vm1 = vcmask 64512   ;;  %s387_s1 = inlined_call_operand.vmem [shape: bf16[8,128], index: 1, kind: input, shape index: {}]   ;;  %s388_s0 = inlined_call_operand.vmem [shape: bf16[128,8], index: 0, kind: input, shape index: {}]   ;;  %s389_s2 = inlined_call_operand.vmem [shape: f32[1,128], index: 2, kind: input, shape index: {}]   ;;  %s390_s3 = inlined_call_operand.vmem [shape: f32[128,128], index: 3, kind: output, shape index: {}]  }
   0x1   :  { %v31_v0 = vld [vmem:[%s387_s1] sm:$0xf]  ;;  %v275_v4 = vld [vmem:[%s388_s0 + $0x8] sm:$0xff]   ;;  %v277_v6 = vld [vmem:[%s388_s0 + $0x10] sm:$0xff]  }
   0x2   :  { %271 = vmatprep.subr.msk.bf16.mxu0 %vm104_vm0, %v31_v0  ;;  %272 = vmatprep.subr.msk.bf16.mxu1 %vm104_vm0, %v31_v0  ;;  %v106_v1 = vsel %vm104_vm0, %v31_v0, 0  ;;  %v273_v2 = vld [vmem:[%s388_s0] sm:$0xff]   ;;  %v276_v5 = vld [vmem:[%s388_s0 + $0x28] sm:$0xff]   ;;  %v278_v7 = vld [vmem:[%s388_s0 + $0x30] sm:$0xff]  }
   0x3   :  { %252 = vmatpush3.bf16.msra.mxu0 %v106_v1  ;;  %270 = vmatpush3.bf16.msra.mxu1 %v106_v1  ;;  %v274_v3 = vld [vmem:[%s388_s0 + $0x20] sm:$0xff]   ;;  %v279_v8 = vld [vmem:[%s388_s0 + $0x18] sm:$0xff]  }
   0x4   :  { %253 = vmatprep.mubr.msk.bf16.mxu0 %vm79_vm1, %v273_v2  ;;  %261 = vmatprep.mubr.msk.bf16.mxu1 %vm79_vm1, %v274_v3  ;;  %v280_v9 = vld [vmem:[%s388_s0 + $0x38] sm:$0xff]   ;;  %v225_v10 = vld [vmem:[%s389_s2] ss:$0 sm:$0xff] }
   0x6   :  { %254 = vmatmul.mubr.msk.bf16.vlgmr.msra.gmra.mrb[0].mxu0 %vm79_vm1, %v275_v4  ;;  %262 = vmatmul.mubr.msk.bf16.vlgmr.msra.gmra.mrb[0].mxu1 %vm79_vm1, %v276_v5 }
   0x7   :  { %257 = vmatprep.mubr.msk.bf16.mxu0 %vm79_vm1, %v277_v6  ;;  %265 = vmatprep.mubr.msk.bf16.mxu1 %vm79_vm1, %v278_v7 }
   0xe   :  { %258 = vmatmul.mubr.msk.bf16.gmra.mrb[4].mxu0 %vm79_vm1, %v279_v8  ;;  %266 = vmatmul.mubr.msk.bf16.gmra.mrb[4].mxu1 %vm79_vm1, %v280_v9 }
  0xd9   :  { %v255_v11 = vpop.f32.mrb[0].mxu0  ;;  %v263_v13 = vpop.f32.mrb[0].mxu1 }
  0xda   :  { %v151_v12 = vadd.f32 %v255_v11, %v225_v10  ;;  %v142_v14 = vpop.f32.mrb[1].mxu0  ;;  %v183_v15 = vadd.f32 %v263_v13, %v225_v10  ;;  %v174_v17 = vpop.f32.mrb[1].mxu1 }
  0xdb   :  { %v143_v16 = vadd.f32 %v225_v10, %v142_v14  ;;  %v256_v18 = vpop.f32.mrb[2].mxu0  ;;  %v175_v19 = vadd.f32 %v225_v10, %v174_v17  ;;  %v264_v21 = vpop.f32.mrb[2].mxu1 }
  0xdc   :  { %207 = vst [vmem:[%s390_s3 + $0x10] sm:$0xff] %v151_v12  ;;  %v154_v20 = vadd.f32 %v256_v18, %v225_v10  ;;  %v145_v22 = vpop.f32.mrb[3].mxu0  ;;  %215 = vst [vmem:[%s390_s3 + $0x50] sm:$0xff] %v183_v15  ;;  %v186_v23 = vadd.f32 %v264_v21, %v225_v10  ;;  %v177_v25 = vpop.f32.mrb[3].mxu1 }
  0xdd   :  { %205 = vst [vmem:[%s390_s3] sm:$0xff] %v143_v16  ;;  %v146_v24 = vadd.f32 %v225_v10, %v145_v22  ;;  %213 = vst [vmem:[%s390_s3 + $0x40] sm:$0xff] %v175_v19  ;;  %v178_v26 = vadd.f32 %v225_v10, %v177_v25 }
  0xde   :  { %208 = vst [vmem:[%s390_s3 + $0x18] sm:$0xff] %v154_v20  ;;  %216 = vst [vmem:[%s390_s3 + $0x58] sm:$0xff] %v186_v23 }
  0xdf   :  { %206 = vst [vmem:[%s390_s3 + $0x8] sm:$0xff] %v146_v24  ;;  %214 = vst [vmem:[%s390_s3 + $0x48] sm:$0xff] %v178_v26 }
  0xe1   :  { %v259_v27 = vpop.f32.mrb[4].mxu0  ;;  %v267_v29 = vpop.f32.mrb[4].mxu1 }
  0xe2   :  { %v167_v28 = vadd.f32 %v259_v27, %v225_v10  ;;  %v158_v30 = vpop.f32.mrb[5].mxu0  ;;  %v199_v31 = vadd.f32 %v267_v29, %v225_v10  ;;  %v190_v33 = vpop.f32.mrb[5].mxu1 }
  0xe3   :  { %v159_v32 = vadd.f32 %v225_v10, %v158_v30  ;;  %v260_v34 = vpop.f32.mrb[6].mxu0  ;;  %v191_v35 = vadd.f32 %v225_v10, %v190_v33  ;;  %v268_v37 = vpop.f32.mrb[6].mxu1 }
  0xe4   :  { %211 = vst [vmem:[%s390_s3 + $0x30] sm:$0xff] %v167_v28  ;;  %v170_v36 = vadd.f32 %v260_v34, %v225_v10  ;;  %v161_v38 = vpop.f32.mrb[7].mxu0  ;;  %219 = vst [vmem:[%s390_s3 + $0x70] sm:$0xff] %v199_v31  ;;  %v202_v39 = vadd.f32 %v268_v37, %v225_v10  ;;  %v193_v41 = vpop.f32.mrb[7].mxu1 }
  0xe5   :  { %209 = vst [vmem:[%s390_s3 + $0x20] sm:$0xff] %v159_v32  ;;  %v162_v40 = vadd.f32 %v225_v10, %v161_v38  ;;  %217 = vst [vmem:[%s390_s3 + $0x60] sm:$0xff] %v191_v35  ;;  %v194_v42 = vadd.f32 %v225_v10, %v193_v41 }
  0xe6   :  { %212 = vst [vmem:[%s390_s3 + $0x38] sm:$0xff] %v170_v36  ;;  %220 = vst [vmem:[%s390_s3 + $0x78] sm:$0xff] %v202_v39 }
  0xe7   :  { %210 = vst [vmem:[%s390_s3 + $0x28] sm:$0xff] %v162_v40  ;;  %218 = vst [vmem:[%s390_s3 + $0x68] sm:$0xff] %v194_v42 }

// kernel: vsslayer_forward.24
= control target key start
LH: loop header
LB: loop body
LE: loop exit
PB: predicated region body
PF: predicated region fallthrough
CT: control target
= control target key end

     0   :  { %s2222_s12 = smov 0   ;;  %s2224_s13 = smov 0   ;;  %s2811_s0 = inlined_call_operand.vmem [shape: bf16[2,10,10,8], index: 0, kind: input, shape index: {}]   ;;  %s2812_s1 = inlined_call_operand.vmem [shape: bf16[9,8,128], index: 1, kind: input, shape index: {}]   ;;  %s2813_s2 = inlined_call_operand.vmem [shape: f32[1,128], index: 2, kind: input, shape index: {}]   ;;  %s2814_s3 = inlined_call_operand.vmem [shape: f32[2,8,8,128], index: 3, kind: output, shape index: {}]  }
   0x1   :  { %s2226_s14 = smov 0  }
   0x2 LB: > { %s25_s15 = sadd.s32 1, %s2196_s13  ;;  %p1786_p0 = scmp.ge.s32.totalorder %s2200_s14, 1  ;;  %s2200_s14 = sphi %s2226_s14, %s13_s14   ;;  %s2196_s13 = sphi %s2224_s13, %s2829_s13   ;;  %s2192_s12 = sphi %s2222_s12, %s2828_s12  }
   0x3   : > { %p27_p1 = scmp.ge.s32.totalorder %s25_s15, 2  ;;  %p151_p2 = scmp.lt.s32.totalorder %s2200_s14, 3 }
   0x5   : > { %s2831_s15 = smov (%p27_p1, %s25_s15), 0  ;;  %p152_p3 = pnand %p1786_p0, %p151_p2 }
   0x7   : > { %155 = sbr.rel (%p152_p3) target bundleno = 340 (0x154), region = 32 }
   0xe   : > { %v1790_v0 = vld [vmem:[%s2812_s1 + $0x4] sm:$0xf]  ;;  %vm358_vm0 = vcmask 1043456   ;;  %v2246_v1 = vld [vmem:[%s2812_s1 + $0x10] sm:$0xf]  ;;  %p179_p4 = scmp.lt.s32.totalorder %s2192_s12, 1 }
   0xf   : > { %2131 = vmatprep.subr.msk.bf16.mxu1 %vm358_vm0, %v1790_v0  ;;  %2135 = vmatprep.subr.msk.bf16.mxu0 %vm358_vm0, %v2246_v1  ;;  %v360_v2 = vsel %vm358_vm0, %v1790_v0, 0  ;;  %v2254_v3 = vsel %vm358_vm0, %v2246_v1, 0  ;;  %v215_v4 = vld [vmem:[%s2812_s1] sm:$0xf]  ;;  %v1866_v5 = vld [vmem:[%s2812_s1 + $0x14] sm:$0xf] }
  0x10   : > { %1976 = vmatpush3.bf16.msra.mxu1 %v360_v2  ;;  %2016 = vmatpush3.bf16.msra.mxu0 %v2254_v3  ;;  %s2833_s12 = smov (!%p179_p4, %s2192_s12), 1  ;;  %vm216_vm1 = vsmask.f32 3328  ;;  %vm217_vm2 = vsmask.f32 7440  ;;  %vm345_vm3 = vcmask 64512  }
  0x11   : > { %2132 = vmatprep.subr.msk.bf16.mxu1 %vm358_vm0, %v215_v4  ;;  %2137 = vmatprep.subr.msk.bf16.mxu0 %vm358_vm0, %v1866_v5  ;;  %s2141_s24 = smul.u32 80, %s2833_s12  ;;  %vm2308_vm4 = vmor %vm216_vm1, %vm217_vm2  ;;  %v2322_v40 = vsel %vm358_vm0, %v215_v4, 0  ;;  %v2328_v45 = vsel %vm358_vm0, %v1866_v5, 0  ;;  %vm535_vm5 = vcmask 1042432   ;;  %vm536_vm6 = vcmask 1046532   ;;  %s1929_s17 = sshll.u32 %s2833_s12, 6 }
  0x12   : > { %vm2425_vm7 = vmor %vm535_vm5, %vm536_vm6  ;;  %s2792_s20 = scalar_lea.vmem %s2814_s3, %s1929_s17 }
  0x13   : > { %s2271_s27 = scalar_lea.vmem %s2811_s0, %s2141_s24 }
  0x14   : > { %v2274_v6 = vld [vmem:[%s2271_s27] sm:$0xf]  ;;  %v2277_v7 = vld [vmem:[%s2271_s27 + $0x4] sm:$0x1]  ;;  %v2280_v8 = vld [vmem:[%s2271_s27 + $0x8] sm:$0xf] }
  0x15   : > { %v2283_v9 = vld [vmem:[%s2271_s27 + $0xc] sm:$0x1]  ;;  %v220_v10 = vshrl.u32 %v2274_v6, 16  ;;  %v223_v11 = vshll.u32 %v2274_v6, 16  ;;  %v229_v12 = vshll.u32 %v2277_v7, 16  ;;  %v234_v13 = vshrl.u32 %v2280_v8, 16 }
  0x16   : > { %v237_v14 = vshll.u32 %v2280_v8, 16  ;;  %v243_v15 = vshll.u32 %v2283_v9, 16  ;;  %v2292_v16 = vld [vmem:[%s2271_s27 + $0x8] sm:$0xf]  ;;  %v2295_v21 = vld [vmem:[%s2271_s27 + $0xc] sm:$0x1] }
  0x17   : > { %v222_v17 = vrot.slane %v220_v10, 4  ;;  %v225_v18 = vrot.slane %v223_v11, 5  ;;  %v231_v19 = vrot.slane %v229_v12, 5  ;;  %v236_v20 = vrot.slane %v234_v13, 4  ;;  %v2298_v24 = vld [vmem:[%s2271_s27 + $0x10] sm:$0xf] }
  0x18   : > { %v239_v22 = vrot.slane %v237_v14, 5  ;;  %v245_v23 = vrot.slane %v243_v15, 5  ;;  %v2301_v25 = vld [vmem:[%s2271_s27 + $0x14] sm:$0x1]  ;;  %v803_v27 = vshrl.u32 %v2292_v16, 16  ;;  %v806_v28 = vshll.u32 %v2292_v16, 16 }
  0x19   : > { %v226_v26 = vor.u32 %v225_v18, %v222_v17  ;;  %v812_v29 = vshll.u32 %v2295_v21, 16  ;;  %v817_v32 = vshrl.u32 %v2298_v24, 16  ;;  %v820_v33 = vshll.u32 %v2298_v24, 16  ;;  %v2316_v35 = vld [vmem:[%s2271_s27 + $0x10] sm:$0xf] }
  0x1a   : > { %v240_v31 = vor.u32 %v239_v22, %v236_v20  ;;  %v826_v34 = vshll.u32 %v2301_v25, 16  ;;  %v805_v37 = vrot.slane %v803_v27, 4  ;;  %v808_v38 = vrot.slane %v806_v28, 5  ;;  %v2319_v39 = vld [vmem:[%s2271_s27 + $0x14] sm:$0x1] }
  0x1b   : > { %v227_v36 = vrot.slane %v226_v26, 4  ;;  %v819_v42 = vrot.slane %v817_v32, 4  ;;  %v822_v43 = vrot.slane %v820_v33, 5  ;;  %v2325_v44 = vld [vmem:[%s2271_s27 + $0x18] sm:$0xf]  ;;  %v814_v48 = vrot.slane %v812_v29, 5 }
  0x1c   : > { %v241_v41 = vrot.slane %v240_v31, 4  ;;  %v809_v47 = vor.u32 %v808_v38, %v805_v37  ;;  %v828_v49 = vrot.slane %v826_v34, 5  ;;  %v2335_v52 = vld [vmem:[%s2271_s27 + $0x1c] sm:$0x1]  ;;  %v248_v53 = vshrl.u32 %v2316_v35, 16 }
  0x1d   : > { %v232_v46 = vsel %vm2308_vm4, %v227_v36, %v231_v19  ;;  %v823_v51 = vor.u32 %v822_v43, %v819_v42  ;;  %v251_v54 = vshll.u32 %v2316_v35, 16  ;;  %v257_v57 = vshll.u32 %v2319_v39, 16  ;;  %v2343_v63 = vld [vmem:[%s2271_s27 + $0x18] sm:$0xf]  ;;  %v2351_v10 = vld [vmem:[%s2271_s27 + $0x1c] sm:$0x1] }
  0x1e   : > { %v246_v50 = vsel %vm2308_vm4, %v241_v41, %v245_v23  ;;  %v810_v56 = vrot.slane %v809_v47, 4  ;;  %v262_v58 = vshrl.u32 %v2325_v44, 16  ;;  %v250_v60 = vrot.slane %v248_v53, 4  ;;  %v2356_v15 = vld [vmem:[%s2271_s27 + $0x20] sm:$0xf] }
  0x1f   : > { %v1791_v55 = vcombine.low %v232_v46, %v246_v50  ;;  %v824_v59 = vrot.slane %v823_v51, 4  ;;  %v253_v61 = vrot.slane %v251_v54, 5  ;;  %v265_v62 = vshll.u32 %v2325_v44, 16  ;;  %v2359_v17 = vld [vmem:[%s2271_s27 + $0x24] sm:$0x1] }
  0x20   : > { %v815_v0 = vsel %vm2308_vm4, %v810_v56, %v814_v48  ;;  %v1026_v2 = vrot.slane %v2295_v21, 5  ;;  %v264_v4 = vrot.slane %v262_v58, 4  ;;  %v271_v5 = vshll.u32 %v2335_v52, 16  ;;  %v2370_v34 = vld [vmem:[%s2271_s27 + $0x20] sm:$0xf] }
  0x21   : > { %1977 = vmatprep.mubr.msk.bf16.mxu1 %vm345_vm3, %v1791_v55  ;;  %v829_v11 = vsel %vm2308_vm4, %v824_v59, %v828_v49  ;;  %v254_v12 = vor.u32 %v253_v61, %v250_v60  ;;  %v259_v13 = vrot.slane %v257_v57, 5  ;;  %v267_v14 = vrot.slane %v265_v62, 5  ;;  %v2375_v42 = vld [vmem:[%s2271_s27 + $0x24] sm:$0x1]  ;;  %v2379_v49 = vld [vmem:[%s2271_s27 + $0x28] sm:$0xf] }
  0x22   : > { %v1850_v18 = vcombine.low %v815_v0, %v829_v11  ;;  %v1030_v19 = vrot.slane %v2301_v25, 5  ;;  %v273_v20 = vrot.slane %v271_v5, 5  ;;  %v831_v22 = vshrl.u32 %v2343_v63, 16  ;;  %v2385_v54 = vld [vmem:[%s2271_s27 + $0x2c] sm:$0x1] }
  0x23   : > { %v255_v23 = vrot.slane %v254_v12, 4  ;;  %v268_v26 = vor.u32 %v267_v14, %v264_v4  ;;  %v834_v27 = vshll.u32 %v2343_v63, 16  ;;  %v840_v28 = vshll.u32 %v2351_v10, 16  ;;  %v2391_v60 = vld [vmem:[%s2271_s27 + $0x30] sm:$0xf] }
  0x24   : > { %2017 = vmatprep.mubr.msk.bf16.mxu0 %vm345_vm3, %v1850_v18  ;;  %v833_v29 = vrot.slane %v831_v22, 4  ;;  %v845_v31 = vshrl.u32 %v2356_v15, 16  ;;  %v848_v32 = vshll.u32 %v2356_v15, 16  ;;  %v854_v33 = vshll.u32 %v2359_v17, 16  ;;  %v2398_v5 = vld [vmem:[%s2812_s1 + $0x8] sm:$0xf] }
  0x25   : > { %v260_v36 = vsel %vm2308_vm4, %v255_v23, %v259_v13  ;;  %v269_v37 = vrot.slane %v268_v26, 4  ;;  %v836_v38 = vrot.slane %v834_v27, 5  ;;  %v842_v41 = vrot.slane %v840_v28, 5  ;;  %v2403_v18 = vld [vmem:[%s2271_s27 + $0x34] sm:$0x1] }
  0x26   : > { %v847_v43 = vrot.slane %v845_v31, 4  ;;  %v850_v46 = vrot.slane %v848_v32, 5  ;;  %v856_v47 = vrot.slane %v854_v33, 5  ;;  %v1034_v48 = vrot.slane %v2351_v10, 5  ;;  %v2409_v26 = vld [vmem:[%s2271_s27 + $0x38] sm:$0xf] }
  0x27   : > { %v274_v50 = vsel %vm2308_vm4, %v269_v37, %v273_v20  ;;  %v837_v51 = vor.u32 %v836_v38, %v833_v29  ;;  %v1038_v53 = vrot.slane %v2359_v17, 5  ;;  %v276_v55 = vshrl.u32 %v2370_v34, 16  ;;  %v2415_v32 = vld [vmem:[%s2271_s27 + $0x3c] sm:$0x1]  ;;  %v2485_v17 = vld [vmem:[%s2271_s27 + $0x38] sm:$0xf] }
  0x28   : > { %v1792_v56 = vcombine.low %v260_v36, %v274_v50  ;;  %v851_v57 = vor.u32 %v850_v46, %v847_v43  ;;  %v279_v58 = vshll.u32 %v2370_v34, 16  ;;  %v285_v59 = vshll.u32 %v2375_v42, 16  ;;  %v1926_v50 = vld [vmem:[%s2813_s2] ss:$0 sm:$0xff] }
  0x29   : > { %v838_v61 = vrot.slane %v837_v51, 4  ;;  %v278_v62 = vrot.slane %v276_v55, 4  ;;  %v290_v0 = vshrl.u32 %v2379_v49, 16  ;;  %v293_v4 = vshll.u32 %v2379_v49, 16  ;;  %v1891_v51 = vld [vmem:[%s2812_s1 + $0x18] sm:$0xf] }
  0x2a   : > { %1978 = vmatmul.mubr.msk.bf16.vlgmr.msra.gmra.mrb[0].mxu1 %vm345_vm3, %v1792_v56  ;;  %v852_v11 = vrot.slane %v851_v57, 4  ;;  %v281_v12 = vrot.slane %v279_v58, 5  ;;  %v287_v13 = vrot.slane %v285_v59, 5  ;;  %v299_v14 = vshll.u32 %v2385_v54, 16 }
  0x2b   : > { %1986 = vmatpush3.bf16.msra.mxu1 %v2322_v40  ;;  %v843_v20 = vsel %vm2308_vm4, %v838_v61, %v842_v41  ;;  %v292_v22 = vrot.slane %v290_v0, 4  ;;  %v295_v23 = vrot.slane %v293_v4, 5  ;;  %v304_v27 = vshrl.u32 %v2391_v60, 16  ;;  %v2439_v4 = vld [vmem:[%s2271_s27 + $0x28] sm:$0xf] }
  0x2c   : > { %v857_v28 = vsel %vm2308_vm4, %v852_v11, %v856_v47  ;;  %v282_v29 = vor.u32 %v281_v12, %v278_v62  ;;  %v301_v31 = vrot.slane %v299_v14, 5  ;;  %v307_v33 = vshll.u32 %v2391_v60, 16  ;;  %2133 = vmatprep.subr.msk.bf16.mxu1 %vm358_vm0, %v2398_v5 }
  0x2d   : > { %v1851_v40 = vcombine.low %v843_v20, %v857_v28  ;;  %v296_v36 = vor.u32 %v295_v23, %v292_v22  ;;  %v306_v37 = vrot.slane %v304_v27, 4  ;;  %v313_v38 = vshll.u32 %v2403_v18, 16  ;;  %v2454_v28 = vld [vmem:[%s2271_s27 + $0x30] sm:$0xf] }
  0x2e   : > { %v283_v41 = vrot.slane %v282_v29, 4  ;;  %v309_v43 = vrot.slane %v307_v33, 5  ;;  %v318_v46 = vshrl.u32 %v2409_v26, 16  ;;  %v321_v47 = vshll.u32 %v2409_v26, 16  ;;  %v2457_v29 = vld [vmem:[%s2271_s27 + $0x34] sm:$0x1] }
  0x2f   : > { %2018 = vmatmul.mubr.msk.bf16.vlgmr.msra.gmra.mrb[0].mxu0 %vm345_vm3, %v1851_v40  ;;  %v297_v55 = vrot.slane %v296_v36, 4  ;;  %v315_v56 = vrot.slane %v313_v38, 5  ;;  %v327_v57 = vshll.u32 %v2415_v32, 16  ;;  %v1858_v58 = vrot.slane %v2292_v16, 9 }
  0x30   : > { %2026 = vmatpush3.bf16.msra.mxu0 %v2328_v45  ;;  %v288_v59 = vsel %vm2308_vm4, %v283_v41, %v287_v13  ;;  %v310_v61 = vor.u32 %v309_v43, %v306_v37  ;;  %v320_v62 = vrot.slane %v318_v46, 4  ;;  %v323_v0 = vrot.slane %v321_v47, 5  ;;  %v2450_v13 = vld [vmem:[%s2271_s27 + $0x2c] sm:$0x1] }
  0x31   : > { %v302_v11 = vsel %vm2308_vm4, %v297_v55, %v301_v31  ;;  %v329_v12 = vrot.slane %v327_v57, 5  ;;  %v1027_v14 = vsel %vm2425_vm7, %v1858_v58, %v1026_v2  ;;  %v1859_v45 = vrot.slane %v2298_v24, 9  ;;  %2138 = vmatprep.subr.msk.bf16.mxu0 %vm358_vm0, %v1891_v51  ;;  %v2493_v43 = vld [vmem:[%s2812_s1 + $0xc] sm:$0xf]  ;;  %v2500_v57 = vld [vmem:[%s2271_s27 + $0x3c] sm:$0x1] }
  0x32   : > { %v1793_v20 = vcombine.low %v288_v59, %v302_v11  ;;  %v311_v22 = vrot.slane %v310_v61, 4  ;;  %v324_v23 = vor.u32 %v323_v0, %v320_v62  ;;  %v1860_v27 = vrot.slane %v2343_v63, 9  ;;  %v2503_v58 = vld [vmem:[%s2271_s27 + $0x40] sm:$0xf]  ;;  %v2506_v59 = vld [vmem:[%s2271_s27 + $0x44] sm:$0x1] }
  0x33   : > { %v1031_v21 = vsel %vm2425_vm7, %v1859_v45, %v1030_v19  ;;  %v1861_v2 = vrot.slane %v2356_v15, 9  ;;  %v1862_v31 = vrot.slane %v2439_v4, 9  ;;  %v1042_v37 = vrot.slane %v2450_v13, 5  ;;  %2820 = vst [vmem:[#allocation2_spill] sm:$0xff] %v2506_v59 }
  0x34   : > { %1981 = vmatprep.mubr.msk.bf16.mxu1 %vm345_vm3, %v1793_v20  ;;  %v316_v33 = vsel %vm2308_vm4, %v311_v22, %v315_v56  ;;  %v325_v40 = vrot.slane %v324_v23, 4  ;;  %v1867_v36 = vcombine.low %v1027_v14, %v1031_v21  ;;  %v1035_v25 = vsel %vm2425_vm7, %v1860_v27, %v1034_v48  ;;  %v2528_v23 = vld [vmem:[%s2271_s27 + $0x10] sm:$0xf]  ;;  %v2531_v27 = vld [vmem:[%s2271_s27 + $0x18] sm:$0xf] }
  0x35   : > { %v1039_v19 = vsel %vm2425_vm7, %v1861_v2, %v1038_v53  ;;  %v1863_v38 = vrot.slane %v2454_v28, 9  ;;  %v1046_v41 = vrot.slane %v2457_v29, 5  ;;  %v1799_v48 = vcombine.low %v2274_v6, %v2280_v8  ;;  %v1900_v53 = vld [vmem:[%s2812_s1 + $0x1c] sm:$0xf] }
  0x36   : > { %v330_v10 = vsel %vm2308_vm4, %v325_v40, %v329_v12  ;;  %2027 = vmatprep.mubr.msk.bf16.mxu0 %vm345_vm3, %v1867_v36  ;;  %v1868_v47 = vcombine.low %v1035_v25, %v1039_v19  ;;  %v1043_v55 = vsel %vm2425_vm7, %v1862_v31, %v1042_v37  ;;  %v1213_v62 = vsel %vm358_vm0, %v1891_v51, 0  ;;  %v2549_v40 = vld [vmem:[%s2271_s27 + $0x20] sm:$0xf]  ;;  %v2552_v36 = vld [vmem:[%s2271_s27 + $0x28] sm:$0xf] }
  0x37   : > { %v1794_v46 = vcombine.low %v316_v33, %v330_v10  ;;  %v1047_v56 = vsel %vm2425_vm7, %v1863_v38, %v1046_v41  ;;  %v597_v0 = vsel %vm358_vm0, %v2398_v5, 0  ;;  %v1864_v11 = vrot.slane %v2485_v17, 9  ;;  %v2559_v41 = vld [vmem:[%s2271_s27 + $0x30] sm:$0xf] }
  0x38   : > { %v1869_v61 = vcombine.low %v1043_v55, %v1047_v56  ;;  %v2514_v12 = vsel %vm358_vm0, %v1900_v53, 0  ;;  %v1050_v14 = vrot.slane %v2500_v57, 5  ;;  %v1865_v45 = vrot.slane %v2503_v58, 9 }
  0x39   : > { %1982 = vmatmul.mubr.msk.bf16.gmra.mrb[4].mxu1 %vm345_vm3, %v1794_v46  ;;  %v1054_v20 = vrot.slane %v2506_v59, 5  ;;  %v2522_v22 = vsel %vm358_vm0, %v2493_v43, 0  ;;  %v540_v51 = vrot.slane %v2277_v7, 5  ;;  %v544_v5 = vrot.slane %v2283_v9, 5  ;;  %v2633_v59 = vld [vmem:[%s2271_s27 + $0x2c] sm:$0x1] }
  0x3a   : > { %1987 = vmatprep.mubr.msk.bf16.mxu1 %vm345_vm3, %v1799_v48  ;;  %v548_v21 = vrot.slane %v2319_v39, 5  ;;  %v552_v2 = vrot.slane %v2335_v52, 5  ;;  %v1051_v7 = vsel %vm2425_vm7, %v1864_v11, %v1050_v14  ;;  %v1800_v31 = vcombine.low %v2316_v35, %v2325_v44  ;;  %v2581_v14 = vld [vmem:[%s2271_s27 + $0x40] sm:$0xf] }
  0x3b   : > { %2028 = vmatmul.mubr.msk.bf16.vlgmr.msra.gmra.mrb[0].mxu0 %vm345_vm3, %v1868_v47  ;;  %v1055_v9 = vsel %vm2425_vm7, %v1865_v45, %v1054_v20  ;;  %v1801_v39 = vcombine.low %v2370_v34, %v2379_v49  ;;  %v1802_v52 = vcombine.low %v2391_v60, %v2409_v26  ;;  %v1892_v19 = vcombine.low %v2528_v23, %v2531_v27  ;;  %v2566_v47 = vld [vmem:[%s2271_s27 + $0x38] sm:$0xf]  ;;  %v2584_v45 = vld [vmem:[%s2271_s27 + $0x48] sm:$0xf] }
  0x3c   : > { %2036 = vmatpush3.bf16.msra.mxu0 %v1213_v62  ;;  %2031 = vmatprep.mubr.msk.bf16.mxu0 %vm345_vm3, %v1869_v61  ;;  %v1870_v25 = vcombine.low %v1051_v7, %v1055_v9  ;;  %v1289_v37 = vshrl.u32 %v2528_v23, 16  ;;  %v1292_v38 = vshll.u32 %v2528_v23, 16  ;;  %v1303_v10 = vshrl.u32 %v2531_v27, 16 }
  0x3d   : > { %2139 = vmatprep.subr.msk.bf16.mxu0 %vm358_vm0, %v1900_v53  ;;  %v1807_v48 = vrot.slane %v2274_v6, 9  ;;  %v1808_v53 = vrot.slane %v2280_v8, 9  ;;  %v1809_v46 = vrot.slane %v2316_v35, 9  ;;  %v1306_v55 = vshll.u32 %v2531_v27, 16 }
  0x3e   : > { %v1893_v56 = vcombine.low %v2549_v40, %v2552_v36  ;;  %v1317_v61 = vshrl.u32 %v2549_v40, 16  ;;  %v1810_v62 = vrot.slane %v2325_v44, 9  ;;  %v1320_v11 = vshll.u32 %v2549_v40, 16 }
  0x3f   : > { %v1331_v6 = vshrl.u32 %v2552_v36, 16  ;;  %v541_v8 = vsel %vm2425_vm7, %v1807_v48, %v540_v51  ;;  %v545_v35 = vsel %vm2425_vm7, %v1808_v53, %v544_v5  ;;  %v1334_v44 = vshll.u32 %v2552_v36, 16  ;;  %v2627_v53 = vld [vmem:[%s2271_s27 + $0x24] sm:$0x1] }
  0x40   : > { %v2590_v20 = vsel %vm2425_vm7, %v1809_v46, %v548_v21  ;;  %v2594_v51 = vsel %vm2425_vm7, %v1810_v62, %v552_v2  ;;  %v1894_v5 = vcombine.low %v2559_v41, %v2566_v47  ;;  %v1816_v7 = vcombine.low %v541_v8, %v545_v35 }
  0x41   : > { %1988 = vmatmul.mubr.msk.bf16.vlgmr.msra.gmra.mrb[0].mxu1 %vm345_vm3, %v1800_v31  ;;  %v1348_v9 = vshll.u32 %v2559_v41, 16  ;;  %v1359_v21 = vshrl.u32 %v2566_v47, 16  ;;  %v1817_v48 = vcombine.low %v2590_v20, %v2594_v51  ;;  %v1812_v46 = vrot.slane %v2379_v49, 9 }
  0x42   : > { %1996 = vmatpush3.bf16.msra.mxu1 %v597_v0  ;;  %1991 = vmatprep.mubr.msk.bf16.mxu1 %vm345_vm3, %v1801_v39  ;;  %v1345_v0 = vshrl.u32 %v2559_v41, 16  ;;  %v1811_v39 = vrot.slane %v2370_v34, 9  ;;  %v1376_v62 = vshll.u32 %v2581_v14, 16  ;;  %v2621_v34 = vld [vmem:[%s2271_s27 + $0x1c] sm:$0x1]  ;;  %v1291_v35 = vrot.slane %v1289_v37, 4 }
  0x43   : > { %2032 = vmatmul.mubr.msk.bf16.gmra.mrb[4].mxu0 %vm345_vm3, %v1870_v25  ;;  %2134 = vmatprep.subr.msk.bf16.mxu1 %vm358_vm0, %v2493_v43  ;;  %v556_v25 = vrot.slane %v2375_v42, 5  ;;  %v2611_v43 = vld [vmem:[%s2271_s27 + $0x14] sm:$0x1]  ;;  %v1294_v42 = vrot.slane %v1292_v38, 5  ;;  %v1813_v31 = vrot.slane %v2391_v60, 9  ;;  %v1305_v51 = vrot.slane %v1303_v10, 4 }
  0x44   : > { %2037 = vmatprep.mubr.msk.bf16.mxu0 %vm345_vm3, %v1892_v19  ;;  %v560_v19 = vrot.slane %v2385_v54, 5  ;;  %v1298_v20 = vshll.u32 %v2611_v43, 16  ;;  %v564_v54 = vrot.slane %v2403_v18, 5  ;;  %v1308_v8 = vrot.slane %v1306_v55, 5  ;;  %v1917_v18 = vld [vmem:[%s2812_s1 + $0x20] sm:$0xf] }
  0x45   : > { %v557_v49 = vsel %vm2425_vm7, %v1811_v39, %v556_v25  ;;  %v1295_v2 = vor.u32 %v1294_v42, %v1291_v35  ;;  %v1312_v38 = vshll.u32 %v2621_v34, 16  ;;  %v1319_v10 = vrot.slane %v1317_v61, 4  ;;  %v2652_v35 = vld [vmem:[%s2271_s27 + $0x34] sm:$0x1] }
  0x46   : > { %v561_v37 = vsel %vm2425_vm7, %v1812_v46, %v560_v19  ;;  %v1300_v60 = vrot.slane %v1298_v20, 5  ;;  %v1309_v39 = vor.u32 %v1308_v8, %v1305_v51  ;;  %v1322_v55 = vrot.slane %v1320_v11, 5 }
  0x47   : > { %v1296_v33 = vrot.slane %v1295_v2, 4  ;;  %v1326_v25 = vshll.u32 %v2627_v53, 16  ;;  %v1333_v46 = vrot.slane %v1331_v6, 4  ;;  %v1336_v19 = vrot.slane %v1334_v44, 5 }
  0x48   : > { %v1340_v61 = vshll.u32 %v2633_v59, 16  ;;  %v1310_v11 = vrot.slane %v1309_v39, 4  ;;  %v1323_v8 = vor.u32 %v1322_v55, %v1319_v10  ;;  %v568_v42 = vrot.slane %v2415_v32, 5 }
  0x49   : > { %1992 = vmatmul.mubr.msk.bf16.gmra.mrb[4].mxu1 %vm345_vm3, %v1802_v52  ;;  %v1314_v52 = vrot.slane %v1312_v38, 5  ;;  %v1301_v2 = vsel %vm2308_vm4, %v1296_v33, %v1300_v60  ;;  %v1328_v6 = vrot.slane %v1326_v25, 5  ;;  %v1337_v44 = vor.u32 %v1336_v19, %v1333_v46  ;;  %v2666_v25 = vld [vmem:[%s2271_s27 + $0x44] sm:$0x1] }
  0x4a   : > { %1997 = vmatprep.mubr.msk.bf16.mxu1 %vm345_vm3, %v1816_v7  ;;  %v1814_v7 = vrot.slane %v2409_v26, 9  ;;  %v1347_v33 = vrot.slane %v1345_v0, 4  ;;  %v1350_v20 = vrot.slane %v1348_v9, 5  ;;  %v1324_v60 = vrot.slane %v1323_v8, 4 }
  0x4b   : > { %2038 = vmatmul.mubr.msk.bf16.vlgmr.msra.gmra.mrb[0].mxu0 %vm345_vm3, %v1893_v56  ;;  %v1818_v56 = vcombine.low %v557_v49, %v561_v37  ;;  %v1315_v26 = vsel %vm2308_vm4, %v1310_v11, %v1314_v52  ;;  %v1354_v49 = vshll.u32 %v2652_v35, 16  ;;  %v1361_v37 = vrot.slane %v1359_v21, 4  ;;  %v2672_v52 = vld [vmem:[%s2271_s27 + $0x4c] sm:$0x1] }
  0x4c   : > { %2046 = vmatpush3.bf16.msra.mxu0 %v2514_v12  ;;  %2041 = vmatprep.mubr.msk.bf16.mxu0 %vm345_vm3, %v1894_v5  ;;  %v2657_v12 = vld [vmem:[%s2271_s27 + $0x3c] sm:$0x1]  ;;  %v1342_v5 = vrot.slane %v1340_v61, 5  ;;  %v1901_v51 = vcombine.low %v1301_v2, %v1315_v26  ;;  %v1338_v32 = vrot.slane %v1337_v44, 4  ;;  %v1351_v38 = vor.u32 %v1350_v20, %v1347_v33 }
  0x4d   : > { %2140 = vmatprep.subr.msk.bf16.mxu0 %vm358_vm0, %v1917_v18  ;;  %v2821_v10 = vshll.u32 %v2566_v47, 16  ;;  %v1368_v55 = vshll.u32 %v2657_v12, 16  ;;  %v565_v0 = vsel %vm2425_vm7, %v1813_v31, %v564_v54  ;;  %v1356_v9 = vrot.slane %v1354_v49, 5 }
  0x4e   : > { %v2822_v46 = vshrl.u32 %v2581_v14, 16  ;;  %v1378_v19 = vrot.slane %v1376_v62, 5  ;;  %v569_v61 = vsel %vm2425_vm7, %v1814_v7, %v568_v42  ;;  %v1352_v2 = vrot.slane %v1351_v38, 4 }
  0x4f   : > { %v1364_v39 = vrot.slane %v2821_v10, 5  ;;  %v2823_v31 = vcombine.low %v2581_v14, %v2584_v45  ;;  %v1382_v62 = vshll.u32 %v2666_v25, 16  ;;  %v1329_v42 = vsel %vm2308_vm4, %v1324_v60, %v1328_v6 }
  0x50   : > { %v1375_v21 = vrot.slane %v2822_v46, 4  ;;  %v1343_v44 = vsel %vm2308_vm4, %v1338_v32, %v1342_v5  ;;  %v1819_v33 = vcombine.low %v565_v0, %v569_v61  ;;  %v1357_v20 = vsel %vm2308_vm4, %v1352_v2, %v1356_v9 }
  0x51   : > { %1998 = vmatmul.mubr.msk.bf16.vlgmr.msra.gmra.mrb[0].mxu1 %vm345_vm3, %v1817_v48  ;;  %v1365_v11 = vor.u32 %v1364_v39, %v1361_v37  ;;  %v1370_v48 = vrot.slane %v1368_v55, 5  ;;  %v890_v37 = vshll.u32 %v2485_v17, 16  ;;  %v1569_v38 = vsel %vm358_vm0, %v1917_v18, 0 }
  0x52   : > { %2006 = vmatpush3.bf16.msra.mxu1 %v2522_v22  ;;  %2001 = vmatprep.mubr.msk.bf16.mxu1 %vm345_vm3, %v1818_v56  ;;  %v1379_v54 = vor.u32 %v1378_v19, %v1375_v21  ;;  %v2824_v22 = vshrl.u32 %v2584_v45, 16  ;;  %v2825_v56 = vshll.u32 %v2584_v45, 16  ;;  %v2826_v5 = vshrl.u32 %v2485_v17, 16 }
  0x53   : > { %2042 = vmatmul.mubr.msk.bf16.gmra.mrb[4].mxu0 %vm345_vm3, %v2823_v31  ;;  %2136 = vmatprep.subr.msk.bf16.mxu1 %vm358_vm0, %v2246_v1  ;;  %v1366_v26 = vrot.slane %v1365_v11, 4  ;;  %v1396_v1 = vshll.u32 %v2672_v52, 16  ;;  %v1902_v32 = vcombine.low %v1329_v42, %v1343_v44  ;;  %v1384_v39 = vrot.slane %v1382_v62, 5 }
  0x54   : > { %v1389_v8 = vrot.slane %v2824_v22, 4  ;;  %v1392_v7 = vrot.slane %v2825_v56, 5  ;;  %2047 = vmatprep.mubr.msk.bf16.mxu0 %vm345_vm3, %v1901_v51  ;;  %v1841_v51 = vcombine.low %v2292_v16, %v2298_v24  ;;  %v2707_v60 = vrot.slane %v2826_v5, 4 }
  0x55   : > { %v1371_v6 = vsel %vm2308_vm4, %v1366_v26, %v1370_v48  ;;  %v1380_v10 = vrot.slane %v1379_v54, 4  ;;  %v1398_v9 = vrot.slane %v1396_v1, 5  ;;  %v1909_v46 = vrot.slane %v2528_v23, 9 }
  0x56   : > { %v1393_v49 = vor.u32 %v1392_v7, %v1389_v8  ;;  %v1903_v55 = vcombine.low %v1357_v20, %v1371_v6  ;;  %v1512_v18 = vrot.slane %v2611_v43, 5  ;;  %v1910_v16 = vrot.slane %v2531_v27, 9 }
  0x57   : > { %v1516_v24 = vrot.slane %v2621_v34, 5  ;;  %v859_v21 = vshrl.u32 %v2439_v4, 16  ;;  %v901_v19 = vshrl.u32 %v2503_v58, 16  ;;  %v904_v61 = vshll.u32 %v2503_v58, 16 }
  0x58   : > { %v1394_v0 = vrot.slane %v1393_v49, 4  ;;  %v1842_v2 = vcombine.low %v2343_v63, %v2356_v15  ;;  %v862_v23 = vshll.u32 %v2439_v4, 16  ;;  %v1385_v27 = vsel %vm2308_vm4, %v1380_v10, %v1384_v39  ;;  %v2827_v10 = vld [vmem:[#allocation2_spill] sm:$0xff] }
  0x59   : > { %2002 = vmatmul.mubr.msk.bf16.gmra.mrb[4].mxu1 %vm345_vm3, %v1819_v33  ;;  %v1843_v43 = vcombine.low %v2439_v4, %v2454_v28  ;;  %v861_v34 = vrot.slane %v859_v21, 4  ;;  %v868_v11 = vshll.u32 %v2450_v13, 16  ;;  %v873_v15 = vshrl.u32 %v2454_v28, 16 }
  0x5a   : > { %2007 = vmatprep.mubr.msk.bf16.mxu1 %vm345_vm3, %v1841_v51  ;;  %v1399_v48 = vsel %vm2308_vm4, %v1394_v0, %v1398_v9  ;;  %v864_v63 = vrot.slane %v862_v23, 5  ;;  %v876_v31 = vshll.u32 %v2454_v28, 16  ;;  %v1513_v54 = vsel %vm2425_vm7, %v1909_v46, %v1512_v18 }
  0x5b   : > { %2048 = vmatmul.mubr.msk.bf16.vlgmr.msra.gmra.mrb[0].mxu0 %vm345_vm3, %v1902_v32  ;;  %v1517_v4 = vsel %vm2425_vm7, %v1910_v16, %v1516_v24  ;;  %v1911_v62 = vrot.slane %v2549_v40, 9  ;;  %v882_v13 = vshll.u32 %v2457_v29, 16  ;;  %v1520_v22 = vrot.slane %v2627_v53, 5 }
  0x5c   : > { %2056 = vmatpush3.bf16.msra.mxu0 %v1569_v38  ;;  %2051 = vmatprep.mubr.msk.bf16.mxu0 %vm345_vm3, %v1903_v55  ;;  %v865_v8 = vor.u32 %v864_v63, %v861_v34  ;;  %v875_v56 = vrot.slane %v873_v15, 4  ;;  %v878_v7 = vrot.slane %v876_v31, 5  ;;  %v1904_v42 = vcombine.low %v1385_v27, %v1399_v48 }
  0x5d   : > { %v1912_v44 = vrot.slane %v2552_v36, 9  ;;  %v1524_v28 = vrot.slane %v2633_v59, 5  ;;  %v870_v26 = vrot.slane %v868_v11, 5  ;;  %v1918_v1 = vcombine.low %v1513_v54, %v1517_v4 }
  0x5e   : > { %v866_v33 = vrot.slane %v865_v8, 4  ;;  %v879_v20 = vor.u32 %v878_v7, %v875_v56  ;;  %v884_v49 = vrot.slane %v882_v13, 5  ;;  %v1913_v40 = vrot.slane %v2559_v41, 9 }
  0x5f   : > { %v1528_v29 = vrot.slane %v2652_v35, 5  ;;  %v1914_v53 = vrot.slane %v2566_v47, 9  ;;  %v1532_v38 = vrot.slane %v2657_v12, 5  ;;  %v892_v51 = vrot.slane %v890_v37, 5 }
  0x60   : > { %v903_v6 = vrot.slane %v901_v19, 4  ;;  %v906_v36 = vrot.slane %v904_v61, 5  ;;  %v880_v59 = vrot.slane %v879_v20, 4  ;;  %v871_v5 = vsel %vm2308_vm4, %v866_v33, %v870_v26 }
  0x61   : > { %2008 = vmatmul.mubr.msk.bf16.vlgmr.msra.gmra.mrb[0].mxu1 %vm345_vm3, %v1842_v2  ;;  %v1521_v41 = vsel %vm2425_vm7, %v1911_v62, %v1520_v22  ;;  %v1525_v47 = vsel %vm2425_vm7, %v1912_v44, %v1524_v28  ;;  %v1844_v12 = vcombine.low %v2485_v17, %v2503_v58  ;;  %v1529_v37 = vsel %vm2425_vm7, %v1913_v40, %v1528_v29 }
  0x62   : > { %2066 = vmatpush3.bf16.msra.mxu1 %v2254_v3  ;;  %2011 = vmatprep.mubr.msk.bf16.mxu1 %vm345_vm3, %v1843_v43  ;;  %v885_v35 = vsel %vm2308_vm4, %v880_v59, %v884_v49  ;;  %v896_v3 = vshll.u32 %v2500_v57, 16  ;;  %v1533_v32 = vsel %vm2425_vm7, %v1914_v53, %v1532_v38  ;;  %v910_v39 = vshll.u32 %v2827_v10, 16 }
  0x63   : > { %2052 = vmatmul.mubr.msk.bf16.gmra.mrb[4].mxu0 %vm345_vm3, %v1904_v42  ;;  %v1852_v55 = vcombine.low %v871_v5, %v885_v35  ;;  %v893_v0 = vor.u32 %v892_v51, %v2707_v60  ;;  %v907_v9 = vor.u32 %v906_v36, %v903_v6  ;;  %v1919_v46 = vcombine.low %v1521_v41, %v1525_v47 }
  0x64   : > { %2057 = vmatprep.mubr.msk.bf16.mxu0 %vm345_vm3, %v1918_v1  ;;  %v1915_v18 = vrot.slane %v2581_v14, 9  ;;  %v1920_v16 = vcombine.low %v1529_v37, %v1533_v32  ;;  %v1536_v57 = vrot.slane %v2666_v25, 5  ;;  %v1916_v17 = vrot.slane %v2584_v45, 9 }
  0x65   : > { %v1540_v58 = vrot.slane %v2672_v52, 5  ;;  %v898_v24 = vrot.slane %v896_v3, 5  ;;  %v912_v21 = vrot.slane %v910_v39, 5  ;;  %v894_v19 = vrot.slane %v893_v0, 4 }
  0x66   : > { %v908_v61 = vrot.slane %v907_v9, 4  ;;  %v1537_v14 = vsel %vm2425_vm7, %v1915_v18, %v1536_v57 }
  0x67   : > { %v1541_v45 = vsel %vm2425_vm7, %v1916_v17, %v1540_v58  ;;  %v899_v25 = vsel %vm2308_vm4, %v894_v19, %v898_v24 }
  0x68   : > { %v913_v52 = vsel %vm2308_vm4, %v908_v61, %v912_v21  ;;  %v1921_v60 = vcombine.low %v1537_v14, %v1541_v45 }
  0x69   : > { %2012 = vmatmul.mubr.msk.bf16.gmra.mrb[4].mxu1 %vm345_vm3, %v1844_v12  ;;  %v1853_v2 = vcombine.low %v899_v25, %v913_v52 }
  0x6a   : > { %2021 = vmatprep.mubr.msk.bf16.mxu1 %vm345_vm3, %v1852_v55 }
  0x6b   : > { %2058 = vmatmul.mubr.msk.bf16.vlgmr.msra.gmra.mrb[0].mxu0 %vm345_vm3, %v1919_v46 }
  0x6c   : > { %2061 = vmatprep.mubr.msk.bf16.mxu0 %vm345_vm3, %v1920_v16 }
  0x73   : > { %2062 = vmatmul.mubr.msk.bf16.gmra.mrb[4].mxu0 %vm345_vm3, %v1921_v60 }
  0x75   : > { %2022 = vmatmul.mubr.msk.bf16.vlgmr.msra.gmra.mrb[4].mxu1 %vm345_vm3, %v1853_v2 }
 0x134   : > { %v2009_v23 = vpop.f32.mrb[0].mxu1 }
 0x135   : > { %v763_v27 = vpop.f32.mrb[1].mxu1 }
 0x136   : > { %v2010_v43 = vpop.f32.mrb[2].mxu1 }
 0x137   : > { %v766_v34 = vpop.f32.mrb[3].mxu1 }
 0x13e   : > { %v2059_v11 = vpop.f32.mrb[0].mxu0 }
 0x13f   : > { %v2067_v48 = vadd.f32 %v2059_v11, %v2009_v23  ;;  %v1605_v63 = vpop.f32.mrb[1].mxu0 }
 0x140   : > { %v2068_v30 = vadd.f32 %v1605_v63, %v763_v27  ;;  %v2060_v15 = vpop.f32.mrb[2].mxu0 }
 0x141   : > { %v1653_v31 = vadd.f32 %v2067_v48, %v1926_v50  ;;  %v2069_v54 = vadd.f32 %v2060_v15, %v2010_v43  ;;  %v1608_v4 = vpop.f32.mrb[3].mxu0 }
 0x142   : > { %v1651_v62 = vadd.f32 %v2068_v30, %v1926_v50  ;;  %v2070_v13 = vadd.f32 %v1608_v4, %v766_v34 }
 0x143   : > { %vm1661_vm8 = vcmp.ge.f32.partialorder %v1653_v31, 0.0  ;;  %v1669_v22 = vmul.f32 0.01, %v1653_v31  ;;  %v1654_v8 = vadd.f32 %v2069_v54, %v1926_v50 }
 0x144   : > { %vm1659_vm9 = vcmp.ge.f32.partialorder %v1651_v62, 0.0  ;;  %v1667_v56 = vmul.f32 0.01, %v1651_v62  ;;  %v1652_v7 = vadd.f32 %v2070_v13, %v1926_v50 }
 0x145   : > { %v1677_v42 = vsel %vm1661_vm8, %v1653_v31, %v1669_v22  ;;  %vm1662_vm10 = vcmp.ge.f32.partialorder %v1654_v8, 0.0  ;;  %v1670_v44 = vmul.f32 0.01, %v1654_v8 }
 0x146   : > { %1685 = vst [vmem:[%s2792_s20 + $0x10] sm:$0xff] %v1677_v42  ;;  %v1675_v28 = vsel %vm1659_vm9, %v1651_v62, %v1667_v56  ;;  %vm1660_vm11 = vcmp.ge.f32.partialorder %v1652_v7, 0.0  ;;  %v1668_v26 = vmul.f32 0.01, %v1652_v7  ;;  %v2063_v1 = vpop.f32.mrb[4].mxu0 }
 0x147   : > { %1683 = vst [vmem:[%s2792_s20] sm:$0xff] %v1675_v28  ;;  %v1678_v33 = vsel %vm1662_vm10, %v1654_v8, %v1670_v44  ;;  %v1621_v20 = vpop.f32.mrb[5].mxu0 }
 0x148   : > { %1686 = vst [vmem:[%s2792_s20 + $0x18] sm:$0xff] %v1678_v33  ;;  %v1676_v49 = vsel %vm1660_vm11, %v1652_v7, %v1668_v26  ;;  %v2023_v40 = vpop.f32.mrb[4].mxu1  ;;  %v2064_v29 = vpop.f32.mrb[6].mxu0 }
 0x149   : > { %1684 = vst [vmem:[%s2792_s20 + $0x8] sm:$0xff] %v1676_v49  ;;  %v2071_v53 = vadd.f32 %v2063_v1, %v2023_v40  ;;  %v993_v38 = vpop.f32.mrb[5].mxu1  ;;  %v1624_v51 = vpop.f32.mrb[7].mxu0 }
 0x14a   : > { %v2072_v6 = vadd.f32 %v1621_v20, %v993_v38  ;;  %v2024_v36 = vpop.f32.mrb[6].mxu1 }
 0x14b   : > { %v1657_v59 = vadd.f32 %v2071_v53, %v1926_v50  ;;  %v2073_v5 = vadd.f32 %v2064_v29, %v2024_v36  ;;  %v996_v41 = vpop.f32.mrb[7].mxu1 }
 0x14c   : > { %v1655_v47 = vadd.f32 %v2072_v6, %v1926_v50  ;;  %v2074_v35 = vadd.f32 %v1624_v51, %v996_v41 }
 0x14d   : > { %vm1665_vm12 = vcmp.ge.f32.partialorder %v1657_v59, 0.0  ;;  %v1673_v3 = vmul.f32 0.01, %v1657_v59  ;;  %v1658_v12 = vadd.f32 %v2073_v5, %v1926_v50 }
 0x14e   : > { %vm1663_vm13 = vcmp.ge.f32.partialorder %v1655_v47, 0.0  ;;  %v1671_v37 = vmul.f32 0.01, %v1655_v47  ;;  %v1656_v32 = vadd.f32 %v2074_v35, %v1926_v50 }
 0x14f   : > { %v1681_v10 = vsel %vm1665_vm12, %v1657_v59, %v1673_v3  ;;  %vm1666_vm14 = vcmp.ge.f32.partialorder %v1658_v12, 0.0  ;;  %v1674_v39 = vmul.f32 0.01, %v1658_v12 }
 0x150   : > { %1689 = vst [vmem:[%s2792_s20 + $0x30] sm:$0xff] %v1681_v10  ;;  %v1679_v55 = vsel %vm1663_vm13, %v1655_v47, %v1671_v37  ;;  %vm1664_vm15 = vcmp.ge.f32.partialorder %v1656_v32, 0.0  ;;  %v1672_v0 = vmul.f32 0.01, %v1656_v32 }
 0x151   : > { %1687 = vst [vmem:[%s2792_s20 + $0x20] sm:$0xff] %v1679_v55  ;;  %v1682_v9 = vsel %vm1666_vm14, %v1658_v12, %v1674_v39 }
 0x152   : > { %1690 = vst [vmem:[%s2792_s20 + $0x38] sm:$0xff] %v1682_v9  ;;  %v1680_v46 = vsel %vm1664_vm15, %v1656_v32, %v1672_v0 }
 0x153   : > { %1688 = vst [vmem:[%s2792_s20 + $0x28] sm:$0xff] %v1680_v46 }
 0x154 PF: > { %s13_s14 = sadd.s32 1, %s2200_s14   ;;  %s2828_s12 = smov %s2196_s13 }
 0x155   : > { %p10_p5 = scmp.ge.s32.totalorder %s13_s14, 4   ;;  %s2829_s13 = smov %s2831_s15 }
 0x157   :  { %12 = sbr.rel (!%p10_p5) target bundleno = 2 (0x2), region = 73 }

</bundles_post_ra>
